<compile_context>
chip_gen: v5e
topology: v5e:2x2
jax: 0.10.0
libtpu: 0.0.40
codegen_flags: <defaults>
</compile_context>

<pallas_src>
import functools

import jax
import jax.numpy as jnp
import numpy as np
from jax import lax
from jax.experimental import pallas as pl
from jax.experimental.pallas import tpu as pltpu


# ----------------------------------------------------------------------------
# Small helpers: hardware query, VMEM sizing, time-chunk derivation.
# ----------------------------------------------------------------------------
def _round_up(x, m):
    return ((x + m - 1) // m) * m


def _vmem_cap_bytes():
    try:
        return int(pltpu.get_tpu_info().vmem_capacity_bytes)
    except Exception:
        return 64 * 1024 * 1024        # conservative fallback (v7x per-TC VMEM)


def _vmem_limit_bytes(Tc, B, H, pg_bytes, out_bytes, whh_bytes, whh_bufs):
    """Scoped-VMEM limit from the actual working set of one bilstm_layer call."""
    pg_slabs = 2 * 2 * Tc * B * 4 * H * pg_bytes      # 2 dirs x double-buffered pre-gates
    out_slabs = 2 * 2 * Tc * B * H * out_bytes        # 2 dirs x double-buffered outputs
    whh = whh_bufs * 2 * H * 4 * H * whh_bytes        # recurrent weights (1 or 2 buffers)
    state = 4 * B * H * 4                             # (h, c) scratch for both directions
    misc = 2 << 20                                    # compiler temporaries / lengths
    need = pg_slabs + out_slabs + whh + state + misc
    cap = _vmem_cap_bytes()
    return int(min(max(need * 3 // 2, 32 << 20), int(cap * 0.9)))


def _derive_time_chunk(T, B, H, pg_bytes, out_bytes, max_chunk=32):
    """Largest chunk (8..max_chunk) whose double-buffered working set fits comfortably in
    this generation's VMEM (v5e/v6e: 128 MiB, v7x: 64 MiB per TC)."""
    budget = int(_vmem_cap_bytes() * 0.45)
    per_step = 2 * 2 * B * 4 * H * pg_bytes + 2 * 2 * B * H * out_bytes
    fixed = 2 * H * 4 * H * 4 + 4 * B * H * 4 + (2 << 20)
    tc = max(8, int(max_chunk))
    while tc > 8 and fixed + tc * per_step > budget:
        tc //= 2
    # Never pick a chunk longer than the (8-rounded) sequence itself.
    return min(tc, _round_up(T, 8))


# ----------------------------------------------------------------------------
# Probe (run OUTSIDE any jit trace): does this build honor pl.Buffered(1) on a
# grid-invariant input of a top-level pallas_call?  If yes, W_hh is single-buffered.
# ----------------------------------------------------------------------------
def _probe_kernel(a_ref, w_ref, o_ref):
    o_ref[...] = a_ref[...] + w_ref[...]


@functools.lru_cache(maxsize=None)
def _single_buffer_supported():
    if not hasattr(pl, "Buffered"):
        return False
    try:
        f = pl.pallas_call(
            _probe_kernel,
            out_shape=jax.ShapeDtypeStruct((2, 8, 128), jnp.float32),
            grid=(2,),
            in_specs=[
                pl.BlockSpec((1, 8, 128), lambda i: (i, 0, 0)),
                pl.BlockSpec((8, 128), lambda i: (0, 0),
                             pipeline_mode=pl.Buffered(1)),
            ],
            out_specs=pl.BlockSpec((1, 8, 128), lambda i: (i, 0, 0)),
        )
        a = jnp.ones((2, 8, 128), jnp.float32)
        w = jnp.ones((8, 128), jnp.float32)
        out = jax.block_until_ready(jax.jit(f)(a, w))
        return bool(jnp.allclose(out, 2.0))
    except Exception:
        return False


# ----------------------------------------------------------------------------
# Pallas kernel: fused bidirectional LSTM recurrence over a chunk of Tc steps.
#
# grid = (T // Tc,) walked sequentially ("arbitrary").  Per grid step: Tc forward pre-gate
# blocks (times t0 .. t0+Tc-1), Tc reverse blocks (times T-1-t0 .. T-Tc-t0), both cells with
# (h, c) kept in VMEM scratch across grid steps, two (Tc, B, H) output slabs written.
# ----------------------------------------------------------------------------
def _bilstm_chunk_kernel(len_ref, pgf_ref, pgr_ref, whh_ref,
                         outf_ref, outr_ref,
                         hf_scr, cf_scr, hr_scr, cr_scr,
                         *, T, Tc, H, matmul_dtype):
    c = pl.program_id(0)

    @pl.when(c == 0)
    def _():
        hf_scr[...] = jnp.zeros_like(hf_scr)
        cf_scr[...] = jnp.zeros_like(cf_scr)
        hr_scr[...] = jnp.zeros_like(hr_scr)
        cr_scr[...] = jnp.zeros_like(cr_scr)

    lens = len_ref[...]                       # (B, 1) int32
    # W_hh arrives pre-cast to matmul_dtype (no per-step VPU cast) and stays resident.
    w_f = whh_ref[0]
    w_r = whh_ref[1]

    t0 = c * Tc

    def cell(pre, h, c_state, w):
        # pre: (B, 4H) = x @ W_ih + b_ih + b_hh, precomputed outside the recurrence.
        gates = pre.astype(jnp.float32) + jnp.dot(
            h.astype(matmul_dtype), w, preferred_element_type=jnp.float32)
        # For the real config (H multiple of 32, ideally 128) the gate slices land on lane
        # boundaries; the toy H=32 config pays a small sub-vreg select cost.
        i = jax.nn.sigmoid(gates[:, 0 * H:1 * H])
        f = jax.nn.sigmoid(gates[:, 1 * H:2 * H])
        g = jnp.tanh(gates[:, 2 * H:3 * H])
        o = jax.nn.sigmoid(gates[:, 3 * H:4 * H])
        c_new = f * c_state + i * g
        h_new = o * jnp.tanh(c_new)
        return h_new, c_new

    def body(j, carry):
        h_f, c_f, h_r, c_r = carry

        # ---- forward direction, global time t0 + j ----
        h_new, c_new = cell(pgf_ref[j], h_f, c_f, w_f)
        valid = (t0 + j) < lens                               # (B, 1) bool
        h_f = jnp.where(valid, h_new, h_f)
        c_f = jnp.where(valid, c_new, c_f)
        outf_ref[j] = jnp.where(valid, h_new, 0.0).astype(outf_ref.dtype)

        # ---- reverse direction, global time T - 1 - (t0 + j) ----
        jj = Tc - 1 - j
        h_new, c_new = cell(pgr_ref[jj], h_r, c_r, w_r)
        valid = (T - 1 - (t0 + j)) < lens
        h_r = jnp.where(valid, h_new, h_r)
        c_r = jnp.where(valid, c_new, c_r)
        outr_ref[jj] = jnp.where(valid, h_new, 0.0).astype(outr_ref.dtype)

        return h_f, c_f, h_r, c_r

    # Unrolled fori_loop: LLO keeps scheduling visibility while live ranges stay bounded
    # (a static Python unroll would keep all Tc (B,4H) gate tensors live -> spills).
    init = (hf_scr[...], cf_scr[...], hr_scr[...], cr_scr[...])
    h_f, c_f, h_r, c_r = lax.fori_loop(0, Tc, body, init, unroll=True)

    hf_scr[...], cf_scr[...] = h_f, c_f
    hr_scr[...], cr_scr[...] = h_r, c_r


def bilstm_layer(pg_all, lengths_b1, whh_both, *, Tc, matmul_dtype,
                 out_dtype=jnp.float32, single_buffer_invariants=False):
    """pg_all: (T, B, 8H) pre-gates ([fwd 4H | bwd 4H] on the last axis),
       lengths_b1: (B, 1) i32, whh_both: (2, H, 4H) = [W_hh_fwd^T, W_hh_bwd^T].
       Returns (fwd_out, bwd_out), each (T, B, H) in out_dtype."""
    T, B, eightH = pg_all.shape
    H = whh_both.shape[1]
    assert eightH == 8 * H
    assert (4 * H) % 128 == 0, "H must be a multiple of 32 (lane-aligned gate blocks)"
    assert T % Tc == 0
    nT = T // Tc

    # Pre-cast the recurrent weights ONCE (XLA op, outside the grid loop).
    whh_mm = whh_both.astype(matmul_dtype)

    pg_bytes = jnp.dtype(pg_all.dtype).itemsize
    out_bytes = jnp.dtype(out_dtype).itemsize
    whh_bytes = jnp.dtype(matmul_dtype).itemsize

    use_single_buf = single_buffer_invariants and hasattr(pl, "Buffered")
    if use_single_buf:
        # Grid-invariant index_map -> one buffer is enough; frees H*4H*itemsize of VMEM.
        whh_spec = pl.BlockSpec((2, H, 4 * H), lambda c: (0, 0, 0),
                                pipeline_mode=pl.Buffered(1))
    else:
        whh_spec = pl.BlockSpec((2, H, 4 * H), lambda c: (0, 0, 0))

    vmem_limit = _vmem_limit_bytes(Tc, B, H, pg_bytes, out_bytes, whh_bytes,
                                   whh_bufs=1 if use_single_buf else 2)

    kernel = functools.partial(_bilstm_chunk_kernel, T=T, Tc=Tc, H=H,
                               matmul_dtype=matmul_dtype)

    return pl.pallas_call(
        kernel,
        out_shape=(jax.ShapeDtypeStruct((T, B, H), out_dtype),
                   jax.ShapeDtypeStruct((T, B, H), out_dtype)),
        grid=(nT,),
        in_specs=[
            pl.BlockSpec((B, 1), lambda c: (0, 0)),                     # lengths (tiny)
            pl.BlockSpec((Tc, B, 4 * H), lambda c: (c, 0, 0)),          # fwd pre-gates
            pl.BlockSpec((Tc, B, 4 * H), lambda c: (nT - 1 - c, 0, 1)), # bwd pre-gates
            whh_spec,                                                   # W_hh (both dirs)
        ],
        out_specs=(
            pl.BlockSpec((Tc, B, H), lambda c: (c, 0, 0)),              # fwd h slab
            pl.BlockSpec((Tc, B, H), lambda c: (nT - 1 - c, 0, 0)),     # bwd h slab
        ),
        scratch_shapes=[pltpu.VMEM((B, H), jnp.float32) for _ in range(4)],
        compiler_params=pltpu.CompilerParams(
            dimension_semantics=("arbitrary",),       # recurrence -> sequential grid
            vmem_limit_bytes=vmem_limit),
    )(lengths_b1, pg_all, pg_all, whh_mm)


# ----------------------------------------------------------------------------
# Hoisted input projection: one large GEMM per layer (fwd+bwd stacked to 8H), split
# row-wise over the shortcut-concat pieces so the concatenation never hits HBM.
# (Plain XLA GEMM: the MXU-friendly bulk matmul needs no custom kernel.)
# ----------------------------------------------------------------------------
def _input_projection(pieces, wih, bias, matmul_dtype):
    offs = np.cumsum([0] + [int(p.shape[-1]) for p in pieces])
    acc = None
    for piece, lo, hi in zip(pieces, offs[:-1], offs[1:]):
        term = jnp.einsum(
            "tbd,dg->tbg",
            piece.astype(matmul_dtype), wih[lo:hi].astype(matmul_dtype),
            preferred_element_type=jnp.float32)
        acc = term if acc is None else acc + term
    return acc + bias                                    # bias: (8H,), f32


# ----------------------------------------------------------------------------
# Module wrapper: StackedShortcutLSTM.forward
# ----------------------------------------------------------------------------
def stacked_shortcut_lstm(emb_batch, lengths, params, *,
                          matmul_dtype=jnp.float32,
                          pregate_dtype=None,
                          max_time_chunk=32,
                          single_buffer_invariants=False):
    """emb_batch: (B, T, E) f32 (batch_first), lengths: (B,) i32.
       Returns lstm_out_2: (B, T, 2 * hidden_sizes[-1]) f32."""
    B, T, _ = emb_batch.shape
    if pregate_dtype is None:
        # bf16 pre-gate streaming halves the dominant HBM stream (v6e) and the per-chunk
        # VMEM slabs (v7x).  On v5e keep f32 end to end (no bf16 VPU datapath).
        pregate_dtype = (jnp.bfloat16
                         if jnp.dtype(matmul_dtype) == jnp.dtype(jnp.bfloat16)
                         else jnp.float32)

    x = jnp.transpose(emb_batch, (1, 0, 2)).astype(jnp.float32)    # time-major (T, B, E)
    lengths_b1 = lengths.reshape(B, 1).astype(jnp.int32)

    # Derive the time chunk from this generation's VMEM budget, then pad T up to a
    # multiple of it (padded steps are masked by the length logic and trimmed below).
    H_max = max(int(p["whh"].shape[1]) for p in params)
    Tc = _derive_time_chunk(T, B, H_max, jnp.dtype(pregate_dtype).itemsize, 4,
                            max_chunk=max_time_chunk)
    T_pad = _round_up(T, Tc)
    if T_pad != T:
        x = jnp.pad(x, ((0, T_pad - T), (0, 0), (0, 0)))

    pieces = [x]                  # shortcut-concat inputs, kept separate (no HBM concat)
    out_f = out_r = None
    n_layers = len(params)
    for li, layer in enumerate(params):
        pg = _input_projection(pieces, layer["wih"], layer["bias"], matmul_dtype)
        pg = pg.astype(pregate_dtype)
        out_dtype = jnp.float32 if li == n_layers - 1 else pregate_dtype
        out_f, out_r = bilstm_layer(pg, lengths_b1, layer["whh"], Tc=Tc,
                                    matmul_dtype=matmul_dtype, out_dtype=out_dtype,
                                    single_buffer_invariants=single_buffer_invariants)
        pieces = pieces + [out_f, out_r]

    # forward() returns only lstm_out_2; a single concat at the very end.
    out = jnp.concatenate([out_f, out_r], axis=-1)                 # (T_pad, B, 2H)
    out = out[:T]                                                  # trim time padding
    return jnp.transpose(out, (1, 0, 2))                           # (B, T, 2H)


# ----------------------------------------------------------------------------
# Deterministic parameter init (PyTorch nn.LSTM-equivalent, uniform(-1/sqrt(H), 1/sqrt(H))),
# stored in kernel-friendly layout:
#   wih : (Din, 8H)  = [W_ih_fwd^T | W_ih_bwd^T]  (columns)
#   whh : (2, H, 4H) = stack([W_hh_fwd^T, W_hh_bwd^T])
#   bias: (8H,)      = [b_ih_f + b_hh_f | b_ih_r + b_hh_r]
# Gate order inside each 4H block is PyTorch's (i, f, g, o).
# ----------------------------------------------------------------------------
def init_params(key, embedding_dim, hidden_sizes):
    params = []
    in_dim = embedding_dim
    for H in hidden_sizes:
        k = 1.0 / np.sqrt(H)
        key, kw, kh, kbi, kbh = jax.random.split(key, 5)
        wih = jax.random.uniform(kw, (in_dim, 8 * H), jnp.float32, -k, k)
        whh = jax.random.uniform(kh, (2, H, 4 * H), jnp.float32, -k, k)
        b_ih = jax.random.uniform(kbi, (8 * H,), jnp.float32, -k, k)
        b_hh = jax.random.uniform(kbh, (8 * H,), jnp.float32, -k, k)
        params.append({"wih": wih, "whh": whh, "bias": b_ih + b_hh})
        in_dim = in_dim + 2 * H       # shortcut concat grows the next layer's input
    return params


# ----------------------------------------------------------------------------
# Pure-JAX reference (naive concat + lax.scan) for a correctness check.
# ----------------------------------------------------------------------------
def _ref_lstm_dir(pre, len_b1, whh, reverse):
    T, B, fourH = pre.shape
    H = fourH // 4

    def step(carry, inp):
        h, c = carry
        g_in, t_idx = inp
        gates = g_in + h @ whh
        i = jax.nn.sigmoid(gates[:, :H])
        f = jax.nn.sigmoid(gates[:, H:2 * H])
        g = jnp.tanh(gates[:, 2 * H:3 * H])
        o = jax.nn.sigmoid(gates[:, 3 * H:])
        c_new = f * c + i * g
        h_new = o * jnp.tanh(c_new)
        valid = t_idx < len_b1
        h = jnp.where(valid, h_new, h)
        c = jnp.where(valid, c_new, c)
        return (h, c), jnp.where(valid, h_new, 0.0)

    t_order = jnp.arange(T)[::-1] if reverse else jnp.arange(T)
    init = (jnp.zeros((B, H), jnp.float32), jnp.zeros((B, H), jnp.float32))
    _, outs = jax.lax.scan(step, init, (pre[t_order], t_order))
    return outs[::-1] if reverse else outs


def _ref_forward(emb_batch, lengths, params):
    B, T, _ = emb_batch.shape
    x = jnp.transpose(emb_batch, (1, 0, 2)).astype(jnp.float32)
    len_b1 = lengths.reshape(B, 1)
    cur, out = x, None
    for p in params:
        H = p["whh"].shape[1]
        pg = jnp.einsum("tbd,dg->tbg", cur, p["wih"]) + p["bias"]
        fwd = _ref_lstm_dir(pg[..., :4 * H], len_b1, p["whh"][0], reverse=False)
        bwd = _ref_lstm_dir(pg[..., 4 * H:], len_b1, p["whh"][1], reverse=True)
        out = jnp.concatenate([fwd, bwd], axis=-1)
        cur = jnp.concatenate([cur, out], axis=-1)
    return jnp.transpose(out, (1, 0, 2))


if __name__ == "__main__":
    B, T, E = 2, 8, 32
    hidden_sizes = [32, 32, 32]

    key = jax.random.PRNGKey(0)
    key, k_emb = jax.random.split(key)
    emb_batch = jax.random.normal(k_emb, (B, T, E), jnp.float32)
    lengths = jnp.array([8, 5], dtype=jnp.int32)      # variable lengths (packed semantics)

    params = init_params(key, E, hidden_sizes)

    # Probe (outside any jit trace) whether grid-invariant inputs can be single-buffered;
    # falls back to the default double-buffered specs when unsupported.
    single_buf = _single_buffer_supported()

    fwd_f32 = jax.jit(functools.partial(stacked_shortcut_lstm,
                                        matmul_dtype=jnp.float32,
                                        single_buffer_invariants=single_buf))
    out = jax.block_until_ready(fwd_f32(emb_batch, lengths, params))
    assert out.shape == (B, T, 2 * hidden_sizes[-1]), out.shape

    ref = jax.block_until_ready(_ref_forward(emb_batch, lengths, params))
    np.testing.assert_allclose(np.asarray(out), np.asarray(ref), rtol=1e-4, atol=2e-5)

    # Awkward T: padded up to a chunk multiple inside the wrapper, trimmed on the way out.
    T2 = 11
    emb2 = jax.random.normal(jax.random.PRNGKey(1), (B, T2, E), jnp.float32)
    len2 = jnp.array([11, 7], dtype=jnp.int32)
    out2 = jax.block_until_ready(fwd_f32(emb2, len2, params))
    ref2 = jax.block_until_ready(_ref_forward(emb2, len2, params))
    np.testing.assert_allclose(np.asarray(out2), np.asarray(ref2), rtol=1e-4, atol=2e-5)

    # bf16 matmul / bf16 pre-gate streaming path (v6e/v7x); cell state math stays f32.
    fwd_bf16 = jax.jit(functools.partial(stacked_shortcut_lstm,
                                         matmul_dtype=jnp.bfloat16,
                                         single_buffer_invariants=single_buf))
    out_bf16 = jax.block_until_ready(fwd_bf16(emb_batch, lengths, params))
    assert out_bf16.shape == out.shape
    assert bool(jnp.all(jnp.isfinite(out_bf16)))

    print("KERNEL_OK")
</pallas_src>

<mosaic_0001>
module attributes {stable_mosaic.version = 11 : i64} {
  func.func @_probe_kernel(%arg0: i32, %arg1: memref<1x8x128xf32, #tpu.memory_space<vmem>>, %arg2: memref<8x128xf32, #tpu.memory_space<vmem>>, %arg3: memref<1x8x128xf32, #tpu.memory_space<vmem>>) attributes {dimension_semantics = [#tpu.dimension_semantics<arbitrary>], iteration_bounds = array<i64: 2>, scalar_prefetch = 0 : i64, scratch_operands = 0 : i64, tpu.core_type = #tpu.core_type<tc>, window_params = [{transform_indices = @transform_0, window_bounds = array<i64: 1, 8, 128>}, {pipeline_mode = #tpu.pipeline_mode<synchronous>, transform_indices = @transform_1, window_bounds = array<i64: 8, 128>}, {transform_indices = @transform_2, window_bounds = array<i64: 1, 8, 128>}]} {
    %c0 = arith.constant 0 : index
    %c0_0 = arith.constant 0 : index
    %c0_1 = arith.constant 0 : index
    %0 = vector.load %arg1[%c0, %c0_0, %c0_1] : memref<1x8x128xf32, #tpu.memory_space<vmem>>, vector<1x8x128xf32>
    %c0_2 = arith.constant 0 : index
    %c0_3 = arith.constant 0 : index
    %1 = vector.load %arg2[%c0_2, %c0_3] : memref<8x128xf32, #tpu.memory_space<vmem>>, vector<8x128xf32>
    %2 = vector.shape_cast %1 : vector<8x128xf32> to vector<1x8x128xf32>
    %3 = arith.addf %0, %2 : vector<1x8x128xf32>
    %c0_4 = arith.constant 0 : index
    %c0_5 = arith.constant 0 : index
    %c0_6 = arith.constant 0 : index
    %4 = vector.load %arg3[%c0_4, %c0_5, %c0_6] : memref<1x8x128xf32, #tpu.memory_space<vmem>>, vector<1x8x128xf32>
    tpu.vector_store %arg3[%c0_4, %c0_5, %c0_6], %3 {strides = array<i32>} : memref<1x8x128xf32, #tpu.memory_space<vmem>>, vector<1x8x128xf32>,
    return
  }
  func.func @transform_0(%arg0: i32) -> (i32, i32, i32) {
    %c0_i32 = arith.constant 0 : i32
    %c0_i32_0 = arith.constant 0 : i32
    %c0_i32_1 = arith.constant 0 : i32
    return %arg0, %c0_i32, %c0_i32_0 : i32, i32, i32
  }
  func.func @transform_1(%arg0: i32) -> (i32, i32) {
    %c0_i32 = arith.constant 0 : i32
    %c0_i32_0 = arith.constant 0 : i32
    %c0_i32_1 = arith.constant 0 : i32
    return %c0_i32, %c0_i32_0 : i32, i32
  }
  func.func @transform_2(%arg0: i32) -> (i32, i32, i32) {
    %c0_i32 = arith.constant 0 : i32
    %c0_i32_0 = arith.constant 0 : i32
    %c0_i32_1 = arith.constant 0 : i32
    return %arg0, %c0_i32, %c0_i32_0 : i32, i32, i32
  }
}

module attributes {stable_mosaic.version = 11 : i64} {
  func.func @_bilstm_chunk_kernel(%arg0: i32, %arg1: memref<2x1xi32, #tpu.memory_space<vmem>>, %arg2: memref<8x2x128xf32, #tpu.memory_space<vmem>>, %arg3: memref<8x2x128xf32, #tpu.memory_space<vmem>>, %arg4: memref<2x32x128xf32, #tpu.memory_space<vmem>>, %arg5: memref<8x2x32xf32, #tpu.memory_space<vmem>>, %arg6: memref<8x2x32xf32, #tpu.memory_space<vmem>>, %arg7: memref<2x32xf32, #tpu.memory_space<vmem>>, %arg8: memref<2x32xf32, #tpu.memory_space<vmem>>, %arg9: memref<2x32xf32, #tpu.memory_space<vmem>>, %arg10: memref<2x32xf32, #tpu.memory_space<vmem>>) attributes {dimension_semantics = [#tpu.dimension_semantics<arbitrary>], iteration_bounds = array<i64: 1>, scalar_prefetch = 0 : i64, scratch_operands = 4 : i64, tpu.core_type = #tpu.core_type<tc>, window_params = [{pipeline_mode = #tpu.pipeline_mode<synchronous>, transform_indices = @transform_0, window_bounds = array<i64: 2, 1>}, {transform_indices = @transform_1, window_bounds = array<i64: 8, 2, 128>}, {transform_indices = @transform_2, window_bounds = array<i64: 8, 2, 128>}, {pipeline_mode = #tpu.pipeline_mode<synchronous>, transform_indices = @transform_3, window_bounds = array<i64: 2, 32, 128>}, {transform_indices = @transform_4, window_bounds = array<i64: 8, 2, 32>}, {transform_indices = @transform_5, window_bounds = array<i64: 8, 2, 32>}]} {
    %c0_i32 = arith.constant 0 : i32
    %0 = arith.cmpi eq, %arg0, %c0_i32 : i32
    %1 = arith.extui %0 : i1 to i32
    %c0_i32_0 = arith.constant 0 : i32
    %2 = arith.cmpi ne, %1, %c0_i32_0 : i32
    scf.if %2 {
      %cst_184 = arith.constant 0.000000e+00 : f32
      %785 = vector.broadcast %cst_184 : f32 to vector<2x32xf32>
      %c0_185 = arith.constant 0 : index
      %c0_186 = arith.constant 0 : index
      %786 = vector.load %arg7[%c0_185, %c0_186] : memref<2x32xf32, #tpu.memory_space<vmem>>, vector<2x32xf32>
      tpu.vector_store %arg7[%c0_185, %c0_186], %785 {strides = array<i32>} : memref<2x32xf32, #tpu.memory_space<vmem>>, vector<2x32xf32>,
      %cst_187 = arith.constant 0.000000e+00 : f32
      %787 = vector.broadcast %cst_187 : f32 to vector<2x32xf32>
      %c0_188 = arith.constant 0 : index
      %c0_189 = arith.constant 0 : index
      %788 = vector.load %arg8[%c0_188, %c0_189] : memref<2x32xf32, #tpu.memory_space<vmem>>, vector<2x32xf32>
      tpu.vector_store %arg8[%c0_188, %c0_189], %787 {strides = array<i32>} : memref<2x32xf32, #tpu.memory_space<vmem>>, vector<2x32xf32>,
      %cst_190 = arith.constant 0.000000e+00 : f32
      %789 = vector.broadcast %cst_190 : f32 to vector<2x32xf32>
      %c0_191 = arith.constant 0 : index
      %c0_192 = arith.constant 0 : index
      %790 = vector.load %arg9[%c0_191, %c0_192] : memref<2x32xf32, #tpu.memory_space<vmem>>, vector<2x32xf32>
      tpu.vector_store %arg9[%c0_191, %c0_192], %789 {strides = array<i32>} : memref<2x32xf32, #tpu.memory_space<vmem>>, vector<2x32xf32>,
      %cst_193 = arith.constant 0.000000e+00 : f32
      %791 = vector.broadcast %cst_193 : f32 to vector<2x32xf32>
      %c0_194 = arith.constant 0 : index
      %c0_195 = arith.constant 0 : index
      %792 = vector.load %arg10[%c0_194, %c0_195] : memref<2x32xf32, #tpu.memory_space<vmem>>, vector<2x32xf32>
      tpu.vector_store %arg10[%c0_194, %c0_195], %791 {strides = array<i32>} : memref<2x32xf32, #tpu.memory_space<vmem>>, vector<2x32xf32>,
    } else {
    }
    %c0 = arith.constant 0 : index
    %c0_1 = arith.constant 0 : index
    %3 = vector.load %arg1[%c0, %c0_1] : memref<2x1xi32, #tpu.memory_space<vmem>>, vector<2x1xi32>
    %c0_2 = arith.constant 0 : index
    %c0_3 = arith.constant 0 : index
    %c0_4 = arith.constant 0 : index
    %4 = vector.load %arg4[%c0_2, %c0_3, %c0_4] : memref<2x32x128xf32, #tpu.memory_space<vmem>>, vector<1x32x128xf32>
    %5 = vector.shape_cast %4 : vector<1x32x128xf32> to vector<32x128xf32>
    %c1 = arith.constant 1 : index
    %c0_5 = arith.constant 0 : index
    %c0_6 = arith.constant 0 : index
    %6 = vector.load %arg4[%c1, %c0_5, %c0_6] : memref<2x32x128xf32, #tpu.memory_space<vmem>>, vector<1x32x128xf32>
    %7 = vector.shape_cast %6 : vector<1x32x128xf32> to vector<32x128xf32>
    %c8_i32 = arith.constant 8 : i32
    %8 = arith.muli %arg0, %c8_i32 : i32
    %c0_7 = arith.constant 0 : index
    %c0_8 = arith.constant 0 : index
    %9 = vector.load %arg7[%c0_7, %c0_8] : memref<2x32xf32, #tpu.memory_space<vmem>>, vector<2x32xf32>
    %c0_9 = arith.constant 0 : index
    %c0_10 = arith.constant 0 : index
    %10 = vector.load %arg8[%c0_9, %c0_10] : memref<2x32xf32, #tpu.memory_space<vmem>>, vector<2x32xf32>
    %c0_11 = arith.constant 0 : index
    %c0_12 = arith.constant 0 : index
    %11 = vector.load %arg9[%c0_11, %c0_12] : memref<2x32xf32, #tpu.memory_space<vmem>>, vector<2x32xf32>
    %c0_13 = arith.constant 0 : index
    %c0_14 = arith.constant 0 : index
    %12 = vector.load %arg10[%c0_13, %c0_14] : memref<2x32xf32, #tpu.memory_space<vmem>>, vector<2x32xf32>
    %c0_i32_15 = arith.constant 0 : i32
    %13 = arith.index_cast %c0_i32_15 : i32 to index
    %c0_16 = arith.constant 0 : index
    %c0_17 = arith.constant 0 : index
    %14 = vector.load %arg2[%13, %c0_16, %c0_17] : memref<8x2x128xf32, #tpu.memory_space<vmem>>, vector<1x2x128xf32>
    %15 = vector.shape_cast %14 : vector<1x2x128xf32> to vector<2x128xf32>
    %cst = arith.constant dense<0.000000e+00> : vector<2x128xf32>
    %16 = tpu.matmul %9, %5, %cst {dimension_numbers = #tpu.dot_dimension_numbers<[1], [0], [0], [1], [0, 0, 1, 1], [], []>} : vector<2x32xf32>, vector<32x128xf32>, vector<2x128xf32> -> vector<2x128xf32>
    %17 = arith.addf %15, %16 : vector<2x128xf32>
    %18 = vector.extract_strided_slice %17 {offsets = [0, 0], sizes = [2, 32], strides = [1, 1]} : vector<2x128xf32> to vector<2x32xf32>
    %19 = arith.negf %18 : vector<2x32xf32>
    %20 = math.exp %19 : vector<2x32xf32>
    %cst_18 = arith.constant 1.000000e+00 : f32
    %21 = vector.broadcast %cst_18 : f32 to vector<2x32xf32>
    %22 = arith.addf %21, %20 : vector<2x32xf32>
    %23 = arith.divf %21, %22 : vector<2x32xf32>
    %24 = vector.extract_strided_slice %17 {offsets = [0, 32], sizes = [2, 32], strides = [1, 1]} : vector<2x128xf32> to vector<2x32xf32>
    %25 = arith.negf %24 : vector<2x32xf32>
    %26 = math.exp %25 : vector<2x32xf32>
    %cst_19 = arith.constant 1.000000e+00 : f32
    %27 = vector.broadcast %cst_19 : f32 to vector<2x32xf32>
    %28 = arith.addf %27, %26 : vector<2x32xf32>
    %29 = arith.divf %27, %28 : vector<2x32xf32>
    %30 = vector.extract_strided_slice %17 {offsets = [0, 64], sizes = [2, 32], strides = [1, 1]} : vector<2x128xf32> to vector<2x32xf32>
    %31 = math.tanh %30 : vector<2x32xf32>
    %32 = vector.extract_strided_slice %17 {offsets = [0, 96], sizes = [2, 32], strides = [1, 1]} : vector<2x128xf32> to vector<2x32xf32>
    %33 = arith.negf %32 : vector<2x32xf32>
    %34 = math.exp %33 : vector<2x32xf32>
    %cst_20 = arith.constant 1.000000e+00 : f32
    %35 = vector.broadcast %cst_20 : f32 to vector<2x32xf32>
    %36 = arith.addf %35, %34 : vector<2x32xf32>
    %37 = arith.divf %35, %36 : vector<2x32xf32>
    %38 = arith.mulf %29, %10 : vector<2x32xf32>
    %39 = arith.mulf %23, %31 : vector<2x32xf32>
    %40 = arith.addf %38, %39 : vector<2x32xf32>
    %41 = math.tanh %40 : vector<2x32xf32>
    %42 = arith.mulf %37, %41 : vector<2x32xf32>
    %43 = arith.addi %8, %c0_i32_15 : i32
    %44 = vector.broadcast %43 : i32 to vector<2x1xi32>
    %45 = arith.cmpi slt, %44, %3 : vector<2x1xi32>
    %46 = vector.shape_cast %45 : vector<2x1xi1> to vector<2x1xi1>
    %47 = vector.broadcast %46 : vector<2x1xi1> to vector<2x32xi1>
    %48 = arith.select %47, %42, %9 : vector<2x32xi1>, vector<2x32xf32>
    %49 = vector.shape_cast %45 : vector<2x1xi1> to vector<2x1xi1>
    %50 = vector.broadcast %49 : vector<2x1xi1> to vector<2x32xi1>
    %51 = arith.select %50, %40, %10 : vector<2x32xi1>, vector<2x32xf32>
    %cst_21 = arith.constant 0.000000e+00 : f32
    %52 = vector.shape_cast %45 : vector<2x1xi1> to vector<2x1xi1>
    %53 = vector.broadcast %52 : vector<2x1xi1> to vector<2x32xi1>
    %54 = vector.broadcast %cst_21 : f32 to vector<2x32xf32>
    %55 = arith.select %53, %42, %54 : vector<2x32xi1>, vector<2x32xf32>
    %56 = arith.index_cast %c0_i32_15 : i32 to index
    %c0_22 = arith.constant 0 : index
    %c0_23 = arith.constant 0 : index
    %57 = vector.load %arg5[%56, %c0_22, %c0_23] : memref<8x2x32xf32, #tpu.memory_space<vmem>>, vector<1x2x32xf32>
    %58 = vector.shape_cast %57 : vector<1x2x32xf32> to vector<2x32xf32>
    %59 = vector.shape_cast %55 : vector<2x32xf32> to vector<1x2x32xf32>
    tpu.vector_store %arg5[%56, %c0_22, %c0_23], %59 {strides = array<i32>} : memref<8x2x32xf32, #tpu.memory_space<vmem>>, vector<1x2x32xf32>,
    %c7_i32 = arith.constant 7 : i32
    %60 = arith.subi %c7_i32, %c0_i32_15 : i32
    %61 = arith.index_cast %60 : i32 to index
    %c0_24 = arith.constant 0 : index
    %c0_25 = arith.constant 0 : index
    %62 = vector.load %arg3[%61, %c0_24, %c0_25] : memref<8x2x128xf32, #tpu.memory_space<vmem>>, vector<1x2x128xf32>
    %63 = vector.shape_cast %62 : vector<1x2x128xf32> to vector<2x128xf32>
    %cst_26 = arith.constant dense<0.000000e+00> : vector<2x128xf32>
    %64 = tpu.matmul %11, %7, %cst_26 {dimension_numbers = #tpu.dot_dimension_numbers<[1], [0], [0], [1], [0, 0, 1, 1], [], []>} : vector<2x32xf32>, vector<32x128xf32>, vector<2x128xf32> -> vector<2x128xf32>
    %65 = arith.addf %63, %64 : vector<2x128xf32>
    %66 = vector.extract_strided_slice %65 {offsets = [0, 0], sizes = [2, 32], strides = [1, 1]} : vector<2x128xf32> to vector<2x32xf32>
    %67 = arith.negf %66 : vector<2x32xf32>
    %68 = math.exp %67 : vector<2x32xf32>
    %cst_27 = arith.constant 1.000000e+00 : f32
    %69 = vector.broadcast %cst_27 : f32 to vector<2x32xf32>
    %70 = arith.addf %69, %68 : vector<2x32xf32>
    %71 = arith.divf %69, %70 : vector<2x32xf32>
    %72 = vector.extract_strided_slice %65 {offsets = [0, 32], sizes = [2, 32], strides = [1, 1]} : vector<2x128xf32> to vector<2x32xf32>
    %73 = arith.negf %72 : vector<2x32xf32>
    %74 = math.exp %73 : vector<2x32xf32>
    %cst_28 = arith.constant 1.000000e+00 : f32
    %75 = vector.broadcast %cst_28 : f32 to vector<2x32xf32>
    %76 = arith.addf %75, %74 : vector<2x32xf32>
    %77 = arith.divf %75, %76 : vector<2x32xf32>
    %78 = vector.extract_strided_slice %65 {offsets = [0, 64], sizes = [2, 32], strides = [1, 1]} : vector<2x128xf32> to vector<2x32xf32>
    %79 = math.tanh %78 : vector<2x32xf32>
    %80 = vector.extract_strided_slice %65 {offsets = [0, 96], sizes = [2, 32], strides = [1, 1]} : vector<2x128xf32> to vector<2x32xf32>
    %81 = arith.negf %80 : vector<2x32xf32>
    %82 = math.exp %81 : vector<2x32xf32>
    %cst_29 = arith.constant 1.000000e+00 : f32
    %83 = vector.broadcast %cst_29 : f32 to vector<2x32xf32>
    %84 = arith.addf %83, %82 : vector<2x32xf32>
    %85 = arith.divf %83, %84 : vector<2x32xf32>
    %86 = arith.mulf %77, %12 : vector<2x32xf32>
    %87 = arith.mulf %71, %79 : vector<2x32xf32>
    %88 = arith.addf %86, %87 : vector<2x32xf32>
    %89 = math.tanh %88 : vector<2x32xf32>
    %90 = arith.mulf %85, %89 : vector<2x32xf32>
    %91 = arith.addi %8, %c0_i32_15 : i32
    %c7_i32_30 = arith.constant 7 : i32
    %92 = arith.subi %c7_i32_30, %91 : i32
    %93 = vector.broadcast %92 : i32 to vector<2x1xi32>
    %94 = arith.cmpi slt, %93, %3 : vector<2x1xi32>
    %95 = vector.shape_cast %94 : vector<2x1xi1> to vector<2x1xi1>
    %96 = vector.broadcast %95 : vector<2x1xi1> to vector<2x32xi1>
    %97 = arith.select %96, %90, %11 : vector<2x32xi1>, vector<2x32xf32>
    %98 = vector.shape_cast %94 : vector<2x1xi1> to vector<2x1xi1>
    %99 = vector.broadcast %98 : vector<2x1xi1> to vector<2x32xi1>
    %100 = arith.select %99, %88, %12 : vector<2x32xi1>, vector<2x32xf32>
    %cst_31 = arith.constant 0.000000e+00 : f32
    %101 = vector.shape_cast %94 : vector<2x1xi1> to vector<2x1xi1>
    %102 = vector.broadcast %101 : vector<2x1xi1> to vector<2x32xi1>
    %103 = vector.broadcast %cst_31 : f32 to vector<2x32xf32>
    %104 = arith.select %102, %90, %103 : vector<2x32xi1>, vector<2x32xf32>
    %105 = arith.index_cast %60 : i32 to index
    %c0_32 = arith.constant 0 : index
    %c0_33 = arith.constant 0 : index
    %106 = vector.load %arg6[%105, %c0_32, %c0_33] : memref<8x2x32xf32, #tpu.memory_space<vmem>>, vector<1x2x32xf32>
    %107 = vector.shape_cast %106 : vector<1x2x32xf32> to vector<2x32xf32>
    %108 = vector.shape_cast %104 : vector<2x32xf32> to vector<1x2x32xf32>
    tpu.vector_store %arg6[%105, %c0_32, %c0_33], %108 {strides = array<i32>} : memref<8x2x32xf32, #tpu.memory_space<vmem>>, vector<1x2x32xf32>,
    %c1_i32 = arith.constant 1 : i32
    %109 = arith.index_cast %c1_i32 : i32 to index
    %c0_34 = arith.constant 0 : index
    %c0_35 = arith.constant 0 : index
    %110 = vector.load %arg2[%109, %c0_34, %c0_35] : memref<8x2x128xf32, #tpu.memory_space<vmem>>, vector<1x2x128xf32>
    %111 = vector.shape_cast %110 : vector<1x2x128xf32> to vector<2x128xf32>
    %cst_36 = arith.constant dense<0.000000e+00> : vector<2x128xf32>
    %112 = tpu.matmul %48, %5, %cst_36 {dimension_numbers = #tpu.dot_dimension_numbers<[1], [0], [0], [1], [0, 0, 1, 1], [], []>} : vector<2x32xf32>, vector<32x128xf32>, vector<2x128xf32> -> vector<2x128xf32>
    %113 = arith.addf %111, %112 : vector<2x128xf32>
    %114 = vector.extract_strided_slice %113 {offsets = [0, 0], sizes = [2, 32], strides = [1, 1]} : vector<2x128xf32> to vector<2x32xf32>
    %115 = arith.negf %114 : vector<2x32xf32>
    %116 = math.exp %115 : vector<2x32xf32>
    %cst_37 = arith.constant 1.000000e+00 : f32
    %117 = vector.broadcast %cst_37 : f32 to vector<2x32xf32>
    %118 = arith.addf %117, %116 : vector<2x32xf32>
    %119 = arith.divf %117, %118 : vector<2x32xf32>
    %120 = vector.extract_strided_slice %113 {offsets = [0, 32], sizes = [2, 32], strides = [1, 1]} : vector<2x128xf32> to vector<2x32xf32>
    %121 = arith.negf %120 : vector<2x32xf32>
    %122 = math.exp %121 : vector<2x32xf32>
    %cst_38 = arith.constant 1.000000e+00 : f32
    %123 = vector.broadcast %cst_38 : f32 to vector<2x32xf32>
    %124 = arith.addf %123, %122 : vector<2x32xf32>
    %125 = arith.divf %123, %124 : vector<2x32xf32>
    %126 = vector.extract_strided_slice %113 {offsets = [0, 64], sizes = [2, 32], strides = [1, 1]} : vector<2x128xf32> to vector<2x32xf32>
    %127 = math.tanh %126 : vector<2x32xf32>
    %128 = vector.extract_strided_slice %113 {offsets = [0, 96], sizes = [2, 32], strides = [1, 1]} : vector<2x128xf32> to vector<2x32xf32>
    %129 = arith.negf %128 : vector<2x32xf32>
    %130 = math.exp %129 : vector<2x32xf32>
    %cst_39 = arith.constant 1.000000e+00 : f32
    %131 = vector.broadcast %cst_39 : f32 to vector<2x32xf32>
    %132 = arith.addf %131, %130 : vector<2x32xf32>
    %133 = arith.divf %131, %132 : vector<2x32xf32>
    %134 = arith.mulf %125, %51 : vector<2x32xf32>
    %135 = arith.mulf %119, %127 : vector<2x32xf32>
    %136 = arith.addf %134, %135 : vector<2x32xf32>
    %137 = math.tanh %136 : vector<2x32xf32>
    %138 = arith.mulf %133, %137 : vector<2x32xf32>
    %139 = arith.addi %8, %c1_i32 : i32
    %140 = vector.broadcast %139 : i32 to vector<2x1xi32>
    %141 = arith.cmpi slt, %140, %3 : vector<2x1xi32>
    %142 = vector.shape_cast %141 : vector<2x1xi1> to vector<2x1xi1>
    %143 = vector.broadcast %142 : vector<2x1xi1> to vector<2x32xi1>
    %144 = arith.select %143, %138, %48 : vector<2x32xi1>, vector<2x32xf32>
    %145 = vector.shape_cast %141 : vector<2x1xi1> to vector<2x1xi1>
    %146 = vector.broadcast %145 : vector<2x1xi1> to vector<2x32xi1>
    %147 = arith.select %146, %136, %51 : vector<2x32xi1>, vector<2x32xf32>
    %cst_40 = arith.constant 0.000000e+00 : f32
    %148 = vector.shape_cast %141 : vector<2x1xi1> to vector<2x1xi1>
    %149 = vector.broadcast %148 : vector<2x1xi1> to vector<2x32xi1>
    %150 = vector.broadcast %cst_40 : f32 to vector<2x32xf32>
    %151 = arith.select %149, %138, %150 : vector<2x32xi1>, vector<2x32xf32>
    %152 = arith.index_cast %c1_i32 : i32 to index
    %c0_41 = arith.constant 0 : index
    %c0_42 = arith.constant 0 : index
    %153 = vector.load %arg5[%152, %c0_41, %c0_42] : memref<8x2x32xf32, #tpu.memory_space<vmem>>, vector<1x2x32xf32>
    %154 = vector.shape_cast %153 : vector<1x2x32xf32> to vector<2x32xf32>
    %155 = vector.shape_cast %151 : vector<2x32xf32> to vector<1x2x32xf32>
    tpu.vector_store %arg5[%152, %c0_41, %c0_42], %155 {strides = array<i32>} : memref<8x2x32xf32, #tpu.memory_space<vmem>>, vector<1x2x32xf32>,
    %c7_i32_43 = arith.constant 7 : i32
    %156 = arith.subi %c7_i32_43, %c1_i32 : i32
    %157 = arith.index_cast %156 : i32 to index
    %c0_44 = arith.constant 0 : index
    %c0_45 = arith.constant 0 : index
    %158 = vector.load %arg3[%157, %c0_44, %c0_45] : memref<8x2x128xf32, #tpu.memory_space<vmem>>, vector<1x2x128xf32>
    %159 = vector.shape_cast %158 : vector<1x2x128xf32> to vector<2x128xf32>
    %cst_46 = arith.constant dense<0.000000e+00> : vector<2x128xf32>
    %160 = tpu.matmul %97, %7, %cst_46 {dimension_numbers = #tpu.dot_dimension_numbers<[1], [0], [0], [1], [0, 0, 1, 1], [], []>} : vector<2x32xf32>, vector<32x128xf32>, vector<2x128xf32> -> vector<2x128xf32>
    %161 = arith.addf %159, %160 : vector<2x128xf32>
    %162 = vector.extract_strided_slice %161 {offsets = [0, 0], sizes = [2, 32], strides = [1, 1]} : vector<2x128xf32> to vector<2x32xf32>
    %163 = arith.negf %162 : vector<2x32xf32>
    %164 = math.exp %163 : vector<2x32xf32>
    %cst_47 = arith.constant 1.000000e+00 : f32
    %165 = vector.broadcast %cst_47 : f32 to vector<2x32xf32>
    %166 = arith.addf %165, %164 : vector<2x32xf32>
    %167 = arith.divf %165, %166 : vector<2x32xf32>
    %168 = vector.extract_strided_slice %161 {offsets = [0, 32], sizes = [2, 32], strides = [1, 1]} : vector<2x128xf32> to vector<2x32xf32>
    %169 = arith.negf %168 : vector<2x32xf32>
    %170 = math.exp %169 : vector<2x32xf32>
    %cst_48 = arith.constant 1.000000e+00 : f32
    %171 = vector.broadcast %cst_48 : f32 to vector<2x32xf32>
    %172 = arith.addf %171, %170 : vector<2x32xf32>
    %173 = arith.divf %171, %172 : vector<2x32xf32>
    %174 = vector.extract_strided_slice %161 {offsets = [0, 64], sizes = [2, 32], strides = [1, 1]} : vector<2x128xf32> to vector<2x32xf32>
    %175 = math.tanh %174 : vector<2x32xf32>
    %176 = vector.extract_strided_slice %161 {offsets = [0, 96], sizes = [2, 32], strides = [1, 1]} : vector<2x128xf32> to vector<2x32xf32>
    %177 = arith.negf %176 : vector<2x32xf32>
    %178 = math.exp %177 : vector<2x32xf32>
    %cst_49 = arith.constant 1.000000e+00 : f32
    %179 = vector.broadcast %cst_49 : f32 to vector<2x32xf32>
    %180 = arith.addf %179, %178 : vector<2x32xf32>
    %181 = arith.divf %179, %180 : vector<2x32xf32>
    %182 = arith.mulf %173, %100 : vector<2x32xf32>
    %183 = arith.mulf %167, %175 : vector<2x32xf32>
    %184 = arith.addf %182, %183 : vector<2x32xf32>
    %185 = math.tanh %184 : vector<2x32xf32>
    %186 = arith.mulf %181, %185 : vector<2x32xf32>
    %187 = arith.addi %8, %c1_i32 : i32
    %c7_i32_50 = arith.constant 7 : i32
    %188 = arith.subi %c7_i32_50, %187 : i32
    %189 = vector.broadcast %188 : i32 to vector<2x1xi32>
    %190 = arith.cmpi slt, %189, %3 : vector<2x1xi32>
    %191 = vector.shape_cast %190 : vector<2x1xi1> to vector<2x1xi1>
    %192 = vector.broadcast %191 : vector<2x1xi1> to vector<2x32xi1>
    %193 = arith.select %192, %186, %97 : vector<2x32xi1>, vector<2x32xf32>
    %194 = vector.shape_cast %190 : vector<2x1xi1> to vector<2x1xi1>
    %195 = vector.broadcast %194 : vector<2x1xi1> to vector<2x32xi1>
    %196 = arith.select %195, %184, %100 : vector<2x32xi1>, vector<2x32xf32>
    %cst_51 = arith.constant 0.000000e+00 : f32
    %197 = vector.shape_cast %190 : vector<2x1xi1> to vector<2x1xi1>
    %198 = vector.broadcast %197 : vector<2x1xi1> to vector<2x32xi1>
    %199 = vector.broadcast %cst_51 : f32 to vector<2x32xf32>
    %200 = arith.select %198, %186, %199 : vector<2x32xi1>, vector<2x32xf32>
    %201 = arith.index_cast %156 : i32 to index
    %c0_52 = arith.constant 0 : index
    %c0_53 = arith.constant 0 : index
    %202 = vector.load %arg6[%201, %c0_52, %c0_53] : memref<8x2x32xf32, #tpu.memory_space<vmem>>, vector<1x2x32xf32>
    %203 = vector.shape_cast %202 : vector<1x2x32xf32> to vector<2x32xf32>
    %204 = vector.shape_cast %200 : vector<2x32xf32> to vector<1x2x32xf32>
    tpu.vector_store %arg6[%201, %c0_52, %c0_53], %204 {strides = array<i32>} : memref<8x2x32xf32, #tpu.memory_space<vmem>>, vector<1x2x32xf32>,
    %c2_i32 = arith.constant 2 : i32
    %205 = arith.index_cast %c2_i32 : i32 to index
    %c0_54 = arith.constant 0 : index
    %c0_55 = arith.constant 0 : index
    %206 = vector.load %arg2[%205, %c0_54, %c0_55] : memref<8x2x128xf32, #tpu.memory_space<vmem>>, vector<1x2x128xf32>
    %207 = vector.shape_cast %206 : vector<1x2x128xf32> to vector<2x128xf32>
    %cst_56 = arith.constant dense<0.000000e+00> : vector<2x128xf32>
    %208 = tpu.matmul %144, %5, %cst_56 {dimension_numbers = #tpu.dot_dimension_numbers<[1], [0], [0], [1], [0, 0, 1, 1], [], []>} : vector<2x32xf32>, vector<32x128xf32>, vector<2x128xf32> -> vector<2x128xf32>
    %209 = arith.addf %207, %208 : vector<2x128xf32>
    %210 = vector.extract_strided_slice %209 {offsets = [0, 0], sizes = [2, 32], strides = [1, 1]} : vector<2x128xf32> to vector<2x32xf32>
    %211 = arith.negf %210 : vector<2x32xf32>
    %212 = math.exp %211 : vector<2x32xf32>
    %cst_57 = arith.constant 1.000000e+00 : f32
    %213 = vector.broadcast %cst_57 : f32 to vector<2x32xf32>
    %214 = arith.addf %213, %212 : vector<2x32xf32>
    %215 = arith.divf %213, %214 : vector<2x32xf32>
    %216 = vector.extract_strided_slice %209 {offsets = [0, 32], sizes = [2, 32], strides = [1, 1]} : vector<2x128xf32> to vector<2x32xf32>
    %217 = arith.negf %216 : vector<2x32xf32>
    %218 = math.exp %217 : vector<2x32xf32>
    %cst_58 = arith.constant 1.000000e+00 : f32
    %219 = vector.broadcast %cst_58 : f32 to vector<2x32xf32>
    %220 = arith.addf %219, %218 : vector<2x32xf32>
    %221 = arith.divf %219, %220 : vector<2x32xf32>
    %222 = vector.extract_strided_slice %209 {offsets = [0, 64], sizes = [2, 32], strides = [1, 1]} : vector<2x128xf32> to vector<2x32xf32>
    %223 = math.tanh %222 : vector<2x32xf32>
    %224 = vector.extract_strided_slice %209 {offsets = [0, 96], sizes = [2, 32], strides = [1, 1]} : vector<2x128xf32> to vector<2x32xf32>
    %225 = arith.negf %224 : vector<2x32xf32>
    %226 = math.exp %225 : vector<2x32xf32>
    %cst_59 = arith.constant 1.000000e+00 : f32
    %227 = vector.broadcast %cst_59 : f32 to vector<2x32xf32>
    %228 = arith.addf %227, %226 : vector<2x32xf32>
    %229 = arith.divf %227, %228 : vector<2x32xf32>
    %230 = arith.mulf %221, %147 : vector<2x32xf32>
    %231 = arith.mulf %215, %223 : vector<2x32xf32>
    %232 = arith.addf %230, %231 : vector<2x32xf32>
    %233 = math.tanh %232 : vector<2x32xf32>
    %234 = arith.mulf %229, %233 : vector<2x32xf32>
    %235 = arith.addi %8, %c2_i32 : i32
    %236 = vector.broadcast %235 : i32 to vector<2x1xi32>
    %237 = arith.cmpi slt, %236, %3 : vector<2x1xi32>
    %238 = vector.shape_cast %237 : vector<2x1xi1> to vector<2x1xi1>
    %239 = vector.broadcast %238 : vector<2x1xi1> to vector<2x32xi1>
    %240 = arith.select %239, %234, %144 : vector<2x32xi1>, vector<2x32xf32>
    %241 = vector.shape_cast %237 : vector<2x1xi1> to vector<2x1xi1>
    %242 = vector.broadcast %241 : vector<2x1xi1> to vector<2x32xi1>
    %243 = arith.select %242, %232, %147 : vector<2x32xi1>, vector<2x32xf32>
    %cst_60 = arith.constant 0.000000e+00 : f32
    %244 = vector.shape_cast %237 : vector<2x1xi1> to vector<2x1xi1>
    %245 = vector.broadcast %244 : vector<2x1xi1> to vector<2x32xi1>
    %246 = vector.broadcast %cst_60 : f32 to vector<2x32xf32>
    %247 = arith.select %245, %234, %246 : vector<2x32xi1>, vector<2x32xf32>
    %248 = arith.index_cast %c2_i32 : i32 to index
    %c0_61 = arith.constant 0 : index
    %c0_62 = arith.constant 0 : index
    %249 = vector.load %arg5[%248, %c0_61, %c0_62] : memref<8x2x32xf32, #tpu.memory_space<vmem>>, vector<1x2x32xf32>
    %250 = vector.shape_cast %249 : vector<1x2x32xf32> to vector<2x32xf32>
    %251 = vector.shape_cast %247 : vector<2x32xf32> to vector<1x2x32xf32>
    tpu.vector_store %arg5[%248, %c0_61, %c0_62], %251 {strides = array<i32>} : memref<8x2x32xf32, #tpu.memory_space<vmem>>, vector<1x2x32xf32>,
    %c7_i32_63 = arith.constant 7 : i32
    %252 = arith.subi %c7_i32_63, %c2_i32 : i32
    %253 = arith.index_cast %252 : i32 to index
    %c0_64 = arith.constant 0 : index
    %c0_65 = arith.constant 0 : index
    %254 = vector.load %arg3[%253, %c0_64, %c0_65] : memref<8x2x128xf32, #tpu.memory_space<vmem>>, vector<1x2x128xf32>
    %255 = vector.shape_cast %254 : vector<1x2x128xf32> to vector<2x128xf32>
    %cst_66 = arith.constant dense<0.000000e+00> : vector<2x128xf32>
    %256 = tpu.matmul %193, %7, %cst_66 {dimension_numbers = #tpu.dot_dimension_numbers<[1], [0], [0], [1], [0, 0, 1, 1], [], []>} : vector<2x32xf32>, vector<32x128xf32>, vector<2x128xf32> -> vector<2x128xf32>
    %257 = arith.addf %255, %256 : vector<2x128xf32>
    %258 = vector.extract_strided_slice %257 {offsets = [0, 0], sizes = [2, 32], strides = [1, 1]} : vector<2x128xf32> to vector<2x32xf32>
    %259 = arith.negf %258 : vector<2x32xf32>
    %260 = math.exp %259 : vector<2x32xf32>
    %cst_67 = arith.constant 1.000000e+00 : f32
    %261 = vector.broadcast %cst_67 : f32 to vector<2x32xf32>
    %262 = arith.addf %261, %260 : vector<2x32xf32>
    %263 = arith.divf %261, %262 : vector<2x32xf32>
    %264 = vector.extract_strided_slice %257 {offsets = [0, 32], sizes = [2, 32], strides = [1, 1]} : vector<2x128xf32> to vector<2x32xf32>
    %265 = arith.negf %264 : vector<2x32xf32>
    %266 = math.exp %265 : vector<2x32xf32>
    %cst_68 = arith.constant 1.000000e+00 : f32
    %267 = vector.broadcast %cst_68 : f32 to vector<2x32xf32>
    %268 = arith.addf %267, %266 : vector<2x32xf32>
    %269 = arith.divf %267, %268 : vector<2x32xf32>
    %270 = vector.extract_strided_slice %257 {offsets = [0, 64], sizes = [2, 32], strides = [1, 1]} : vector<2x128xf32> to vector<2x32xf32>
    %271 = math.tanh %270 : vector<2x32xf32>
    %272 = vector.extract_strided_slice %257 {offsets = [0, 96], sizes = [2, 32], strides = [1, 1]} : vector<2x128xf32> to vector<2x32xf32>
    %273 = arith.negf %272 : vector<2x32xf32>
    %274 = math.exp %273 : vector<2x32xf32>
    %cst_69 = arith.constant 1.000000e+00 : f32
    %275 = vector.broadcast %cst_69 : f32 to vector<2x32xf32>
    %276 = arith.addf %275, %274 : vector<2x32xf32>
    %277 = arith.divf %275, %276 : vector<2x32xf32>
    %278 = arith.mulf %269, %196 : vector<2x32xf32>
    %279 = arith.mulf %263, %271 : vector<2x32xf32>
    %280 = arith.addf %278, %279 : vector<2x32xf32>
    %281 = math.tanh %280 : vector<2x32xf32>
    %282 = arith.mulf %277, %281 : vector<2x32xf32>
    %283 = arith.addi %8, %c2_i32 : i32
    %c7_i32_70 = arith.constant 7 : i32
    %284 = arith.subi %c7_i32_70, %283 : i32
    %285 = vector.broadcast %284 : i32 to vector<2x1xi32>
    %286 = arith.cmpi slt, %285, %3 : vector<2x1xi32>
    %287 = vector.shape_cast %286 : vector<2x1xi1> to vector<2x1xi1>
    %288 = vector.broadcast %287 : vector<2x1xi1> to vector<2x32xi1>
    %289 = arith.select %288, %282, %193 : vector<2x32xi1>, vector<2x32xf32>
    %290 = vector.shape_cast %286 : vector<2x1xi1> to vector<2x1xi1>
    %291 = vector.broadcast %290 : vector<2x1xi1> to vector<2x32xi1>
    %292 = arith.select %291, %280, %196 : vector<2x32xi1>, vector<2x32xf32>
    %cst_71 = arith.constant 0.000000e+00 : f32
    %293 = vector.shape_cast %286 : vector<2x1xi1> to vector<2x1xi1>
    %294 = vector.broadcast %293 : vector<2x1xi1> to vector<2x32xi1>
    %295 = vector.broadcast %cst_71 : f32 to vector<2x32xf32>
    %296 = arith.select %294, %282, %295 : vector<2x32xi1>, vector<2x32xf32>
    %297 = arith.index_cast %252 : i32 to index
    %c0_72 = arith.constant 0 : index
    %c0_73 = arith.constant 0 : index
    %298 = vector.load %arg6[%297, %c0_72, %c0_73] : memref<8x2x32xf32, #tpu.memory_space<vmem>>, vector<1x2x32xf32>
    %299 = vector.shape_cast %298 : vector<1x2x32xf32> to vector<2x32xf32>
    %300 = vector.shape_cast %296 : vector<2x32xf32> to vector<1x2x32xf32>
    tpu.vector_store %arg6[%297, %c0_72, %c0_73], %300 {strides = array<i32>} : memref<8x2x32xf32, #tpu.memory_space<vmem>>, vector<1x2x32xf32>,
    %c3_i32 = arith.constant 3 : i32
    %301 = arith.index_cast %c3_i32 : i32 to index
    %c0_74 = arith.constant 0 : index
    %c0_75 = arith.constant 0 : index
    %302 = vector.load %arg2[%301, %c0_74, %c0_75] : memref<8x2x128xf32, #tpu.memory_space<vmem>>, vector<1x2x128xf32>
    %303 = vector.shape_cast %302 : vector<1x2x128xf32> to vector<2x128xf32>
    %cst_76 = arith.constant dense<0.000000e+00> : vector<2x128xf32>
    %304 = tpu.matmul %240, %5, %cst_76 {dimension_numbers = #tpu.dot_dimension_numbers<[1], [0], [0], [1], [0, 0, 1, 1], [], []>} : vector<2x32xf32>, vector<32x128xf32>, vector<2x128xf32> -> vector<2x128xf32>
    %305 = arith.addf %303, %304 : vector<2x128xf32>
    %306 = vector.extract_strided_slice %305 {offsets = [0, 0], sizes = [2, 32], strides = [1, 1]} : vector<2x128xf32> to vector<2x32xf32>
    %307 = arith.negf %306 : vector<2x32xf32>
    %308 = math.exp %307 : vector<2x32xf32>
    %cst_77 = arith.constant 1.000000e+00 : f32
    %309 = vector.broadcast %cst_77 : f32 to vector<2x32xf32>
    %310 = arith.addf %309, %308 : vector<2x32xf32>
    %311 = arith.divf %309, %310 : vector<2x32xf32>
    %312 = vector.extract_strided_slice %305 {offsets = [0, 32], sizes = [2, 32], strides = [1, 1]} : vector<2x128xf32> to vector<2x32xf32>
    %313 = arith.negf %312 : vector<2x32xf32>
    %314 = math.exp %313 : vector<2x32xf32>
    %cst_78 = arith.constant 1.000000e+00 : f32
    %315 = vector.broadcast %cst_78 : f32 to vector<2x32xf32>
    %316 = arith.addf %315, %314 : vector<2x32xf32>
    %317 = arith.divf %315, %316 : vector<2x32xf32>
    %318 = vector.extract_strided_slice %305 {offsets = [0, 64], sizes = [2, 32], strides = [1, 1]} : vector<2x128xf32> to vector<2x32xf32>
    %319 = math.tanh %318 : vector<2x32xf32>
    %320 = vector.extract_strided_slice %305 {offsets = [0, 96], sizes = [2, 32], strides = [1, 1]} : vector<2x128xf32> to vector<2x32xf32>
    %321 = arith.negf %320 : vector<2x32xf32>
    %322 = math.exp %321 : vector<2x32xf32>
    %cst_79 = arith.constant 1.000000e+00 : f32
    %323 = vector.broadcast %cst_79 : f32 to vector<2x32xf32>
    %324 = arith.addf %323, %322 : vector<2x32xf32>
    %325 = arith.divf %323, %324 : vector<2x32xf32>
    %326 = arith.mulf %317, %243 : vector<2x32xf32>
    %327 = arith.mulf %311, %319 : vector<2x32xf32>
    %328 = arith.addf %326, %327 : vector<2x32xf32>
    %329 = math.tanh %328 : vector<2x32xf32>
    %330 = arith.mulf %325, %329 : vector<2x32xf32>
    %331 = arith.addi %8, %c3_i32 : i32
    %332 = vector.broadcast %331 : i32 to vector<2x1xi32>
    %333 = arith.cmpi slt, %332, %3 : vector<2x1xi32>
    %334 = vector.shape_cast %333 : vector<2x1xi1> to vector<2x1xi1>
    %335 = vector.broadcast %334 : vector<2x1xi1> to vector<2x32xi1>
    %336 = arith.select %335, %330, %240 : vector<2x32xi1>, vector<2x32xf32>
    %337 = vector.shape_cast %333 : vector<2x1xi1> to vector<2x1xi1>
    %338 = vector.broadcast %337 : vector<2x1xi1> to vector<2x32xi1>
    %339 = arith.select %338, %328, %243 : vector<2x32xi1>, vector<2x32xf32>
    %cst_80 = arith.constant 0.000000e+00 : f32
    %340 = vector.shape_cast %333 : vector<2x1xi1> to vector<2x1xi1>
    %341 = vector.broadcast %340 : vector<2x1xi1> to vector<2x32xi1>
    %342 = vector.broadcast %cst_80 : f32 to vector<2x32xf32>
    %343 = arith.select %341, %330, %342 : vector<2x32xi1>, vector<2x32xf32>
    %344 = arith.index_cast %c3_i32 : i32 to index
    %c0_81 = arith.constant 0 : index
    %c0_82 = arith.constant 0 : index
    %345 = vector.load %arg5[%344, %c0_81, %c0_82] : memref<8x2x32xf32, #tpu.memory_space<vmem>>, vector<1x2x32xf32>
    %346 = vector.shape_cast %345 : vector<1x2x32xf32> to vector<2x32xf32>
    %347 = vector.shape_cast %343 : vector<2x32xf32> to vector<1x2x32xf32>
    tpu.vector_store %arg5[%344, %c0_81, %c0_82], %347 {strides = array<i32>} : memref<8x2x32xf32, #tpu.memory_space<vmem>>, vector<1x2x32xf32>,
    %c7_i32_83 = arith.constant 7 : i32
    %348 = arith.subi %c7_i32_83, %c3_i32 : i32
    %349 = arith.index_cast %348 : i32 to index
    %c0_84 = arith.constant 0 : index
    %c0_85 = arith.constant 0 : index
    %350 = vector.load %arg3[%349, %c0_84, %c0_85] : memref<8x2x128xf32, #tpu.memory_space<vmem>>, vector<1x2x128xf32>
    %351 = vector.shape_cast %350 : vector<1x2x128xf32> to vector<2x128xf32>
    %cst_86 = arith.constant dense<0.000000e+00> : vector<2x128xf32>
    %352 = tpu.matmul %289, %7, %cst_86 {dimension_numbers = #tpu.dot_dimension_numbers<[1], [0], [0], [1], [0, 0, 1, 1], [], []>} : vector<2x32xf32>, vector<32x128xf32>, vector<2x128xf32> -> vector<2x128xf32>
    %353 = arith.addf %351, %352 : vector<2x128xf32>
    %354 = vector.extract_strided_slice %353 {offsets = [0, 0], sizes = [2, 32], strides = [1, 1]} : vector<2x128xf32> to vector<2x32xf32>
    %355 = arith.negf %354 : vector<2x32xf32>
    %356 = math.exp %355 : vector<2x32xf32>
    %cst_87 = arith.constant 1.000000e+00 : f32
    %357 = vector.broadcast %cst_87 : f32 to vector<2x32xf32>
    %358 = arith.addf %357, %356 : vector<2x32xf32>
    %359 = arith.divf %357, %358 : vector<2x32xf32>
    %360 = vector.extract_strided_slice %353 {offsets = [0, 32], sizes = [2, 32], strides = [1, 1]} : vector<2x128xf32> to vector<2x32xf32>
    %361 = arith.negf %360 : vector<2x32xf32>
    %362 = math.exp %361 : vector<2x32xf32>
    %cst_88 = arith.constant 1.000000e+00 : f32
    %363 = vector.broadcast %cst_88 : f32 to vector<2x32xf32>
    %364 = arith.addf %363, %362 : vector<2x32xf32>
    %365 = arith.divf %363, %364 : vector<2x32xf32>
    %366 = vector.extract_strided_slice %353 {offsets = [0, 64], sizes = [2, 32], strides = [1, 1]} : vector<2x128xf32> to vector<2x32xf32>
    %367 = math.tanh %366 : vector<2x32xf32>
    %368 = vector.extract_strided_slice %353 {offsets = [0, 96], sizes = [2, 32], strides = [1, 1]} : vector<2x128xf32> to vector<2x32xf32>
    %369 = arith.negf %368 : vector<2x32xf32>
    %370 = math.exp %369 : vector<2x32xf32>
    %cst_89 = arith.constant 1.000000e+00 : f32
    %371 = vector.broadcast %cst_89 : f32 to vector<2x32xf32>
    %372 = arith.addf %371, %370 : vector<2x32xf32>
    %373 = arith.divf %371, %372 : vector<2x32xf32>
    %374 = arith.mulf %365, %292 : vector<2x32xf32>
    %375 = arith.mulf %359, %367 : vector<2x32xf32>
    %376 = arith.addf %374, %375 : vector<2x32xf32>
    %377 = math.tanh %376 : vector<2x32xf32>
    %378 = arith.mulf %373, %377 : vector<2x32xf32>
    %379 = arith.addi %8, %c3_i32 : i32
    %c7_i32_90 = arith.constant 7 : i32
    %380 = arith.subi %c7_i32_90, %379 : i32
    %381 = vector.broadcast %380 : i32 to vector<2x1xi32>
    %382 = arith.cmpi slt, %381, %3 : vector<2x1xi32>
    %383 = vector.shape_cast %382 : vector<2x1xi1> to vector<2x1xi1>
    %384 = vector.broadcast %383 : vector<2x1xi1> to vector<2x32xi1>
    %385 = arith.select %384, %378, %289 : vector<2x32xi1>, vector<2x32xf32>
    %386 = vector.shape_cast %382 : vector<2x1xi1> to vector<2x1xi1>
    %387 = vector.broadcast %386 : vector<2x1xi1> to vector<2x32xi1>
    %388 = arith.select %387, %376, %292 : vector<2x32xi1>, vector<2x32xf32>
    %cst_91 = arith.constant 0.000000e+00 : f32
    %389 = vector.shape_cast %382 : vector<2x1xi1> to vector<2x1xi1>
    %390 = vector.broadcast %389 : vector<2x1xi1> to vector<2x32xi1>
    %391 = vector.broadcast %cst_91 : f32 to vector<2x32xf32>
    %392 = arith.select %390, %378, %391 : vector<2x32xi1>, vector<2x32xf32>
    %393 = arith.index_cast %348 : i32 to index
    %c0_92 = arith.constant 0 : index
    %c0_93 = arith.constant 0 : index
    %394 = vector.load %arg6[%393, %c0_92, %c0_93] : memref<8x2x32xf32, #tpu.memory_space<vmem>>, vector<1x2x32xf32>
    %395 = vector.shape_cast %394 : vector<1x2x32xf32> to vector<2x32xf32>
    %396 = vector.shape_cast %392 : vector<2x32xf32> to vector<1x2x32xf32>
    tpu.vector_store %arg6[%393, %c0_92, %c0_93], %396 {strides = array<i32>} : memref<8x2x32xf32, #tpu.memory_space<vmem>>, vector<1x2x32xf32>,
    %c4_i32 = arith.constant 4 : i32
    %397 = arith.index_cast %c4_i32 : i32 to index
    %c0_94 = arith.constant 0 : index
    %c0_95 = arith.constant 0 : index
    %398 = vector.load %arg2[%397, %c0_94, %c0_95] : memref<8x2x128xf32, #tpu.memory_space<vmem>>, vector<1x2x128xf32>
    %399 = vector.shape_cast %398 : vector<1x2x128xf32> to vector<2x128xf32>
    %cst_96 = arith.constant dense<0.000000e+00> : vector<2x128xf32>
    %400 = tpu.matmul %336, %5, %cst_96 {dimension_numbers = #tpu.dot_dimension_numbers<[1], [0], [0], [1], [0, 0, 1, 1], [], []>} : vector<2x32xf32>, vector<32x128xf32>, vector<2x128xf32> -> vector<2x128xf32>
    %401 = arith.addf %399, %400 : vector<2x128xf32>
    %402 = vector.extract_strided_slice %401 {offsets = [0, 0], sizes = [2, 32], strides = [1, 1]} : vector<2x128xf32> to vector<2x32xf32>
    %403 = arith.negf %402 : vector<2x32xf32>
    %404 = math.exp %403 : vector<2x32xf32>
    %cst_97 = arith.constant 1.000000e+00 : f32
    %405 = vector.broadcast %cst_97 : f32 to vector<2x32xf32>
    %406 = arith.addf %405, %404 : vector<2x32xf32>
    %407 = arith.divf %405, %406 : vector<2x32xf32>
    %408 = vector.extract_strided_slice %401 {offsets = [0, 32], sizes = [2, 32], strides = [1, 1]} : vector<2x128xf32> to vector<2x32xf32>
    %409 = arith.negf %408 : vector<2x32xf32>
    %410 = math.exp %409 : vector<2x32xf32>
    %cst_98 = arith.constant 1.000000e+00 : f32
    %411 = vector.broadcast %cst_98 : f32 to vector<2x32xf32>
    %412 = arith.addf %411, %410 : vector<2x32xf32>
    %413 = arith.divf %411, %412 : vector<2x32xf32>
    %414 = vector.extract_strided_slice %401 {offsets = [0, 64], sizes = [2, 32], strides = [1, 1]} : vector<2x128xf32> to vector<2x32xf32>
    %415 = math.tanh %414 : vector<2x32xf32>
    %416 = vector.extract_strided_slice %401 {offsets = [0, 96], sizes = [2, 32], strides = [1, 1]} : vector<2x128xf32> to vector<2x32xf32>
    %417 = arith.negf %416 : vector<2x32xf32>
    %418 = math.exp %417 : vector<2x32xf32>
    %cst_99 = arith.constant 1.000000e+00 : f32
    %419 = vector.broadcast %cst_99 : f32 to vector<2x32xf32>
    %420 = arith.addf %419, %418 : vector<2x32xf32>
    %421 = arith.divf %419, %420 : vector<2x32xf32>
    %422 = arith.mulf %413, %339 : vector<2x32xf32>
    %423 = arith.mulf %407, %415 : vector<2x32xf32>
    %424 = arith.addf %422, %423 : vector<2x32xf32>
    %425 = math.tanh %424 : vector<2x32xf32>
    %426 = arith.mulf %421, %425 : vector<2x32xf32>
    %427 = arith.addi %8, %c4_i32 : i32
    %428 = vector.broadcast %427 : i32 to vector<2x1xi32>
    %429 = arith.cmpi slt, %428, %3 : vector<2x1xi32>
    %430 = vector.shape_cast %429 : vector<2x1xi1> to vector<2x1xi1>
    %431 = vector.broadcast %430 : vector<2x1xi1> to vector<2x32xi1>
    %432 = arith.select %431, %426, %336 : vector<2x32xi1>, vector<2x32xf32>
    %433 = vector.shape_cast %429 : vector<2x1xi1> to vector<2x1xi1>
    %434 = vector.broadcast %433 : vector<2x1xi1> to vector<2x32xi1>
    %435 = arith.select %434, %424, %339 : vector<2x32xi1>, vector<2x32xf32>
    %cst_100 = arith.constant 0.000000e+00 : f32
    %436 = vector.shape_cast %429 : vector<2x1xi1> to vector<2x1xi1>
    %437 = vector.broadcast %436 : vector<2x1xi1> to vector<2x32xi1>
    %438 = vector.broadcast %cst_100 : f32 to vector<2x32xf32>
    %439 = arith.select %437, %426, %438 : vector<2x32xi1>, vector<2x32xf32>
    %440 = arith.index_cast %c4_i32 : i32 to index
    %c0_101 = arith.constant 0 : index
    %c0_102 = arith.constant 0 : index
    %441 = vector.load %arg5[%440, %c0_101, %c0_102] : memref<8x2x32xf32, #tpu.memory_space<vmem>>, vector<1x2x32xf32>
    %442 = vector.shape_cast %441 : vector<1x2x32xf32> to vector<2x32xf32>
    %443 = vector.shape_cast %439 : vector<2x32xf32> to vector<1x2x32xf32>
    tpu.vector_store %arg5[%440, %c0_101, %c0_102], %443 {strides = array<i32>} : memref<8x2x32xf32, #tpu.memory_space<vmem>>, vector<1x2x32xf32>,
    %c7_i32_103 = arith.constant 7 : i32
    %444 = arith.subi %c7_i32_103, %c4_i32 : i32
    %445 = arith.index_cast %444 : i32 to index
    %c0_104 = arith.constant 0 : index
    %c0_105 = arith.constant 0 : index
    %446 = vector.load %arg3[%445, %c0_104, %c0_105] : memref<8x2x128xf32, #tpu.memory_space<vmem>>, vector<1x2x128xf32>
    %447 = vector.shape_cast %446 : vector<1x2x128xf32> to vector<2x128xf32>
    %cst_106 = arith.constant dense<0.000000e+00> : vector<2x128xf32>
    %448 = tpu.matmul %385, %7, %cst_106 {dimension_numbers = #tpu.dot_dimension_numbers<[1], [0], [0], [1], [0, 0, 1, 1], [], []>} : vector<2x32xf32>, vector<32x128xf32>, vector<2x128xf32> -> vector<2x128xf32>
    %449 = arith.addf %447, %448 : vector<2x128xf32>
    %450 = vector.extract_strided_slice %449 {offsets = [0, 0], sizes = [2, 32], strides = [1, 1]} : vector<2x128xf32> to vector<2x32xf32>
    %451 = arith.negf %450 : vector<2x32xf32>
    %452 = math.exp %451 : vector<2x32xf32>
    %cst_107 = arith.constant 1.000000e+00 : f32
    %453 = vector.broadcast %cst_107 : f32 to vector<2x32xf32>
    %454 = arith.addf %453, %452 : vector<2x32xf32>
    %455 = arith.divf %453, %454 : vector<2x32xf32>
    %456 = vector.extract_strided_slice %449 {offsets = [0, 32], sizes = [2, 32], strides = [1, 1]} : vector<2x128xf32> to vector<2x32xf32>
    %457 = arith.negf %456 : vector<2x32xf32>
    %458 = math.exp %457 : vector<2x32xf32>
    %cst_108 = arith.constant 1.000000e+00 : f32
    %459 = vector.broadcast %cst_108 : f32 to vector<2x32xf32>
    %460 = arith.addf %459, %458 : vector<2x32xf32>
    %461 = arith.divf %459, %460 : vector<2x32xf32>
    %462 = vector.extract_strided_slice %449 {offsets = [0, 64], sizes = [2, 32], strides = [1, 1]} : vector<2x128xf32> to vector<2x32xf32>
    %463 = math.tanh %462 : vector<2x32xf32>
    %464 = vector.extract_strided_slice %449 {offsets = [0, 96], sizes = [2, 32], strides = [1, 1]} : vector<2x128xf32> to vector<2x32xf32>
    %465 = arith.negf %464 : vector<2x32xf32>
    %466 = math.exp %465 : vector<2x32xf32>
    %cst_109 = arith.constant 1.000000e+00 : f32
    %467 = vector.broadcast %cst_109 : f32 to vector<2x32xf32>
    %468 = arith.addf %467, %466 : vector<2x32xf32>
    %469 = arith.divf %467, %468 : vector<2x32xf32>
    %470 = arith.mulf %461, %388 : vector<2x32xf32>
    %471 = arith.mulf %455, %463 : vector<2x32xf32>
    %472 = arith.addf %470, %471 : vector<2x32xf32>
    %473 = math.tanh %472 : vector<2x32xf32>
    %474 = arith.mulf %469, %473 : vector<2x32xf32>
    %475 = arith.addi %8, %c4_i32 : i32
    %c7_i32_110 = arith.constant 7 : i32
    %476 = arith.subi %c7_i32_110, %475 : i32
    %477 = vector.broadcast %476 : i32 to vector<2x1xi32>
    %478 = arith.cmpi slt, %477, %3 : vector<2x1xi32>
    %479 = vector.shape_cast %478 : vector<2x1xi1> to vector<2x1xi1>
    %480 = vector.broadcast %479 : vector<2x1xi1> to vector<2x32xi1>
    %481 = arith.select %480, %474, %385 : vector<2x32xi1>, vector<2x32xf32>
    %482 = vector.shape_cast %478 : vector<2x1xi1> to vector<2x1xi1>
    %483 = vector.broadcast %482 : vector<2x1xi1> to vector<2x32xi1>
    %484 = arith.select %483, %472, %388 : vector<2x32xi1>, vector<2x32xf32>
    %cst_111 = arith.constant 0.000000e+00 : f32
    %485 = vector.shape_cast %478 : vector<2x1xi1> to vector<2x1xi1>
    %486 = vector.broadcast %485 : vector<2x1xi1> to vector<2x32xi1>
    %487 = vector.broadcast %cst_111 : f32 to vector<2x32xf32>
    %488 = arith.select %486, %474, %487 : vector<2x32xi1>, vector<2x32xf32>
    %489 = arith.index_cast %444 : i32 to index
    %c0_112 = arith.constant 0 : index
    %c0_113 = arith.constant 0 : index
    %490 = vector.load %arg6[%489, %c0_112, %c0_113] : memref<8x2x32xf32, #tpu.memory_space<vmem>>, vector<1x2x32xf32>
    %491 = vector.shape_cast %490 : vector<1x2x32xf32> to vector<2x32xf32>
    %492 = vector.shape_cast %488 : vector<2x32xf32> to vector<1x2x32xf32>
    tpu.vector_store %arg6[%489, %c0_112, %c0_113], %492 {strides = array<i32>} : memref<8x2x32xf32, #tpu.memory_space<vmem>>, vector<1x2x32xf32>,
    %c5_i32 = arith.constant 5 : i32
    %493 = arith.index_cast %c5_i32 : i32 to index
    %c0_114 = arith.constant 0 : index
    %c0_115 = arith.constant 0 : index
    %494 = vector.load %arg2[%493, %c0_114, %c0_115] : memref<8x2x128xf32, #tpu.memory_space<vmem>>, vector<1x2x128xf32>
    %495 = vector.shape_cast %494 : vector<1x2x128xf32> to vector<2x128xf32>
    %cst_116 = arith.constant dense<0.000000e+00> : vector<2x128xf32>
    %496 = tpu.matmul %432, %5, %cst_116 {dimension_numbers = #tpu.dot_dimension_numbers<[1], [0], [0], [1], [0, 0, 1, 1], [], []>} : vector<2x32xf32>, vector<32x128xf32>, vector<2x128xf32> -> vector<2x128xf32>
    %497 = arith.addf %495, %496 : vector<2x128xf32>
    %498 = vector.extract_strided_slice %497 {offsets = [0, 0], sizes = [2, 32], strides = [1, 1]} : vector<2x128xf32> to vector<2x32xf32>
    %499 = arith.negf %498 : vector<2x32xf32>
    %500 = math.exp %499 : vector<2x32xf32>
    %cst_117 = arith.constant 1.000000e+00 : f32
    %501 = vector.broadcast %cst_117 : f32 to vector<2x32xf32>
    %502 = arith.addf %501, %500 : vector<2x32xf32>
    %503 = arith.divf %501, %502 : vector<2x32xf32>
    %504 = vector.extract_strided_slice %497 {offsets = [0, 32], sizes = [2, 32], strides = [1, 1]} : vector<2x128xf32> to vector<2x32xf32>
    %505 = arith.negf %504 : vector<2x32xf32>
    %506 = math.exp %505 : vector<2x32xf32>
    %cst_118 = arith.constant 1.000000e+00 : f32
    %507 = vector.broadcast %cst_118 : f32 to vector<2x32xf32>
    %508 = arith.addf %507, %506 : vector<2x32xf32>
    %509 = arith.divf %507, %508 : vector<2x32xf32>
    %510 = vector.extract_strided_slice %497 {offsets = [0, 64], sizes = [2, 32], strides = [1, 1]} : vector<2x128xf32> to vector<2x32xf32>
    %511 = math.tanh %510 : vector<2x32xf32>
    %512 = vector.extract_strided_slice %497 {offsets = [0, 96], sizes = [2, 32], strides = [1, 1]} : vector<2x128xf32> to vector<2x32xf32>
    %513 = arith.negf %512 : vector<2x32xf32>
    %514 = math.exp %513 : vector<2x32xf32>
    %cst_119 = arith.constant 1.000000e+00 : f32
    %515 = vector.broadcast %cst_119 : f32 to vector<2x32xf32>
    %516 = arith.addf %515, %514 : vector<2x32xf32>
    %517 = arith.divf %515, %516 : vector<2x32xf32>
    %518 = arith.mulf %509, %435 : vector<2x32xf32>
    %519 = arith.mulf %503, %511 : vector<2x32xf32>
    %520 = arith.addf %518, %519 : vector<2x32xf32>
    %521 = math.tanh %520 : vector<2x32xf32>
    %522 = arith.mulf %517, %521 : vector<2x32xf32>
    %523 = arith.addi %8, %c5_i32 : i32
    %524 = vector.broadcast %523 : i32 to vector<2x1xi32>
    %525 = arith.cmpi slt, %524, %3 : vector<2x1xi32>
    %526 = vector.shape_cast %525 : vector<2x1xi1> to vector<2x1xi1>
    %527 = vector.broadcast %526 : vector<2x1xi1> to vector<2x32xi1>
    %528 = arith.select %527, %522, %432 : vector<2x32xi1>, vector<2x32xf32>
    %529 = vector.shape_cast %525 : vector<2x1xi1> to vector<2x1xi1>
    %530 = vector.broadcast %529 : vector<2x1xi1> to vector<2x32xi1>
    %531 = arith.select %530, %520, %435 : vector<2x32xi1>, vector<2x32xf32>
    %cst_120 = arith.constant 0.000000e+00 : f32
    %532 = vector.shape_cast %525 : vector<2x1xi1> to vector<2x1xi1>
    %533 = vector.broadcast %532 : vector<2x1xi1> to vector<2x32xi1>
    %534 = vector.broadcast %cst_120 : f32 to vector<2x32xf32>
    %535 = arith.select %533, %522, %534 : vector<2x32xi1>, vector<2x32xf32>
    %536 = arith.index_cast %c5_i32 : i32 to index
    %c0_121 = arith.constant 0 : index
    %c0_122 = arith.constant 0 : index
    %537 = vector.load %arg5[%536, %c0_121, %c0_122] : memref<8x2x32xf32, #tpu.memory_space<vmem>>, vector<1x2x32xf32>
    %538 = vector.shape_cast %537 : vector<1x2x32xf32> to vector<2x32xf32>
    %539 = vector.shape_cast %535 : vector<2x32xf32> to vector<1x2x32xf32>
    tpu.vector_store %arg5[%536, %c0_121, %c0_122], %539 {strides = array<i32>} : memref<8x2x32xf32, #tpu.memory_space<vmem>>, vector<1x2x32xf32>,
    %c7_i32_123 = arith.constant 7 : i32
    %540 = arith.subi %c7_i32_123, %c5_i32 : i32
    %541 = arith.index_cast %540 : i32 to index
    %c0_124 = arith.constant 0 : index
    %c0_125 = arith.constant 0 : index
    %542 = vector.load %arg3[%541, %c0_124, %c0_125] : memref<8x2x128xf32, #tpu.memory_space<vmem>>, vector<1x2x128xf32>
    %543 = vector.shape_cast %542 : vector<1x2x128xf32> to vector<2x128xf32>
    %cst_126 = arith.constant dense<0.000000e+00> : vector<2x128xf32>
    %544 = tpu.matmul %481, %7, %cst_126 {dimension_numbers = #tpu.dot_dimension_numbers<[1], [0], [0], [1], [0, 0, 1, 1], [], []>} : vector<2x32xf32>, vector<32x128xf32>, vector<2x128xf32> -> vector<2x128xf32>
    %545 = arith.addf %543, %544 : vector<2x128xf32>
    %546 = vector.extract_strided_slice %545 {offsets = [0, 0], sizes = [2, 32], strides = [1, 1]} : vector<2x128xf32> to vector<2x32xf32>
    %547 = arith.negf %546 : vector<2x32xf32>
    %548 = math.exp %547 : vector<2x32xf32>
    %cst_127 = arith.constant 1.000000e+00 : f32
    %549 = vector.broadcast %cst_127 : f32 to vector<2x32xf32>
    %550 = arith.addf %549, %548 : vector<2x32xf32>
    %551 = arith.divf %549, %550 : vector<2x32xf32>
    %552 = vector.extract_strided_slice %545 {offsets = [0, 32], sizes = [2, 32], strides = [1, 1]} : vector<2x128xf32> to vector<2x32xf32>
    %553 = arith.negf %552 : vector<2x32xf32>
    %554 = math.exp %553 : vector<2x32xf32>
    %cst_128 = arith.constant 1.000000e+00 : f32
    %555 = vector.broadcast %cst_128 : f32 to vector<2x32xf32>
    %556 = arith.addf %555, %554 : vector<2x32xf32>
    %557 = arith.divf %555, %556 : vector<2x32xf32>
    %558 = vector.extract_strided_slice %545 {offsets = [0, 64], sizes = [2, 32], strides = [1, 1]} : vector<2x128xf32> to vector<2x32xf32>
    %559 = math.tanh %558 : vector<2x32xf32>
    %560 = vector.extract_strided_slice %545 {offsets = [0, 96], sizes = [2, 32], strides = [1, 1]} : vector<2x128xf32> to vector<2x32xf32>
    %561 = arith.negf %560 : vector<2x32xf32>
    %562 = math.exp %561 : vector<2x32xf32>
    %cst_129 = arith.constant 1.000000e+00 : f32
    %563 = vector.broadcast %cst_129 : f32 to vector<2x32xf32>
    %564 = arith.addf %563, %562 : vector<2x32xf32>
    %565 = arith.divf %563, %564 : vector<2x32xf32>
    %566 = arith.mulf %557, %484 : vector<2x32xf32>
    %567 = arith.mulf %551, %559 : vector<2x32xf32>
    %568 = arith.addf %566, %567 : vector<2x32xf32>
    %569 = math.tanh %568 : vector<2x32xf32>
    %570 = arith.mulf %565, %569 : vector<2x32xf32>
    %571 = arith.addi %8, %c5_i32 : i32
    %c7_i32_130 = arith.constant 7 : i32
    %572 = arith.subi %c7_i32_130, %571 : i32
    %573 = vector.broadcast %572 : i32 to vector<2x1xi32>
    %574 = arith.cmpi slt, %573, %3 : vector<2x1xi32>
    %575 = vector.shape_cast %574 : vector<2x1xi1> to vector<2x1xi1>
    %576 = vector.broadcast %575 : vector<2x1xi1> to vector<2x32xi1>
    %577 = arith.select %576, %570, %481 : vector<2x32xi1>, vector<2x32xf32>
    %578 = vector.shape_cast %574 : vector<2x1xi1> to vector<2x1xi1>
    %579 = vector.broadcast %578 : vector<2x1xi1> to vector<2x32xi1>
    %580 = arith.select %579, %568, %484 : vector<2x32xi1>, vector<2x32xf32>
    %cst_131 = arith.constant 0.000000e+00 : f32
    %581 = vector.shape_cast %574 : vector<2x1xi1> to vector<2x1xi1>
    %582 = vector.broadcast %581 : vector<2x1xi1> to vector<2x32xi1>
    %583 = vector.broadcast %cst_131 : f32 to vector<2x32xf32>
    %584 = arith.select %582, %570, %583 : vector<2x32xi1>, vector<2x32xf32>
    %585 = arith.index_cast %540 : i32 to index
    %c0_132 = arith.constant 0 : index
    %c0_133 = arith.constant 0 : index
    %586 = vector.load %arg6[%585, %c0_132, %c0_133] : memref<8x2x32xf32, #tpu.memory_space<vmem>>, vector<1x2x32xf32>
    %587 = vector.shape_cast %586 : vector<1x2x32xf32> to vector<2x32xf32>
    %588 = vector.shape_cast %584 : vector<2x32xf32> to vector<1x2x32xf32>
    tpu.vector_store %arg6[%585, %c0_132, %c0_133], %588 {strides = array<i32>} : memref<8x2x32xf32, #tpu.memory_space<vmem>>, vector<1x2x32xf32>,
    %c6_i32 = arith.constant 6 : i32
    %589 = arith.index_cast %c6_i32 : i32 to index
    %c0_134 = arith.constant 0 : index
    %c0_135 = arith.constant 0 : index
    %590 = vector.load %arg2[%589, %c0_134, %c0_135] : memref<8x2x128xf32, #tpu.memory_space<vmem>>, vector<1x2x128xf32>
    %591 = vector.shape_cast %590 : vector<1x2x128xf32> to vector<2x128xf32>
    %cst_136 = arith.constant dense<0.000000e+00> : vector<2x128xf32>
    %592 = tpu.matmul %528, %5, %cst_136 {dimension_numbers = #tpu.dot_dimension_numbers<[1], [0], [0], [1], [0, 0, 1, 1], [], []>} : vector<2x32xf32>, vector<32x128xf32>, vector<2x128xf32> -> vector<2x128xf32>
    %593 = arith.addf %591, %592 : vector<2x128xf32>
    %594 = vector.extract_strided_slice %593 {offsets = [0, 0], sizes = [2, 32], strides = [1, 1]} : vector<2x128xf32> to vector<2x32xf32>
    %595 = arith.negf %594 : vector<2x32xf32>
    %596 = math.exp %595 : vector<2x32xf32>
    %cst_137 = arith.constant 1.000000e+00 : f32
    %597 = vector.broadcast %cst_137 : f32 to vector<2x32xf32>
    %598 = arith.addf %597, %596 : vector<2x32xf32>
    %599 = arith.divf %597, %598 : vector<2x32xf32>
    %600 = vector.extract_strided_slice %593 {offsets = [0, 32], sizes = [2, 32], strides = [1, 1]} : vector<2x128xf32> to vector<2x32xf32>
    %601 = arith.negf %600 : vector<2x32xf32>
    %602 = math.exp %601 : vector<2x32xf32>
    %cst_138 = arith.constant 1.000000e+00 : f32
    %603 = vector.broadcast %cst_138 : f32 to vector<2x32xf32>
    %604 = arith.addf %603, %602 : vector<2x32xf32>
    %605 = arith.divf %603, %604 : vector<2x32xf32>
    %606 = vector.extract_strided_slice %593 {offsets = [0, 64], sizes = [2, 32], strides = [1, 1]} : vector<2x128xf32> to vector<2x32xf32>
    %607 = math.tanh %606 : vector<2x32xf32>
    %608 = vector.extract_strided_slice %593 {offsets = [0, 96], sizes = [2, 32], strides = [1, 1]} : vector<2x128xf32> to vector<2x32xf32>
    %609 = arith.negf %608 : vector<2x32xf32>
    %610 = math.exp %609 : vector<2x32xf32>
    %cst_139 = arith.constant 1.000000e+00 : f32
    %611 = vector.broadcast %cst_139 : f32 to vector<2x32xf32>
    %612 = arith.addf %611, %610 : vector<2x32xf32>
    %613 = arith.divf %611, %612 : vector<2x32xf32>
    %614 = arith.mulf %605, %531 : vector<2x32xf32>
    %615 = arith.mulf %599, %607 : vector<2x32xf32>
    %616 = arith.addf %614, %615 : vector<2x32xf32>
    %617 = math.tanh %616 : vector<2x32xf32>
    %618 = arith.mulf %613, %617 : vector<2x32xf32>
    %619 = arith.addi %8, %c6_i32 : i32
    %620 = vector.broadcast %619 : i32 to vector<2x1xi32>
    %621 = arith.cmpi slt, %620, %3 : vector<2x1xi32>
    %622 = vector.shape_cast %621 : vector<2x1xi1> to vector<2x1xi1>
    %623 = vector.broadcast %622 : vector<2x1xi1> to vector<2x32xi1>
    %624 = arith.select %623, %618, %528 : vector<2x32xi1>, vector<2x32xf32>
    %625 = vector.shape_cast %621 : vector<2x1xi1> to vector<2x1xi1>
    %626 = vector.broadcast %625 : vector<2x1xi1> to vector<2x32xi1>
    %627 = arith.select %626, %616, %531 : vector<2x32xi1>, vector<2x32xf32>
    %cst_140 = arith.constant 0.000000e+00 : f32
    %628 = vector.shape_cast %621 : vector<2x1xi1> to vector<2x1xi1>
    %629 = vector.broadcast %628 : vector<2x1xi1> to vector<2x32xi1>
    %630 = vector.broadcast %cst_140 : f32 to vector<2x32xf32>
    %631 = arith.select %629, %618, %630 : vector<2x32xi1>, vector<2x32xf32>
    %632 = arith.index_cast %c6_i32 : i32 to index
    %c0_141 = arith.constant 0 : index
    %c0_142 = arith.constant 0 : index
    %633 = vector.load %arg5[%632, %c0_141, %c0_142] : memref<8x2x32xf32, #tpu.memory_space<vmem>>, vector<1x2x32xf32>
    %634 = vector.shape_cast %633 : vector<1x2x32xf32> to vector<2x32xf32>
    %635 = vector.shape_cast %631 : vector<2x32xf32> to vector<1x2x32xf32>
    tpu.vector_store %arg5[%632, %c0_141, %c0_142], %635 {strides = array<i32>} : memref<8x2x32xf32, #tpu.memory_space<vmem>>, vector<1x2x32xf32>,
    %c7_i32_143 = arith.constant 7 : i32
    %636 = arith.subi %c7_i32_143, %c6_i32 : i32
    %637 = arith.index_cast %636 : i32 to index
    %c0_144 = arith.constant 0 : index
    %c0_145 = arith.constant 0 : index
    %638 = vector.load %arg3[%637, %c0_144, %c0_145] : memref<8x2x128xf32, #tpu.memory_space<vmem>>, vector<1x2x128xf32>
    %639 = vector.shape_cast %638 : vector<1x2x128xf32> to vector<2x128xf32>
    %cst_146 = arith.constant dense<0.000000e+00> : vector<2x128xf32>
    %640 = tpu.matmul %577, %7, %cst_146 {dimension_numbers = #tpu.dot_dimension_numbers<[1], [0], [0], [1], [0, 0, 1, 1], [], []>} : vector<2x32xf32>, vector<32x128xf32>, vector<2x128xf32> -> vector<2x128xf32>
    %641 = arith.addf %639, %640 : vector<2x128xf32>
    %642 = vector.extract_strided_slice %641 {offsets = [0, 0], sizes = [2, 32], strides = [1, 1]} : vector<2x128xf32> to vector<2x32xf32>
    %643 = arith.negf %642 : vector<2x32xf32>
    %644 = math.exp %643 : vector<2x32xf32>
    %cst_147 = arith.constant 1.000000e+00 : f32
    %645 = vector.broadcast %cst_147 : f32 to vector<2x32xf32>
    %646 = arith.addf %645, %644 : vector<2x32xf32>
    %647 = arith.divf %645, %646 : vector<2x32xf32>
    %648 = vector.extract_strided_slice %641 {offsets = [0, 32], sizes = [2, 32], strides = [1, 1]} : vector<2x128xf32> to vector<2x32xf32>
    %649 = arith.negf %648 : vector<2x32xf32>
    %650 = math.exp %649 : vector<2x32xf32>
    %cst_148 = arith.constant 1.000000e+00 : f32
    %651 = vector.broadcast %cst_148 : f32 to vector<2x32xf32>
    %652 = arith.addf %651, %650 : vector<2x32xf32>
    %653 = arith.divf %651, %652 : vector<2x32xf32>
    %654 = vector.extract_strided_slice %641 {offsets = [0, 64], sizes = [2, 32], strides = [1, 1]} : vector<2x128xf32> to vector<2x32xf32>
    %655 = math.tanh %654 : vector<2x32xf32>
    %656 = vector.extract_strided_slice %641 {offsets = [0, 96], sizes = [2, 32], strides = [1, 1]} : vector<2x128xf32> to vector<2x32xf32>
    %657 = arith.negf %656 : vector<2x32xf32>
    %658 = math.exp %657 : vector<2x32xf32>
    %cst_149 = arith.constant 1.000000e+00 : f32
    %659 = vector.broadcast %cst_149 : f32 to vector<2x32xf32>
    %660 = arith.addf %659, %658 : vector<2x32xf32>
    %661 = arith.divf %659, %660 : vector<2x32xf32>
    %662 = arith.mulf %653, %580 : vector<2x32xf32>
    %663 = arith.mulf %647, %655 : vector<2x32xf32>
    %664 = arith.addf %662, %663 : vector<2x32xf32>
    %665 = math.tanh %664 : vector<2x32xf32>
    %666 = arith.mulf %661, %665 : vector<2x32xf32>
    %667 = arith.addi %8, %c6_i32 : i32
    %c7_i32_150 = arith.constant 7 : i32
    %668 = arith.subi %c7_i32_150, %667 : i32
    %669 = vector.broadcast %668 : i32 to vector<2x1xi32>
    %670 = arith.cmpi slt, %669, %3 : vector<2x1xi32>
    %671 = vector.shape_cast %670 : vector<2x1xi1> to vector<2x1xi1>
    %672 = vector.broadcast %671 : vector<2x1xi1> to vector<2x32xi1>
    %673 = arith.select %672, %666, %577 : vector<2x32xi1>, vector<2x32xf32>
    %674 = vector.shape_cast %670 : vector<2x1xi1> to vector<2x1xi1>
    %675 = vector.broadcast %674 : vector<2x1xi1> to vector<2x32xi1>
    %676 = arith.select %675, %664, %580 : vector<2x32xi1>, vector<2x32xf32>
    %cst_151 = arith.constant 0.000000e+00 : f32
    %677 = vector.shape_cast %670 : vector<2x1xi1> to vector<2x1xi1>
    %678 = vector.broadcast %677 : vector<2x1xi1> to vector<2x32xi1>
    %679 = vector.broadcast %cst_151 : f32 to vector<2x32xf32>
    %680 = arith.select %678, %666, %679 : vector<2x32xi1>, vector<2x32xf32>
    %681 = arith.index_cast %636 : i32 to index
    %c0_152 = arith.constant 0 : index
    %c0_153 = arith.constant 0 : index
    %682 = vector.load %arg6[%681, %c0_152, %c0_153] : memref<8x2x32xf32, #tpu.memory_space<vmem>>, vector<1x2x32xf32>
    %683 = vector.shape_cast %682 : vector<1x2x32xf32> to vector<2x32xf32>
    %684 = vector.shape_cast %680 : vector<2x32xf32> to vector<1x2x32xf32>
    tpu.vector_store %arg6[%681, %c0_152, %c0_153], %684 {strides = array<i32>} : memref<8x2x32xf32, #tpu.memory_space<vmem>>, vector<1x2x32xf32>,
    %c7_i32_154 = arith.constant 7 : i32
    %685 = arith.index_cast %c7_i32_154 : i32 to index
    %c0_155 = arith.constant 0 : index
    %c0_156 = arith.constant 0 : index
    %686 = vector.load %arg2[%685, %c0_155, %c0_156] : memref<8x2x128xf32, #tpu.memory_space<vmem>>, vector<1x2x128xf32>
    %687 = vector.shape_cast %686 : vector<1x2x128xf32> to vector<2x128xf32>
    %cst_157 = arith.constant dense<0.000000e+00> : vector<2x128xf32>
    %688 = tpu.matmul %624, %5, %cst_157 {dimension_numbers = #tpu.dot_dimension_numbers<[1], [0], [0], [1], [0, 0, 1, 1], [], []>} : vector<2x32xf32>, vector<32x128xf32>, vector<2x128xf32> -> vector<2x128xf32>
    %689 = arith.addf %687, %688 : vector<2x128xf32>
    %690 = vector.extract_strided_slice %689 {offsets = [0, 0], sizes = [2, 32], strides = [1, 1]} : vector<2x128xf32> to vector<2x32xf32>
    %691 = arith.negf %690 : vector<2x32xf32>
    %692 = math.exp %691 : vector<2x32xf32>
    %cst_158 = arith.constant 1.000000e+00 : f32
    %693 = vector.broadcast %cst_158 : f32 to vector<2x32xf32>
    %694 = arith.addf %693, %692 : vector<2x32xf32>
    %695 = arith.divf %693, %694 : vector<2x32xf32>
    %696 = vector.extract_strided_slice %689 {offsets = [0, 32], sizes = [2, 32], strides = [1, 1]} : vector<2x128xf32> to vector<2x32xf32>
    %697 = arith.negf %696 : vector<2x32xf32>
    %698 = math.exp %697 : vector<2x32xf32>
    %cst_159 = arith.constant 1.000000e+00 : f32
    %699 = vector.broadcast %cst_159 : f32 to vector<2x32xf32>
    %700 = arith.addf %699, %698 : vector<2x32xf32>
    %701 = arith.divf %699, %700 : vector<2x32xf32>
    %702 = vector.extract_strided_slice %689 {offsets = [0, 64], sizes = [2, 32], strides = [1, 1]} : vector<2x128xf32> to vector<2x32xf32>
    %703 = math.tanh %702 : vector<2x32xf32>
    %704 = vector.extract_strided_slice %689 {offsets = [0, 96], sizes = [2, 32], strides = [1, 1]} : vector<2x128xf32> to vector<2x32xf32>
    %705 = arith.negf %704 : vector<2x32xf32>
    %706 = math.exp %705 : vector<2x32xf32>
    %cst_160 = arith.constant 1.000000e+00 : f32
    %707 = vector.broadcast %cst_160 : f32 to vector<2x32xf32>
    %708 = arith.addf %707, %706 : vector<2x32xf32>
    %709 = arith.divf %707, %708 : vector<2x32xf32>
    %710 = arith.mulf %701, %627 : vector<2x32xf32>
    %711 = arith.mulf %695, %703 : vector<2x32xf32>
    %712 = arith.addf %710, %711 : vector<2x32xf32>
    %713 = math.tanh %712 : vector<2x32xf32>
    %714 = arith.mulf %709, %713 : vector<2x32xf32>
    %715 = arith.addi %8, %c7_i32_154 : i32
    %716 = vector.broadcast %715 : i32 to vector<2x1xi32>
    %717 = arith.cmpi slt, %716, %3 : vector<2x1xi32>
    %718 = vector.shape_cast %717 : vector<2x1xi1> to vector<2x1xi1>
    %719 = vector.broadcast %718 : vector<2x1xi1> to vector<2x32xi1>
    %720 = arith.select %719, %714, %624 : vector<2x32xi1>, vector<2x32xf32>
    %721 = vector.shape_cast %717 : vector<2x1xi1> to vector<2x1xi1>
    %722 = vector.broadcast %721 : vector<2x1xi1> to vector<2x32xi1>
    %723 = arith.select %722, %712, %627 : vector<2x32xi1>, vector<2x32xf32>
    %cst_161 = arith.constant 0.000000e+00 : f32
    %724 = vector.shape_cast %717 : vector<2x1xi1> to vector<2x1xi1>
    %725 = vector.broadcast %724 : vector<2x1xi1> to vector<2x32xi1>
    %726 = vector.broadcast %cst_161 : f32 to vector<2x32xf32>
    %727 = arith.select %725, %714, %726 : vector<2x32xi1>, vector<2x32xf32>
    %728 = arith.index_cast %c7_i32_154 : i32 to index
    %c0_162 = arith.constant 0 : index
    %c0_163 = arith.constant 0 : index
    %729 = vector.load %arg5[%728, %c0_162, %c0_163] : memref<8x2x32xf32, #tpu.memory_space<vmem>>, vector<1x2x32xf32>
    %730 = vector.shape_cast %729 : vector<1x2x32xf32> to vector<2x32xf32>
    %731 = vector.shape_cast %727 : vector<2x32xf32> to vector<1x2x32xf32>
    tpu.vector_store %arg5[%728, %c0_162, %c0_163], %731 {strides = array<i32>} : memref<8x2x32xf32, #tpu.memory_space<vmem>>, vector<1x2x32xf32>,
    %c7_i32_164 = arith.constant 7 : i32
    %732 = arith.subi %c7_i32_164, %c7_i32_154 : i32
    %733 = arith.index_cast %732 : i32 to index
    %c0_165 = arith.constant 0 : index
    %c0_166 = arith.constant 0 : index
    %734 = vector.load %arg3[%733, %c0_165, %c0_166] : memref<8x2x128xf32, #tpu.memory_space<vmem>>, vector<1x2x128xf32>
    %735 = vector.shape_cast %734 : vector<1x2x128xf32> to vector<2x128xf32>
    %cst_167 = arith.constant dense<0.000000e+00> : vector<2x128xf32>
    %736 = tpu.matmul %673, %7, %cst_167 {dimension_numbers = #tpu.dot_dimension_numbers<[1], [0], [0], [1], [0, 0, 1, 1], [], []>} : vector<2x32xf32>, vector<32x128xf32>, vector<2x128xf32> -> vector<2x128xf32>
    %737 = arith.addf %735, %736 : vector<2x128xf32>
    %738 = vector.extract_strided_slice %737 {offsets = [0, 0], sizes = [2, 32], strides = [1, 1]} : vector<2x128xf32> to vector<2x32xf32>
    %739 = arith.negf %738 : vector<2x32xf32>
    %740 = math.exp %739 : vector<2x32xf32>
    %cst_168 = arith.constant 1.000000e+00 : f32
    %741 = vector.broadcast %cst_168 : f32 to vector<2x32xf32>
    %742 = arith.addf %741, %740 : vector<2x32xf32>
    %743 = arith.divf %741, %742 : vector<2x32xf32>
    %744 = vector.extract_strided_slice %737 {offsets = [0, 32], sizes = [2, 32], strides = [1, 1]} : vector<2x128xf32> to vector<2x32xf32>
    %745 = arith.negf %744 : vector<2x32xf32>
    %746 = math.exp %745 : vector<2x32xf32>
    %cst_169 = arith.constant 1.000000e+00 : f32
    %747 = vector.broadcast %cst_169 : f32 to vector<2x32xf32>
    %748 = arith.addf %747, %746 : vector<2x32xf32>
    %749 = arith.divf %747, %748 : vector<2x32xf32>
    %750 = vector.extract_strided_slice %737 {offsets = [0, 64], sizes = [2, 32], strides = [1, 1]} : vector<2x128xf32> to vector<2x32xf32>
    %751 = math.tanh %750 : vector<2x32xf32>
    %752 = vector.extract_strided_slice %737 {offsets = [0, 96], sizes = [2, 32], strides = [1, 1]} : vector<2x128xf32> to vector<2x32xf32>
    %753 = arith.negf %752 : vector<2x32xf32>
    %754 = math.exp %753 : vector<2x32xf32>
    %cst_170 = arith.constant 1.000000e+00 : f32
    %755 = vector.broadcast %cst_170 : f32 to vector<2x32xf32>
    %756 = arith.addf %755, %754 : vector<2x32xf32>
    %757 = arith.divf %755, %756 : vector<2x32xf32>
    %758 = arith.mulf %749, %676 : vector<2x32xf32>
    %759 = arith.mulf %743, %751 : vector<2x32xf32>
    %760 = arith.addf %758, %759 : vector<2x32xf32>
    %761 = math.tanh %760 : vector<2x32xf32>
    %762 = arith.mulf %757, %761 : vector<2x32xf32>
    %763 = arith.addi %8, %c7_i32_154 : i32
    %c7_i32_171 = arith.constant 7 : i32
    %764 = arith.subi %c7_i32_171, %763 : i32
    %765 = vector.broadcast %764 : i32 to vector<2x1xi32>
    %766 = arith.cmpi slt, %765, %3 : vector<2x1xi32>
    %767 = vector.shape_cast %766 : vector<2x1xi1> to vector<2x1xi1>
    %768 = vector.broadcast %767 : vector<2x1xi1> to vector<2x32xi1>
    %769 = arith.select %768, %762, %673 : vector<2x32xi1>, vector<2x32xf32>
    %770 = vector.shape_cast %766 : vector<2x1xi1> to vector<2x1xi1>
    %771 = vector.broadcast %770 : vector<2x1xi1> to vector<2x32xi1>
    %772 = arith.select %771, %760, %676 : vector<2x32xi1>, vector<2x32xf32>
    %cst_172 = arith.constant 0.000000e+00 : f32
    %773 = vector.shape_cast %766 : vector<2x1xi1> to vector<2x1xi1>
    %774 = vector.broadcast %773 : vector<2x1xi1> to vector<2x32xi1>
    %775 = vector.broadcast %cst_172 : f32 to vector<2x32xf32>
    %776 = arith.select %774, %762, %775 : vector<2x32xi1>, vector<2x32xf32>
    %777 = arith.index_cast %732 : i32 to index
    %c0_173 = arith.constant 0 : index
    %c0_174 = arith.constant 0 : index
    %778 = vector.load %arg6[%777, %c0_173, %c0_174] : memref<8x2x32xf32, #tpu.memory_space<vmem>>, vector<1x2x32xf32>
    %779 = vector.shape_cast %778 : vector<1x2x32xf32> to vector<2x32xf32>
    %780 = vector.shape_cast %776 : vector<2x32xf32> to vector<1x2x32xf32>
    tpu.vector_store %arg6[%777, %c0_173, %c0_174], %780 {strides = array<i32>} : memref<8x2x32xf32, #tpu.memory_space<vmem>>, vector<1x2x32xf32>,
    %c8_i32_175 = arith.constant 8 : i32
    %c0_176 = arith.constant 0 : index
    %c0_177 = arith.constant 0 : index
    %781 = vector.load %arg7[%c0_176, %c0_177] : memref<2x32xf32, #tpu.memory_space<vmem>>, vector<2x32xf32>
    tpu.vector_store %arg7[%c0_176, %c0_177], %720 {strides = array<i32>} : memref<2x32xf32, #tpu.memory_space<vmem>>, vector<2x32xf32>,
    %c0_178 = arith.constant 0 : index
    %c0_179 = arith.constant 0 : index
    %782 = vector.load %arg8[%c0_178, %c0_179] : memref<2x32xf32, #tpu.memory_space<vmem>>, vector<2x32xf32>
    tpu.vector_store %arg8[%c0_178, %c0_179], %723 {strides = array<i32>} : memref<2x32xf32, #tpu.memory_space<vmem>>, vector<2x32xf32>,
    %c0_180 = arith.constant 0 : index
    %c0_181 = arith.constant 0 : index
    %783 = vector.load %arg9[%c0_180, %c0_181] : memref<2x32xf32, #tpu.memory_space<vmem>>, vector<2x32xf32>
    tpu.vector_store %arg9[%c0_180, %c0_181], %769 {strides = array<i32>} : memref<2x32xf32, #tpu.memory_space<vmem>>, vector<2x32xf32>,
    %c0_182 = arith.constant 0 : index
    %c0_183 = arith.constant 0 : index
    %784 = vector.load %arg10[%c0_182, %c0_183] : memref<2x32xf32, #tpu.memory_space<vmem>>, vector<2x32xf32>
    tpu.vector_store %arg10[%c0_182, %c0_183], %772 {strides = array<i32>} : memref<2x32xf32, #tpu.memory_space<vmem>>, vector<2x32xf32>,
    return
  }
  func.func @transform_0(%arg0: i32) -> (i32, i32) {
    %c0_i32 = arith.constant 0 : i32
    %c0_i32_0 = arith.constant 0 : i32
    %c0_i32_1 = arith.constant 0 : i32
    return %c0_i32, %c0_i32_0 : i32, i32
  }
  func.func @transform_1(%arg0: i32) -> (i32, i32, i32) {
    %c0_i32 = arith.constant 0 : i32
    %c0_i32_0 = arith.constant 0 : i32
    %c0_i32_1 = arith.constant 0 : i32
    return %arg0, %c0_i32, %c0_i32_0 : i32, i32, i32
  }
  func.func @transform_2(%arg0: i32) -> (i32, i32, i32) {
    %c0_i32 = arith.constant 0 : i32
    %0 = arith.subi %c0_i32, %arg0 : i32
    %c0_i32_0 = arith.constant 0 : i32
    %c1_i32 = arith.constant 1 : i32
    %c0_i32_1 = arith.constant 0 : i32
    return %0, %c0_i32_0, %c1_i32 : i32, i32, i32
  }
  func.func @transform_3(%arg0: i32) -> (i32, i32, i32) {
    %c0_i32 = arith.constant 0 : i32
    %c0_i32_0 = arith.constant 0 : i32
    %c0_i32_1 = arith.constant 0 : i32
    %c0_i32_2 = arith.constant 0 : i32
    return %c0_i32, %c0_i32_0, %c0_i32_1 : i32, i32, i32
  }
  func.func @transform_4(%arg0: i32) -> (i32, i32, i32) {
    %c0_i32 = arith.constant 0 : i32
    %c0_i32_0 = arith.constant 0 : i32
    %c0_i32_1 = arith.constant 0 : i32
    return %arg0, %c0_i32, %c0_i32_0 : i32, i32, i32
  }
  func.func @transform_5(%arg0: i32) -> (i32, i32, i32) {
    %c0_i32 = arith.constant 0 : i32
    %0 = arith.subi %c0_i32, %arg0 : i32
    %c0_i32_0 = arith.constant 0 : i32
    %c0_i32_1 = arith.constant 0 : i32
    %c0_i32_2 = arith.constant 0 : i32
    return %0, %c0_i32_0, %c0_i32_1 : i32, i32, i32
  }
}

module attributes {stable_mosaic.version = 11 : i64} {
  func.func @_bilstm_chunk_kernel(%arg0: i32, %arg1: memref<2x1xi32, #tpu.memory_space<vmem>>, %arg2: memref<8x2x128xf32, #tpu.memory_space<vmem>>, %arg3: memref<8x2x128xf32, #tpu.memory_space<vmem>>, %arg4: memref<2x32x128xf32, #tpu.memory_space<vmem>>, %arg5: memref<8x2x32xf32, #tpu.memory_space<vmem>>, %arg6: memref<8x2x32xf32, #tpu.memory_space<vmem>>, %arg7: memref<2x32xf32, #tpu.memory_space<vmem>>, %arg8: memref<2x32xf32, #tpu.memory_space<vmem>>, %arg9: memref<2x32xf32, #tpu.memory_space<vmem>>, %arg10: memref<2x32xf32, #tpu.memory_space<vmem>>) attributes {dimension_semantics = [#tpu.dimension_semantics<arbitrary>], iteration_bounds = array<i64: 1>, scalar_prefetch = 0 : i64, scratch_operands = 4 : i64, tpu.core_type = #tpu.core_type<tc>, window_params = [{pipeline_mode = #tpu.pipeline_mode<synchronous>, transform_indices = @transform_0, window_bounds = array<i64: 2, 1>}, {transform_indices = @transform_1, window_bounds = array<i64: 8, 2, 128>}, {transform_indices = @transform_2, window_bounds = array<i64: 8, 2, 128>}, {pipeline_mode = #tpu.pipeline_mode<synchronous>, transform_indices = @transform_3, window_bounds = array<i64: 2, 32, 128>}, {transform_indices = @transform_4, window_bounds = array<i64: 8, 2, 32>}, {transform_indices = @transform_5, window_bounds = array<i64: 8, 2, 32>}]} {
    %c0_i32 = arith.constant 0 : i32
    %0 = arith.cmpi eq, %arg0, %c0_i32 : i32
    %1 = arith.extui %0 : i1 to i32
    %c0_i32_0 = arith.constant 0 : i32
    %2 = arith.cmpi ne, %1, %c0_i32_0 : i32
    scf.if %2 {
      %cst_184 = arith.constant 0.000000e+00 : f32
      %785 = vector.broadcast %cst_184 : f32 to vector<2x32xf32>
      %c0_185 = arith.constant 0 : index
      %c0_186 = arith.constant 0 : index
      %786 = vector.load %arg7[%c0_185, %c0_186] : memref<2x32xf32, #tpu.memory_space<vmem>>, vector<2x32xf32>
      tpu.vector_store %arg7[%c0_185, %c0_186], %785 {strides = array<i32>} : memref<2x32xf32, #tpu.memory_space<vmem>>, vector<2x32xf32>,
      %cst_187 = arith.constant 0.000000e+00 : f32
      %787 = vector.broadcast %cst_187 : f32 to vector<2x32xf32>
      %c0_188 = arith.constant 0 : index
      %c0_189 = arith.constant 0 : index
      %788 = vector.load %arg8[%c0_188, %c0_189] : memref<2x32xf32, #tpu.memory_space<vmem>>, vector<2x32xf32>
      tpu.vector_store %arg8[%c0_188, %c0_189], %787 {strides = array<i32>} : memref<2x32xf32, #tpu.memory_space<vmem>>, vector<2x32xf32>,
      %cst_190 = arith.constant 0.000000e+00 : f32
      %789 = vector.broadcast %cst_190 : f32 to vector<2x32xf32>
      %c0_191 = arith.constant 0 : index
      %c0_192 = arith.constant 0 : index
      %790 = vector.load %arg9[%c0_191, %c0_192] : memref<2x32xf32, #tpu.memory_space<vmem>>, vector<2x32xf32>
      tpu.vector_store %arg9[%c0_191, %c0_192], %789 {strides = array<i32>} : memref<2x32xf32, #tpu.memory_space<vmem>>, vector<2x32xf32>,
      %cst_193 = arith.constant 0.000000e+00 : f32
      %791 = vector.broadcast %cst_193 : f32 to vector<2x32xf32>
      %c0_194 = arith.constant 0 : index
      %c0_195 = arith.constant 0 : index
      %792 = vector.load %arg10[%c0_194, %c0_195] : memref<2x32xf32, #tpu.memory_space<vmem>>, vector<2x32xf32>
      tpu.vector_store %arg10[%c0_194, %c0_195], %791 {strides = array<i32>} : memref<2x32xf32, #tpu.memory_space<vmem>>, vector<2x32xf32>,
    } else {
    }
    %c0 = arith.constant 0 : index
    %c0_1 = arith.constant 0 : index
    %3 = vector.load %arg1[%c0, %c0_1] : memref<2x1xi32, #tpu.memory_space<vmem>>, vector<2x1xi32>
    %c0_2 = arith.constant 0 : index
    %c0_3 = arith.constant 0 : index
    %c0_4 = arith.constant 0 : index
    %4 = vector.load %arg4[%c0_2, %c0_3, %c0_4] : memref<2x32x128xf32, #tpu.memory_space<vmem>>, vector<1x32x128xf32>
    %5 = vector.shape_cast %4 : vector<1x32x128xf32> to vector<32x128xf32>
    %c1 = arith.constant 1 : index
    %c0_5 = arith.constant 0 : index
    %c0_6 = arith.constant 0 : index
    %6 = vector.load %arg4[%c1, %c0_5, %c0_6] : memref<2x32x128xf32, #tpu.memory_space<vmem>>, vector<1x32x128xf32>
    %7 = vector.shape_cast %6 : vector<1x32x128xf32> to vector<32x128xf32>
    %c8_i32 = arith.constant 8 : i32
    %8 = arith.muli %arg0, %c8_i32 : i32
    %c0_7 = arith.constant 0 : index
    %c0_8 = arith.constant 0 : index
    %9 = vector.load %arg7[%c0_7, %c0_8] : memref<2x32xf32, #tpu.memory_space<vmem>>, vector<2x32xf32>
    %c0_9 = arith.constant 0 : index
    %c0_10 = arith.constant 0 : index
    %10 = vector.load %arg8[%c0_9, %c0_10] : memref<2x32xf32, #tpu.memory_space<vmem>>, vector<2x32xf32>
    %c0_11 = arith.constant 0 : index
    %c0_12 = arith.constant 0 : index
    %11 = vector.load %arg9[%c0_11, %c0_12] : memref<2x32xf32, #tpu.memory_space<vmem>>, vector<2x32xf32>
    %c0_13 = arith.constant 0 : index
    %c0_14 = arith.constant 0 : index
    %12 = vector.load %arg10[%c0_13, %c0_14] : memref<2x32xf32, #tpu.memory_space<vmem>>, vector<2x32xf32>
    %c0_i32_15 = arith.constant 0 : i32
    %13 = arith.index_cast %c0_i32_15 : i32 to index
    %c0_16 = arith.constant 0 : index
    %c0_17 = arith.constant 0 : index
    %14 = vector.load %arg2[%13, %c0_16, %c0_17] : memref<8x2x128xf32, #tpu.memory_space<vmem>>, vector<1x2x128xf32>
    %15 = vector.shape_cast %14 : vector<1x2x128xf32> to vector<2x128xf32>
    %cst = arith.constant dense<0.000000e+00> : vector<2x128xf32>
    %16 = tpu.matmul %9, %5, %cst {dimension_numbers = #tpu.dot_dimension_numbers<[1], [0], [0], [1], [0, 0, 1, 1], [], []>} : vector<2x32xf32>, vector<32x128xf32>, vector<2x128xf32> -> vector<2x128xf32>
    %17 = arith.addf %15, %16 : vector<2x128xf32>
    %18 = vector.extract_strided_slice %17 {offsets = [0, 0], sizes = [2, 32], strides = [1, 1]} : vector<2x128xf32> to vector<2x32xf32>
    %19 = arith.negf %18 : vector<2x32xf32>
    %20 = math.exp %19 : vector<2x32xf32>
    %cst_18 = arith.constant 1.000000e+00 : f32
    %21 = vector.broadcast %cst_18 : f32 to vector<2x32xf32>
    %22 = arith.addf %21, %20 : vector<2x32xf32>
    %23 = arith.divf %21, %22 : vector<2x32xf32>
    %24 = vector.extract_strided_slice %17 {offsets = [0, 32], sizes = [2, 32], strides = [1, 1]} : vector<2x128xf32> to vector<2x32xf32>
    %25 = arith.negf %24 : vector<2x32xf32>
    %26 = math.exp %25 : vector<2x32xf32>
    %cst_19 = arith.constant 1.000000e+00 : f32
    %27 = vector.broadcast %cst_19 : f32 to vector<2x32xf32>
    %28 = arith.addf %27, %26 : vector<2x32xf32>
    %29 = arith.divf %27, %28 : vector<2x32xf32>
    %30 = vector.extract_strided_slice %17 {offsets = [0, 64], sizes = [2, 32], strides = [1, 1]} : vector<2x128xf32> to vector<2x32xf32>
    %31 = math.tanh %30 : vector<2x32xf32>
    %32 = vector.extract_strided_slice %17 {offsets = [0, 96], sizes = [2, 32], strides = [1, 1]} : vector<2x128xf32> to vector<2x32xf32>
    %33 = arith.negf %32 : vector<2x32xf32>
    %34 = math.exp %33 : vector<2x32xf32>
    %cst_20 = arith.constant 1.000000e+00 : f32
    %35 = vector.broadcast %cst_20 : f32 to vector<2x32xf32>
    %36 = arith.addf %35, %34 : vector<2x32xf32>
    %37 = arith.divf %35, %36 : vector<2x32xf32>
    %38 = arith.mulf %29, %10 : vector<2x32xf32>
    %39 = arith.mulf %23, %31 : vector<2x32xf32>
    %40 = arith.addf %38, %39 : vector<2x32xf32>
    %41 = math.tanh %40 : vector<2x32xf32>
    %42 = arith.mulf %37, %41 : vector<2x32xf32>
    %43 = arith.addi %8, %c0_i32_15 : i32
    %44 = vector.broadcast %43 : i32 to vector<2x1xi32>
    %45 = arith.cmpi slt, %44, %3 : vector<2x1xi32>
    %46 = vector.shape_cast %45 : vector<2x1xi1> to vector<2x1xi1>
    %47 = vector.broadcast %46 : vector<2x1xi1> to vector<2x32xi1>
    %48 = arith.select %47, %42, %9 : vector<2x32xi1>, vector<2x32xf32>
    %49 = vector.shape_cast %45 : vector<2x1xi1> to vector<2x1xi1>
    %50 = vector.broadcast %49 : vector<2x1xi1> to vector<2x32xi1>
    %51 = arith.select %50, %40, %10 : vector<2x32xi1>, vector<2x32xf32>
    %cst_21 = arith.constant 0.000000e+00 : f32
    %52 = vector.shape_cast %45 : vector<2x1xi1> to vector<2x1xi1>
    %53 = vector.broadcast %52 : vector<2x1xi1> to vector<2x32xi1>
    %54 = vector.broadcast %cst_21 : f32 to vector<2x32xf32>
    %55 = arith.select %53, %42, %54 : vector<2x32xi1>, vector<2x32xf32>
    %56 = arith.index_cast %c0_i32_15 : i32 to index
    %c0_22 = arith.constant 0 : index
    %c0_23 = arith.constant 0 : index
    %57 = vector.load %arg5[%56, %c0_22, %c0_23] : memref<8x2x32xf32, #tpu.memory_space<vmem>>, vector<1x2x32xf32>
    %58 = vector.shape_cast %57 : vector<1x2x32xf32> to vector<2x32xf32>
    %59 = vector.shape_cast %55 : vector<2x32xf32> to vector<1x2x32xf32>
    tpu.vector_store %arg5[%56, %c0_22, %c0_23], %59 {strides = array<i32>} : memref<8x2x32xf32, #tpu.memory_space<vmem>>, vector<1x2x32xf32>,
    %c7_i32 = arith.constant 7 : i32
    %60 = arith.subi %c7_i32, %c0_i32_15 : i32
    %61 = arith.index_cast %60 : i32 to index
    %c0_24 = arith.constant 0 : index
    %c0_25 = arith.constant 0 : index
    %62 = vector.load %arg3[%61, %c0_24, %c0_25] : memref<8x2x128xf32, #tpu.memory_space<vmem>>, vector<1x2x128xf32>
    %63 = vector.shape_cast %62 : vector<1x2x128xf32> to vector<2x128xf32>
    %cst_26 = arith.constant dense<0.000000e+00> : vector<2x128xf32>
    %64 = tpu.matmul %11, %7, %cst_26 {dimension_numbers = #tpu.dot_dimension_numbers<[1], [0], [0], [1], [0, 0, 1, 1], [], []>} : vector<2x32xf32>, vector<32x128xf32>, vector<2x128xf32> -> vector<2x128xf32>
    %65 = arith.addf %63, %64 : vector<2x128xf32>
    %66 = vector.extract_strided_slice %65 {offsets = [0, 0], sizes = [2, 32], strides = [1, 1]} : vector<2x128xf32> to vector<2x32xf32>
    %67 = arith.negf %66 : vector<2x32xf32>
    %68 = math.exp %67 : vector<2x32xf32>
    %cst_27 = arith.constant 1.000000e+00 : f32
    %69 = vector.broadcast %cst_27 : f32 to vector<2x32xf32>
    %70 = arith.addf %69, %68 : vector<2x32xf32>
    %71 = arith.divf %69, %70 : vector<2x32xf32>
    %72 = vector.extract_strided_slice %65 {offsets = [0, 32], sizes = [2, 32], strides = [1, 1]} : vector<2x128xf32> to vector<2x32xf32>
    %73 = arith.negf %72 : vector<2x32xf32>
    %74 = math.exp %73 : vector<2x32xf32>
    %cst_28 = arith.constant 1.000000e+00 : f32
    %75 = vector.broadcast %cst_28 : f32 to vector<2x32xf32>
    %76 = arith.addf %75, %74 : vector<2x32xf32>
    %77 = arith.divf %75, %76 : vector<2x32xf32>
    %78 = vector.extract_strided_slice %65 {offsets = [0, 64], sizes = [2, 32], strides = [1, 1]} : vector<2x128xf32> to vector<2x32xf32>
    %79 = math.tanh %78 : vector<2x32xf32>
    %80 = vector.extract_strided_slice %65 {offsets = [0, 96], sizes = [2, 32], strides = [1, 1]} : vector<2x128xf32> to vector<2x32xf32>
    %81 = arith.negf %80 : vector<2x32xf32>
    %82 = math.exp %81 : vector<2x32xf32>
    %cst_29 = arith.constant 1.000000e+00 : f32
    %83 = vector.broadcast %cst_29 : f32 to vector<2x32xf32>
    %84 = arith.addf %83, %82 : vector<2x32xf32>
    %85 = arith.divf %83, %84 : vector<2x32xf32>
    %86 = arith.mulf %77, %12 : vector<2x32xf32>
    %87 = arith.mulf %71, %79 : vector<2x32xf32>
    %88 = arith.addf %86, %87 : vector<2x32xf32>
    %89 = math.tanh %88 : vector<2x32xf32>
    %90 = arith.mulf %85, %89 : vector<2x32xf32>
    %91 = arith.addi %8, %c0_i32_15 : i32
    %c7_i32_30 = arith.constant 7 : i32
    %92 = arith.subi %c7_i32_30, %91 : i32
    %93 = vector.broadcast %92 : i32 to vector<2x1xi32>
    %94 = arith.cmpi slt, %93, %3 : vector<2x1xi32>
    %95 = vector.shape_cast %94 : vector<2x1xi1> to vector<2x1xi1>
    %96 = vector.broadcast %95 : vector<2x1xi1> to vector<2x32xi1>
    %97 = arith.select %96, %90, %11 : vector<2x32xi1>, vector<2x32xf32>
    %98 = vector.shape_cast %94 : vector<2x1xi1> to vector<2x1xi1>
    %99 = vector.broadcast %98 : vector<2x1xi1> to vector<2x32xi1>
    %100 = arith.select %99, %88, %12 : vector<2x32xi1>, vector<2x32xf32>
    %cst_31 = arith.constant 0.000000e+00 : f32
    %101 = vector.shape_cast %94 : vector<2x1xi1> to vector<2x1xi1>
    %102 = vector.broadcast %101 : vector<2x1xi1> to vector<2x32xi1>
    %103 = vector.broadcast %cst_31 : f32 to vector<2x32xf32>
    %104 = arith.select %102, %90, %103 : vector<2x32xi1>, vector<2x32xf32>
    %105 = arith.index_cast %60 : i32 to index
    %c0_32 = arith.constant 0 : index
    %c0_33 = arith.constant 0 : index
    %106 = vector.load %arg6[%105, %c0_32, %c0_33] : memref<8x2x32xf32, #tpu.memory_space<vmem>>, vector<1x2x32xf32>
    %107 = vector.shape_cast %106 : vector<1x2x32xf32> to vector<2x32xf32>
    %108 = vector.shape_cast %104 : vector<2x32xf32> to vector<1x2x32xf32>
    tpu.vector_store %arg6[%105, %c0_32, %c0_33], %108 {strides = array<i32>} : memref<8x2x32xf32, #tpu.memory_space<vmem>>, vector<1x2x32xf32>,
    %c1_i32 = arith.constant 1 : i32
    %109 = arith.index_cast %c1_i32 : i32 to index
    %c0_34 = arith.constant 0 : index
    %c0_35 = arith.constant 0 : index
    %110 = vector.load %arg2[%109, %c0_34, %c0_35] : memref<8x2x128xf32, #tpu.memory_space<vmem>>, vector<1x2x128xf32>
    %111 = vector.shape_cast %110 : vector<1x2x128xf32> to vector<2x128xf32>
    %cst_36 = arith.constant dense<0.000000e+00> : vector<2x128xf32>
    %112 = tpu.matmul %48, %5, %cst_36 {dimension_numbers = #tpu.dot_dimension_numbers<[1], [0], [0], [1], [0, 0, 1, 1], [], []>} : vector<2x32xf32>, vector<32x128xf32>, vector<2x128xf32> -> vector<2x128xf32>
    %113 = arith.addf %111, %112 : vector<2x128xf32>
    %114 = vector.extract_strided_slice %113 {offsets = [0, 0], sizes = [2, 32], strides = [1, 1]} : vector<2x128xf32> to vector<2x32xf32>
    %115 = arith.negf %114 : vector<2x32xf32>
    %116 = math.exp %115 : vector<2x32xf32>
    %cst_37 = arith.constant 1.000000e+00 : f32
    %117 = vector.broadcast %cst_37 : f32 to vector<2x32xf32>
    %118 = arith.addf %117, %116 : vector<2x32xf32>
    %119 = arith.divf %117, %118 : vector<2x32xf32>
    %120 = vector.extract_strided_slice %113 {offsets = [0, 32], sizes = [2, 32], strides = [1, 1]} : vector<2x128xf32> to vector<2x32xf32>
    %121 = arith.negf %120 : vector<2x32xf32>
    %122 = math.exp %121 : vector<2x32xf32>
    %cst_38 = arith.constant 1.000000e+00 : f32
    %123 = vector.broadcast %cst_38 : f32 to vector<2x32xf32>
    %124 = arith.addf %123, %122 : vector<2x32xf32>
    %125 = arith.divf %123, %124 : vector<2x32xf32>
    %126 = vector.extract_strided_slice %113 {offsets = [0, 64], sizes = [2, 32], strides = [1, 1]} : vector<2x128xf32> to vector<2x32xf32>
    %127 = math.tanh %126 : vector<2x32xf32>
    %128 = vector.extract_strided_slice %113 {offsets = [0, 96], sizes = [2, 32], strides = [1, 1]} : vector<2x128xf32> to vector<2x32xf32>
    %129 = arith.negf %128 : vector<2x32xf32>
    %130 = math.exp %129 : vector<2x32xf32>
    %cst_39 = arith.constant 1.000000e+00 : f32
    %131 = vector.broadcast %cst_39 : f32 to vector<2x32xf32>
    %132 = arith.addf %131, %130 : vector<2x32xf32>
    %133 = arith.divf %131, %132 : vector<2x32xf32>
    %134 = arith.mulf %125, %51 : vector<2x32xf32>
    %135 = arith.mulf %119, %127 : vector<2x32xf32>
    %136 = arith.addf %134, %135 : vector<2x32xf32>
    %137 = math.tanh %136 : vector<2x32xf32>
    %138 = arith.mulf %133, %137 : vector<2x32xf32>
    %139 = arith.addi %8, %c1_i32 : i32
    %140 = vector.broadcast %139 : i32 to vector<2x1xi32>
    %141 = arith.cmpi slt, %140, %3 : vector<2x1xi32>
    %142 = vector.shape_cast %141 : vector<2x1xi1> to vector<2x1xi1>
    %143 = vector.broadcast %142 : vector<2x1xi1> to vector<2x32xi1>
    %144 = arith.select %143, %138, %48 : vector<2x32xi1>, vector<2x32xf32>
    %145 = vector.shape_cast %141 : vector<2x1xi1> to vector<2x1xi1>
    %146 = vector.broadcast %145 : vector<2x1xi1> to vector<2x32xi1>
    %147 = arith.select %146, %136, %51 : vector<2x32xi1>, vector<2x32xf32>
    %cst_40 = arith.constant 0.000000e+00 : f32
    %148 = vector.shape_cast %141 : vector<2x1xi1> to vector<2x1xi1>
    %149 = vector.broadcast %148 : vector<2x1xi1> to vector<2x32xi1>
    %150 = vector.broadcast %cst_40 : f32 to vector<2x32xf32>
    %151 = arith.select %149, %138, %150 : vector<2x32xi1>, vector<2x32xf32>
    %152 = arith.index_cast %c1_i32 : i32 to index
    %c0_41 = arith.constant 0 : index
    %c0_42 = arith.constant 0 : index
    %153 = vector.load %arg5[%152, %c0_41, %c0_42] : memref<8x2x32xf32, #tpu.memory_space<vmem>>, vector<1x2x32xf32>
    %154 = vector.shape_cast %153 : vector<1x2x32xf32> to vector<2x32xf32>
    %155 = vector.shape_cast %151 : vector<2x32xf32> to vector<1x2x32xf32>
    tpu.vector_store %arg5[%152, %c0_41, %c0_42], %155 {strides = array<i32>} : memref<8x2x32xf32, #tpu.memory_space<vmem>>, vector<1x2x32xf32>,
    %c7_i32_43 = arith.constant 7 : i32
    %156 = arith.subi %c7_i32_43, %c1_i32 : i32
    %157 = arith.index_cast %156 : i32 to index
    %c0_44 = arith.constant 0 : index
    %c0_45 = arith.constant 0 : index
    %158 = vector.load %arg3[%157, %c0_44, %c0_45] : memref<8x2x128xf32, #tpu.memory_space<vmem>>, vector<1x2x128xf32>
    %159 = vector.shape_cast %158 : vector<1x2x128xf32> to vector<2x128xf32>
    %cst_46 = arith.constant dense<0.000000e+00> : vector<2x128xf32>
    %160 = tpu.matmul %97, %7, %cst_46 {dimension_numbers = #tpu.dot_dimension_numbers<[1], [0], [0], [1], [0, 0, 1, 1], [], []>} : vector<2x32xf32>, vector<32x128xf32>, vector<2x128xf32> -> vector<2x128xf32>
    %161 = arith.addf %159, %160 : vector<2x128xf32>
    %162 = vector.extract_strided_slice %161 {offsets = [0, 0], sizes = [2, 32], strides = [1, 1]} : vector<2x128xf32> to vector<2x32xf32>
    %163 = arith.negf %162 : vector<2x32xf32>
    %164 = math.exp %163 : vector<2x32xf32>
    %cst_47 = arith.constant 1.000000e+00 : f32
    %165 = vector.broadcast %cst_47 : f32 to vector<2x32xf32>
    %166 = arith.addf %165, %164 : vector<2x32xf32>
    %167 = arith.divf %165, %166 : vector<2x32xf32>
    %168 = vector.extract_strided_slice %161 {offsets = [0, 32], sizes = [2, 32], strides = [1, 1]} : vector<2x128xf32> to vector<2x32xf32>
    %169 = arith.negf %168 : vector<2x32xf32>
    %170 = math.exp %169 : vector<2x32xf32>
    %cst_48 = arith.constant 1.000000e+00 : f32
    %171 = vector.broadcast %cst_48 : f32 to vector<2x32xf32>
    %172 = arith.addf %171, %170 : vector<2x32xf32>
    %173 = arith.divf %171, %172 : vector<2x32xf32>
    %174 = vector.extract_strided_slice %161 {offsets = [0, 64], sizes = [2, 32], strides = [1, 1]} : vector<2x128xf32> to vector<2x32xf32>
    %175 = math.tanh %174 : vector<2x32xf32>
    %176 = vector.extract_strided_slice %161 {offsets = [0, 96], sizes = [2, 32], strides = [1, 1]} : vector<2x128xf32> to vector<2x32xf32>
    %177 = arith.negf %176 : vector<2x32xf32>
    %178 = math.exp %177 : vector<2x32xf32>
    %cst_49 = arith.constant 1.000000e+00 : f32
    %179 = vector.broadcast %cst_49 : f32 to vector<2x32xf32>
    %180 = arith.addf %179, %178 : vector<2x32xf32>
    %181 = arith.divf %179, %180 : vector<2x32xf32>
    %182 = arith.mulf %173, %100 : vector<2x32xf32>
    %183 = arith.mulf %167, %175 : vector<2x32xf32>
    %184 = arith.addf %182, %183 : vector<2x32xf32>
    %185 = math.tanh %184 : vector<2x32xf32>
    %186 = arith.mulf %181, %185 : vector<2x32xf32>
    %187 = arith.addi %8, %c1_i32 : i32
    %c7_i32_50 = arith.constant 7 : i32
    %188 = arith.subi %c7_i32_50, %187 : i32
    %189 = vector.broadcast %188 : i32 to vector<2x1xi32>
    %190 = arith.cmpi slt, %189, %3 : vector<2x1xi32>
    %191 = vector.shape_cast %190 : vector<2x1xi1> to vector<2x1xi1>
    %192 = vector.broadcast %191 : vector<2x1xi1> to vector<2x32xi1>
    %193 = arith.select %192, %186, %97 : vector<2x32xi1>, vector<2x32xf32>
    %194 = vector.shape_cast %190 : vector<2x1xi1> to vector<2x1xi1>
    %195 = vector.broadcast %194 : vector<2x1xi1> to vector<2x32xi1>
    %196 = arith.select %195, %184, %100 : vector<2x32xi1>, vector<2x32xf32>
    %cst_51 = arith.constant 0.000000e+00 : f32
    %197 = vector.shape_cast %190 : vector<2x1xi1> to vector<2x1xi1>
    %198 = vector.broadcast %197 : vector<2x1xi1> to vector<2x32xi1>
    %199 = vector.broadcast %cst_51 : f32 to vector<2x32xf32>
    %200 = arith.select %198, %186, %199 : vector<2x32xi1>, vector<2x32xf32>
    %201 = arith.index_cast %156 : i32 to index
    %c0_52 = arith.constant 0 : index
    %c0_53 = arith.constant 0 : index
    %202 = vector.load %arg6[%201, %c0_52, %c0_53] : memref<8x2x32xf32, #tpu.memory_space<vmem>>, vector<1x2x32xf32>
    %203 = vector.shape_cast %202 : vector<1x2x32xf32> to vector<2x32xf32>
    %204 = vector.shape_cast %200 : vector<2x32xf32> to vector<1x2x32xf32>
    tpu.vector_store %arg6[%201, %c0_52, %c0_53], %204 {strides = array<i32>} : memref<8x2x32xf32, #tpu.memory_space<vmem>>, vector<1x2x32xf32>,
    %c2_i32 = arith.constant 2 : i32
    %205 = arith.index_cast %c2_i32 : i32 to index
    %c0_54 = arith.constant 0 : index
    %c0_55 = arith.constant 0 : index
    %206 = vector.load %arg2[%205, %c0_54, %c0_55] : memref<8x2x128xf32, #tpu.memory_space<vmem>>, vector<1x2x128xf32>
    %207 = vector.shape_cast %206 : vector<1x2x128xf32> to vector<2x128xf32>
    %cst_56 = arith.constant dense<0.000000e+00> : vector<2x128xf32>
    %208 = tpu.matmul %144, %5, %cst_56 {dimension_numbers = #tpu.dot_dimension_numbers<[1], [0], [0], [1], [0, 0, 1, 1], [], []>} : vector<2x32xf32>, vector<32x128xf32>, vector<2x128xf32> -> vector<2x128xf32>
    %209 = arith.addf %207, %208 : vector<2x128xf32>
    %210 = vector.extract_strided_slice %209 {offsets = [0, 0], sizes = [2, 32], strides = [1, 1]} : vector<2x128xf32> to vector<2x32xf32>
    %211 = arith.negf %210 : vector<2x32xf32>
    %212 = math.exp %211 : vector<2x32xf32>
    %cst_57 = arith.constant 1.000000e+00 : f32
    %213 = vector.broadcast %cst_57 : f32 to vector<2x32xf32>
    %214 = arith.addf %213, %212 : vector<2x32xf32>
    %215 = arith.divf %213, %214 : vector<2x32xf32>
    %216 = vector.extract_strided_slice %209 {offsets = [0, 32], sizes = [2, 32], strides = [1, 1]} : vector<2x128xf32> to vector<2x32xf32>
    %217 = arith.negf %216 : vector<2x32xf32>
    %218 = math.exp %217 : vector<2x32xf32>
    %cst_58 = arith.constant 1.000000e+00 : f32
    %219 = vector.broadcast %cst_58 : f32 to vector<2x32xf32>
    %220 = arith.addf %219, %218 : vector<2x32xf32>
    %221 = arith.divf %219, %220 : vector<2x32xf32>
    %222 = vector.extract_strided_slice %209 {offsets = [0, 64], sizes = [2, 32], strides = [1, 1]} : vector<2x128xf32> to vector<2x32xf32>
    %223 = math.tanh %222 : vector<2x32xf32>
    %224 = vector.extract_strided_slice %209 {offsets = [0, 96], sizes = [2, 32], strides = [1, 1]} : vector<2x128xf32> to vector<2x32xf32>
    %225 = arith.negf %224 : vector<2x32xf32>
    %226 = math.exp %225 : vector<2x32xf32>
    %cst_59 = arith.constant 1.000000e+00 : f32
    %227 = vector.broadcast %cst_59 : f32 to vector<2x32xf32>
    %228 = arith.addf %227, %226 : vector<2x32xf32>
    %229 = arith.divf %227, %228 : vector<2x32xf32>
    %230 = arith.mulf %221, %147 : vector<2x32xf32>
    %231 = arith.mulf %215, %223 : vector<2x32xf32>
    %232 = arith.addf %230, %231 : vector<2x32xf32>
    %233 = math.tanh %232 : vector<2x32xf32>
    %234 = arith.mulf %229, %233 : vector<2x32xf32>
    %235 = arith.addi %8, %c2_i32 : i32
    %236 = vector.broadcast %235 : i32 to vector<2x1xi32>
    %237 = arith.cmpi slt, %236, %3 : vector<2x1xi32>
    %238 = vector.shape_cast %237 : vector<2x1xi1> to vector<2x1xi1>
    %239 = vector.broadcast %238 : vector<2x1xi1> to vector<2x32xi1>
    %240 = arith.select %239, %234, %144 : vector<2x32xi1>, vector<2x32xf32>
    %241 = vector.shape_cast %237 : vector<2x1xi1> to vector<2x1xi1>
    %242 = vector.broadcast %241 : vector<2x1xi1> to vector<2x32xi1>
    %243 = arith.select %242, %232, %147 : vector<2x32xi1>, vector<2x32xf32>
    %cst_60 = arith.constant 0.000000e+00 : f32
    %244 = vector.shape_cast %237 : vector<2x1xi1> to vector<2x1xi1>
    %245 = vector.broadcast %244 : vector<2x1xi1> to vector<2x32xi1>
    %246 = vector.broadcast %cst_60 : f32 to vector<2x32xf32>
    %247 = arith.select %245, %234, %246 : vector<2x32xi1>, vector<2x32xf32>
    %248 = arith.index_cast %c2_i32 : i32 to index
    %c0_61 = arith.constant 0 : index
    %c0_62 = arith.constant 0 : index
    %249 = vector.load %arg5[%248, %c0_61, %c0_62] : memref<8x2x32xf32, #tpu.memory_space<vmem>>, vector<1x2x32xf32>
    %250 = vector.shape_cast %249 : vector<1x2x32xf32> to vector<2x32xf32>
    %251 = vector.shape_cast %247 : vector<2x32xf32> to vector<1x2x32xf32>
    tpu.vector_store %arg5[%248, %c0_61, %c0_62], %251 {strides = array<i32>} : memref<8x2x32xf32, #tpu.memory_space<vmem>>, vector<1x2x32xf32>,
    %c7_i32_63 = arith.constant 7 : i32
    %252 = arith.subi %c7_i32_63, %c2_i32 : i32
    %253 = arith.index_cast %252 : i32 to index
    %c0_64 = arith.constant 0 : index
    %c0_65 = arith.constant 0 : index
    %254 = vector.load %arg3[%253, %c0_64, %c0_65] : memref<8x2x128xf32, #tpu.memory_space<vmem>>, vector<1x2x128xf32>
    %255 = vector.shape_cast %254 : vector<1x2x128xf32> to vector<2x128xf32>
    %cst_66 = arith.constant dense<0.000000e+00> : vector<2x128xf32>
    %256 = tpu.matmul %193, %7, %cst_66 {dimension_numbers = #tpu.dot_dimension_numbers<[1], [0], [0], [1], [0, 0, 1, 1], [], []>} : vector<2x32xf32>, vector<32x128xf32>, vector<2x128xf32> -> vector<2x128xf32>
    %257 = arith.addf %255, %256 : vector<2x128xf32>
    %258 = vector.extract_strided_slice %257 {offsets = [0, 0], sizes = [2, 32], strides = [1, 1]} : vector<2x128xf32> to vector<2x32xf32>
    %259 = arith.negf %258 : vector<2x32xf32>
    %260 = math.exp %259 : vector<2x32xf32>
    %cst_67 = arith.constant 1.000000e+00 : f32
    %261 = vector.broadcast %cst_67 : f32 to vector<2x32xf32>
    %262 = arith.addf %261, %260 : vector<2x32xf32>
    %263 = arith.divf %261, %262 : vector<2x32xf32>
    %264 = vector.extract_strided_slice %257 {offsets = [0, 32], sizes = [2, 32], strides = [1, 1]} : vector<2x128xf32> to vector<2x32xf32>
    %265 = arith.negf %264 : vector<2x32xf32>
    %266 = math.exp %265 : vector<2x32xf32>
    %cst_68 = arith.constant 1.000000e+00 : f32
    %267 = vector.broadcast %cst_68 : f32 to vector<2x32xf32>
    %268 = arith.addf %267, %266 : vector<2x32xf32>
    %269 = arith.divf %267, %268 : vector<2x32xf32>
    %270 = vector.extract_strided_slice %257 {offsets = [0, 64], sizes = [2, 32], strides = [1, 1]} : vector<2x128xf32> to vector<2x32xf32>
    %271 = math.tanh %270 : vector<2x32xf32>
    %272 = vector.extract_strided_slice %257 {offsets = [0, 96], sizes = [2, 32], strides = [1, 1]} : vector<2x128xf32> to vector<2x32xf32>
    %273 = arith.negf %272 : vector<2x32xf32>
    %274 = math.exp %273 : vector<2x32xf32>
    %cst_69 = arith.constant 1.000000e+00 : f32
    %275 = vector.broadcast %cst_69 : f32 to vector<2x32xf32>
    %276 = arith.addf %275, %274 : vector<2x32xf32>
    %277 = arith.divf %275, %276 : vector<2x32xf32>
    %278 = arith.mulf %269, %196 : vector<2x32xf32>
    %279 = arith.mulf %263, %271 : vector<2x32xf32>
    %280 = arith.addf %278, %279 : vector<2x32xf32>
    %281 = math.tanh %280 : vector<2x32xf32>
    %282 = arith.mulf %277, %281 : vector<2x32xf32>
    %283 = arith.addi %8, %c2_i32 : i32
    %c7_i32_70 = arith.constant 7 : i32
    %284 = arith.subi %c7_i32_70, %283 : i32
    %285 = vector.broadcast %284 : i32 to vector<2x1xi32>
    %286 = arith.cmpi slt, %285, %3 : vector<2x1xi32>
    %287 = vector.shape_cast %286 : vector<2x1xi1> to vector<2x1xi1>
    %288 = vector.broadcast %287 : vector<2x1xi1> to vector<2x32xi1>
    %289 = arith.select %288, %282, %193 : vector<2x32xi1>, vector<2x32xf32>
    %290 = vector.shape_cast %286 : vector<2x1xi1> to vector<2x1xi1>
    %291 = vector.broadcast %290 : vector<2x1xi1> to vector<2x32xi1>
    %292 = arith.select %291, %280, %196 : vector<2x32xi1>, vector<2x32xf32>
    %cst_71 = arith.constant 0.000000e+00 : f32
    %293 = vector.shape_cast %286 : vector<2x1xi1> to vector<2x1xi1>
    %294 = vector.broadcast %293 : vector<2x1xi1> to vector<2x32xi1>
    %295 = vector.broadcast %cst_71 : f32 to vector<2x32xf32>
    %296 = arith.select %294, %282, %295 : vector<2x32xi1>, vector<2x32xf32>
    %297 = arith.index_cast %252 : i32 to index
    %c0_72 = arith.constant 0 : index
    %c0_73 = arith.constant 0 : index
    %298 = vector.load %arg6[%297, %c0_72, %c0_73] : memref<8x2x32xf32, #tpu.memory_space<vmem>>, vector<1x2x32xf32>
    %299 = vector.shape_cast %298 : vector<1x2x32xf32> to vector<2x32xf32>
    %300 = vector.shape_cast %296 : vector<2x32xf32> to vector<1x2x32xf32>
    tpu.vector_store %arg6[%297, %c0_72, %c0_73], %300 {strides = array<i32>} : memref<8x2x32xf32, #tpu.memory_space<vmem>>, vector<1x2x32xf32>,
    %c3_i32 = arith.constant 3 : i32
    %301 = arith.index_cast %c3_i32 : i32 to index
    %c0_74 = arith.constant 0 : index
    %c0_75 = arith.constant 0 : index
    %302 = vector.load %arg2[%301, %c0_74, %c0_75] : memref<8x2x128xf32, #tpu.memory_space<vmem>>, vector<1x2x128xf32>
    %303 = vector.shape_cast %302 : vector<1x2x128xf32> to vector<2x128xf32>
    %cst_76 = arith.constant dense<0.000000e+00> : vector<2x128xf32>
    %304 = tpu.matmul %240, %5, %cst_76 {dimension_numbers = #tpu.dot_dimension_numbers<[1], [0], [0], [1], [0, 0, 1, 1], [], []>} : vector<2x32xf32>, vector<32x128xf32>, vector<2x128xf32> -> vector<2x128xf32>
    %305 = arith.addf %303, %304 : vector<2x128xf32>
    %306 = vector.extract_strided_slice %305 {offsets = [0, 0], sizes = [2, 32], strides = [1, 1]} : vector<2x128xf32> to vector<2x32xf32>
    %307 = arith.negf %306 : vector<2x32xf32>
    %308 = math.exp %307 : vector<2x32xf32>
    %cst_77 = arith.constant 1.000000e+00 : f32
    %309 = vector.broadcast %cst_77 : f32 to vector<2x32xf32>
    %310 = arith.addf %309, %308 : vector<2x32xf32>
    %311 = arith.divf %309, %310 : vector<2x32xf32>
    %312 = vector.extract_strided_slice %305 {offsets = [0, 32], sizes = [2, 32], strides = [1, 1]} : vector<2x128xf32> to vector<2x32xf32>
    %313 = arith.negf %312 : vector<2x32xf32>
    %314 = math.exp %313 : vector<2x32xf32>
    %cst_78 = arith.constant 1.000000e+00 : f32
    %315 = vector.broadcast %cst_78 : f32 to vector<2x32xf32>
    %316 = arith.addf %315, %314 : vector<2x32xf32>
    %317 = arith.divf %315, %316 : vector<2x32xf32>
    %318 = vector.extract_strided_slice %305 {offsets = [0, 64], sizes = [2, 32], strides = [1, 1]} : vector<2x128xf32> to vector<2x32xf32>
    %319 = math.tanh %318 : vector<2x32xf32>
    %320 = vector.extract_strided_slice %305 {offsets = [0, 96], sizes = [2, 32], strides = [1, 1]} : vector<2x128xf32> to vector<2x32xf32>
    %321 = arith.negf %320 : vector<2x32xf32>
    %322 = math.exp %321 : vector<2x32xf32>
    %cst_79 = arith.constant 1.000000e+00 : f32
    %323 = vector.broadcast %cst_79 : f32 to vector<2x32xf32>
    %324 = arith.addf %323, %322 : vector<2x32xf32>
    %325 = arith.divf %323, %324 : vector<2x32xf32>
    %326 = arith.mulf %317, %243 : vector<2x32xf32>
    %327 = arith.mulf %311, %319 : vector<2x32xf32>
    %328 = arith.addf %326, %327 : vector<2x32xf32>
    %329 = math.tanh %328 : vector<2x32xf32>
    %330 = arith.mulf %325, %329 : vector<2x32xf32>
    %331 = arith.addi %8, %c3_i32 : i32
    %332 = vector.broadcast %331 : i32 to vector<2x1xi32>
    %333 = arith.cmpi slt, %332, %3 : vector<2x1xi32>
    %334 = vector.shape_cast %333 : vector<2x1xi1> to vector<2x1xi1>
    %335 = vector.broadcast %334 : vector<2x1xi1> to vector<2x32xi1>
    %336 = arith.select %335, %330, %240 : vector<2x32xi1>, vector<2x32xf32>
    %337 = vector.shape_cast %333 : vector<2x1xi1> to vector<2x1xi1>
    %338 = vector.broadcast %337 : vector<2x1xi1> to vector<2x32xi1>
    %339 = arith.select %338, %328, %243 : vector<2x32xi1>, vector<2x32xf32>
    %cst_80 = arith.constant 0.000000e+00 : f32
    %340 = vector.shape_cast %333 : vector<2x1xi1> to vector<2x1xi1>
    %341 = vector.broadcast %340 : vector<2x1xi1> to vector<2x32xi1>
    %342 = vector.broadcast %cst_80 : f32 to vector<2x32xf32>
    %343 = arith.select %341, %330, %342 : vector<2x32xi1>, vector<2x32xf32>
    %344 = arith.index_cast %c3_i32 : i32 to index
    %c0_81 = arith.constant 0 : index
    %c0_82 = arith.constant 0 : index
    %345 = vector.load %arg5[%344, %c0_81, %c0_82] : memref<8x2x32xf32, #tpu.memory_space<vmem>>, vector<1x2x32xf32>
    %346 = vector.shape_cast %345 : vector<1x2x32xf32> to vector<2x32xf32>
    %347 = vector.shape_cast %343 : vector<2x32xf32> to vector<1x2x32xf32>
    tpu.vector_store %arg5[%344, %c0_81, %c0_82], %347 {strides = array<i32>} : memref<8x2x32xf32, #tpu.memory_space<vmem>>, vector<1x2x32xf32>,
    %c7_i32_83 = arith.constant 7 : i32
    %348 = arith.subi %c7_i32_83, %c3_i32 : i32
    %349 = arith.index_cast %348 : i32 to index
    %c0_84 = arith.constant 0 : index
    %c0_85 = arith.constant 0 : index
    %350 = vector.load %arg3[%349, %c0_84, %c0_85] : memref<8x2x128xf32, #tpu.memory_space<vmem>>, vector<1x2x128xf32>
    %351 = vector.shape_cast %350 : vector<1x2x128xf32> to vector<2x128xf32>
    %cst_86 = arith.constant dense<0.000000e+00> : vector<2x128xf32>
    %352 = tpu.matmul %289, %7, %cst_86 {dimension_numbers = #tpu.dot_dimension_numbers<[1], [0], [0], [1], [0, 0, 1, 1], [], []>} : vector<2x32xf32>, vector<32x128xf32>, vector<2x128xf32> -> vector<2x128xf32>
    %353 = arith.addf %351, %352 : vector<2x128xf32>
    %354 = vector.extract_strided_slice %353 {offsets = [0, 0], sizes = [2, 32], strides = [1, 1]} : vector<2x128xf32> to vector<2x32xf32>
    %355 = arith.negf %354 : vector<2x32xf32>
    %356 = math.exp %355 : vector<2x32xf32>
    %cst_87 = arith.constant 1.000000e+00 : f32
    %357 = vector.broadcast %cst_87 : f32 to vector<2x32xf32>
    %358 = arith.addf %357, %356 : vector<2x32xf32>
    %359 = arith.divf %357, %358 : vector<2x32xf32>
    %360 = vector.extract_strided_slice %353 {offsets = [0, 32], sizes = [2, 32], strides = [1, 1]} : vector<2x128xf32> to vector<2x32xf32>
    %361 = arith.negf %360 : vector<2x32xf32>
    %362 = math.exp %361 : vector<2x32xf32>
    %cst_88 = arith.constant 1.000000e+00 : f32
    %363 = vector.broadcast %cst_88 : f32 to vector<2x32xf32>
    %364 = arith.addf %363, %362 : vector<2x32xf32>
    %365 = arith.divf %363, %364 : vector<2x32xf32>
    %366 = vector.extract_strided_slice %353 {offsets = [0, 64], sizes = [2, 32], strides = [1, 1]} : vector<2x128xf32> to vector<2x32xf32>
    %367 = math.tanh %366 : vector<2x32xf32>
    %368 = vector.extract_strided_slice %353 {offsets = [0, 96], sizes = [2, 32], strides = [1, 1]} : vector<2x128xf32> to vector<2x32xf32>
    %369 = arith.negf %368 : vector<2x32xf32>
    %370 = math.exp %369 : vector<2x32xf32>
    %cst_89 = arith.constant 1.000000e+00 : f32
    %371 = vector.broadcast %cst_89 : f32 to vector<2x32xf32>
    %372 = arith.addf %371, %370 : vector<2x32xf32>
    %373 = arith.divf %371, %372 : vector<2x32xf32>
    %374 = arith.mulf %365, %292 : vector<2x32xf32>
    %375 = arith.mulf %359, %367 : vector<2x32xf32>
    %376 = arith.addf %374, %375 : vector<2x32xf32>
    %377 = math.tanh %376 : vector<2x32xf32>
    %378 = arith.mulf %373, %377 : vector<2x32xf32>
    %379 = arith.addi %8, %c3_i32 : i32
    %c7_i32_90 = arith.constant 7 : i32
    %380 = arith.subi %c7_i32_90, %379 : i32
    %381 = vector.broadcast %380 : i32 to vector<2x1xi32>
    %382 = arith.cmpi slt, %381, %3 : vector<2x1xi32>
    %383 = vector.shape_cast %382 : vector<2x1xi1> to vector<2x1xi1>
    %384 = vector.broadcast %383 : vector<2x1xi1> to vector<2x32xi1>
    %385 = arith.select %384, %378, %289 : vector<2x32xi1>, vector<2x32xf32>
    %386 = vector.shape_cast %382 : vector<2x1xi1> to vector<2x1xi1>
    %387 = vector.broadcast %386 : vector<2x1xi1> to vector<2x32xi1>
    %388 = arith.select %387, %376, %292 : vector<2x32xi1>, vector<2x32xf32>
    %cst_91 = arith.constant 0.000000e+00 : f32
    %389 = vector.shape_cast %382 : vector<2x1xi1> to vector<2x1xi1>
    %390 = vector.broadcast %389 : vector<2x1xi1> to vector<2x32xi1>
    %391 = vector.broadcast %cst_91 : f32 to vector<2x32xf32>
    %392 = arith.select %390, %378, %391 : vector<2x32xi1>, vector<2x32xf32>
    %393 = arith.index_cast %348 : i32 to index
    %c0_92 = arith.constant 0 : index
    %c0_93 = arith.constant 0 : index
    %394 = vector.load %arg6[%393, %c0_92, %c0_93] : memref<8x2x32xf32, #tpu.memory_space<vmem>>, vector<1x2x32xf32>
    %395 = vector.shape_cast %394 : vector<1x2x32xf32> to vector<2x32xf32>
    %396 = vector.shape_cast %392 : vector<2x32xf32> to vector<1x2x32xf32>
    tpu.vector_store %arg6[%393, %c0_92, %c0_93], %396 {strides = array<i32>} : memref<8x2x32xf32, #tpu.memory_space<vmem>>, vector<1x2x32xf32>,
    %c4_i32 = arith.constant 4 : i32
    %397 = arith.index_cast %c4_i32 : i32 to index
    %c0_94 = arith.constant 0 : index
    %c0_95 = arith.constant 0 : index
    %398 = vector.load %arg2[%397, %c0_94, %c0_95] : memref<8x2x128xf32, #tpu.memory_space<vmem>>, vector<1x2x128xf32>
    %399 = vector.shape_cast %398 : vector<1x2x128xf32> to vector<2x128xf32>
    %cst_96 = arith.constant dense<0.000000e+00> : vector<2x128xf32>
    %400 = tpu.matmul %336, %5, %cst_96 {dimension_numbers = #tpu.dot_dimension_numbers<[1], [0], [0], [1], [0, 0, 1, 1], [], []>} : vector<2x32xf32>, vector<32x128xf32>, vector<2x128xf32> -> vector<2x128xf32>
    %401 = arith.addf %399, %400 : vector<2x128xf32>
    %402 = vector.extract_strided_slice %401 {offsets = [0, 0], sizes = [2, 32], strides = [1, 1]} : vector<2x128xf32> to vector<2x32xf32>
    %403 = arith.negf %402 : vector<2x32xf32>
    %404 = math.exp %403 : vector<2x32xf32>
    %cst_97 = arith.constant 1.000000e+00 : f32
    %405 = vector.broadcast %cst_97 : f32 to vector<2x32xf32>
    %406 = arith.addf %405, %404 : vector<2x32xf32>
    %407 = arith.divf %405, %406 : vector<2x32xf32>
    %408 = vector.extract_strided_slice %401 {offsets = [0, 32], sizes = [2, 32], strides = [1, 1]} : vector<2x128xf32> to vector<2x32xf32>
    %409 = arith.negf %408 : vector<2x32xf32>
    %410 = math.exp %409 : vector<2x32xf32>
    %cst_98 = arith.constant 1.000000e+00 : f32
    %411 = vector.broadcast %cst_98 : f32 to vector<2x32xf32>
    %412 = arith.addf %411, %410 : vector<2x32xf32>
    %413 = arith.divf %411, %412 : vector<2x32xf32>
    %414 = vector.extract_strided_slice %401 {offsets = [0, 64], sizes = [2, 32], strides = [1, 1]} : vector<2x128xf32> to vector<2x32xf32>
    %415 = math.tanh %414 : vector<2x32xf32>
    %416 = vector.extract_strided_slice %401 {offsets = [0, 96], sizes = [2, 32], strides = [1, 1]} : vector<2x128xf32> to vector<2x32xf32>
    %417 = arith.negf %416 : vector<2x32xf32>
    %418 = math.exp %417 : vector<2x32xf32>
    %cst_99 = arith.constant 1.000000e+00 : f32
    %419 = vector.broadcast %cst_99 : f32 to vector<2x32xf32>
    %420 = arith.addf %419, %418 : vector<2x32xf32>
    %421 = arith.divf %419, %420 : vector<2x32xf32>
    %422 = arith.mulf %413, %339 : vector<2x32xf32>
    %423 = arith.mulf %407, %415 : vector<2x32xf32>
    %424 = arith.addf %422, %423 : vector<2x32xf32>
    %425 = math.tanh %424 : vector<2x32xf32>
    %426 = arith.mulf %421, %425 : vector<2x32xf32>
    %427 = arith.addi %8, %c4_i32 : i32
    %428 = vector.broadcast %427 : i32 to vector<2x1xi32>
    %429 = arith.cmpi slt, %428, %3 : vector<2x1xi32>
    %430 = vector.shape_cast %429 : vector<2x1xi1> to vector<2x1xi1>
    %431 = vector.broadcast %430 : vector<2x1xi1> to vector<2x32xi1>
    %432 = arith.select %431, %426, %336 : vector<2x32xi1>, vector<2x32xf32>
    %433 = vector.shape_cast %429 : vector<2x1xi1> to vector<2x1xi1>
    %434 = vector.broadcast %433 : vector<2x1xi1> to vector<2x32xi1>
    %435 = arith.select %434, %424, %339 : vector<2x32xi1>, vector<2x32xf32>
    %cst_100 = arith.constant 0.000000e+00 : f32
    %436 = vector.shape_cast %429 : vector<2x1xi1> to vector<2x1xi1>
    %437 = vector.broadcast %436 : vector<2x1xi1> to vector<2x32xi1>
    %438 = vector.broadcast %cst_100 : f32 to vector<2x32xf32>
    %439 = arith.select %437, %426, %438 : vector<2x32xi1>, vector<2x32xf32>
    %440 = arith.index_cast %c4_i32 : i32 to index
    %c0_101 = arith.constant 0 : index
    %c0_102 = arith.constant 0 : index
    %441 = vector.load %arg5[%440, %c0_101, %c0_102] : memref<8x2x32xf32, #tpu.memory_space<vmem>>, vector<1x2x32xf32>
    %442 = vector.shape_cast %441 : vector<1x2x32xf32> to vector<2x32xf32>
    %443 = vector.shape_cast %439 : vector<2x32xf32> to vector<1x2x32xf32>
    tpu.vector_store %arg5[%440, %c0_101, %c0_102], %443 {strides = array<i32>} : memref<8x2x32xf32, #tpu.memory_space<vmem>>, vector<1x2x32xf32>,
    %c7_i32_103 = arith.constant 7 : i32
    %444 = arith.subi %c7_i32_103, %c4_i32 : i32
    %445 = arith.index_cast %444 : i32 to index
    %c0_104 = arith.constant 0 : index
    %c0_105 = arith.constant 0 : index
    %446 = vector.load %arg3[%445, %c0_104, %c0_105] : memref<8x2x128xf32, #tpu.memory_space<vmem>>, vector<1x2x128xf32>
    %447 = vector.shape_cast %446 : vector<1x2x128xf32> to vector<2x128xf32>
    %cst_106 = arith.constant dense<0.000000e+00> : vector<2x128xf32>
    %448 = tpu.matmul %385, %7, %cst_106 {dimension_numbers = #tpu.dot_dimension_numbers<[1], [0], [0], [1], [0, 0, 1, 1], [], []>} : vector<2x32xf32>, vector<32x128xf32>, vector<2x128xf32> -> vector<2x128xf32>
    %449 = arith.addf %447, %448 : vector<2x128xf32>
    %450 = vector.extract_strided_slice %449 {offsets = [0, 0], sizes = [2, 32], strides = [1, 1]} : vector<2x128xf32> to vector<2x32xf32>
    %451 = arith.negf %450 : vector<2x32xf32>
    %452 = math.exp %451 : vector<2x32xf32>
    %cst_107 = arith.constant 1.000000e+00 : f32
    %453 = vector.broadcast %cst_107 : f32 to vector<2x32xf32>
    %454 = arith.addf %453, %452 : vector<2x32xf32>
    %455 = arith.divf %453, %454 : vector<2x32xf32>
    %456 = vector.extract_strided_slice %449 {offsets = [0, 32], sizes = [2, 32], strides = [1, 1]} : vector<2x128xf32> to vector<2x32xf32>
    %457 = arith.negf %456 : vector<2x32xf32>
    %458 = math.exp %457 : vector<2x32xf32>
    %cst_108 = arith.constant 1.000000e+00 : f32
    %459 = vector.broadcast %cst_108 : f32 to vector<2x32xf32>
    %460 = arith.addf %459, %458 : vector<2x32xf32>
    %461 = arith.divf %459, %460 : vector<2x32xf32>
    %462 = vector.extract_strided_slice %449 {offsets = [0, 64], sizes = [2, 32], strides = [1, 1]} : vector<2x128xf32> to vector<2x32xf32>
    %463 = math.tanh %462 : vector<2x32xf32>
    %464 = vector.extract_strided_slice %449 {offsets = [0, 96], sizes = [2, 32], strides = [1, 1]} : vector<2x128xf32> to vector<2x32xf32>
    %465 = arith.negf %464 : vector<2x32xf32>
    %466 = math.exp %465 : vector<2x32xf32>
    %cst_109 = arith.constant 1.000000e+00 : f32
    %467 = vector.broadcast %cst_109 : f32 to vector<2x32xf32>
    %468 = arith.addf %467, %466 : vector<2x32xf32>
    %469 = arith.divf %467, %468 : vector<2x32xf32>
    %470 = arith.mulf %461, %388 : vector<2x32xf32>
    %471 = arith.mulf %455, %463 : vector<2x32xf32>
    %472 = arith.addf %470, %471 : vector<2x32xf32>
    %473 = math.tanh %472 : vector<2x32xf32>
    %474 = arith.mulf %469, %473 : vector<2x32xf32>
    %475 = arith.addi %8, %c4_i32 : i32
    %c7_i32_110 = arith.constant 7 : i32
    %476 = arith.subi %c7_i32_110, %475 : i32
    %477 = vector.broadcast %476 : i32 to vector<2x1xi32>
    %478 = arith.cmpi slt, %477, %3 : vector<2x1xi32>
    %479 = vector.shape_cast %478 : vector<2x1xi1> to vector<2x1xi1>
    %480 = vector.broadcast %479 : vector<2x1xi1> to vector<2x32xi1>
    %481 = arith.select %480, %474, %385 : vector<2x32xi1>, vector<2x32xf32>
    %482 = vector.shape_cast %478 : vector<2x1xi1> to vector<2x1xi1>
    %483 = vector.broadcast %482 : vector<2x1xi1> to vector<2x32xi1>
    %484 = arith.select %483, %472, %388 : vector<2x32xi1>, vector<2x32xf32>
    %cst_111 = arith.constant 0.000000e+00 : f32
    %485 = vector.shape_cast %478 : vector<2x1xi1> to vector<2x1xi1>
    %486 = vector.broadcast %485 : vector<2x1xi1> to vector<2x32xi1>
    %487 = vector.broadcast %cst_111 : f32 to vector<2x32xf32>
    %488 = arith.select %486, %474, %487 : vector<2x32xi1>, vector<2x32xf32>
    %489 = arith.index_cast %444 : i32 to index
    %c0_112 = arith.constant 0 : index
    %c0_113 = arith.constant 0 : index
    %490 = vector.load %arg6[%489, %c0_112, %c0_113] : memref<8x2x32xf32, #tpu.memory_space<vmem>>, vector<1x2x32xf32>
    %491 = vector.shape_cast %490 : vector<1x2x32xf32> to vector<2x32xf32>
    %492 = vector.shape_cast %488 : vector<2x32xf32> to vector<1x2x32xf32>
    tpu.vector_store %arg6[%489, %c0_112, %c0_113], %492 {strides = array<i32>} : memref<8x2x32xf32, #tpu.memory_space<vmem>>, vector<1x2x32xf32>,
    %c5_i32 = arith.constant 5 : i32
    %493 = arith.index_cast %c5_i32 : i32 to index
    %c0_114 = arith.constant 0 : index
    %c0_115 = arith.constant 0 : index
    %494 = vector.load %arg2[%493, %c0_114, %c0_115] : memref<8x2x128xf32, #tpu.memory_space<vmem>>, vector<1x2x128xf32>
    %495 = vector.shape_cast %494 : vector<1x2x128xf32> to vector<2x128xf32>
    %cst_116 = arith.constant dense<0.000000e+00> : vector<2x128xf32>
    %496 = tpu.matmul %432, %5, %cst_116 {dimension_numbers = #tpu.dot_dimension_numbers<[1], [0], [0], [1], [0, 0, 1, 1], [], []>} : vector<2x32xf32>, vector<32x128xf32>, vector<2x128xf32> -> vector<2x128xf32>
    %497 = arith.addf %495, %496 : vector<2x128xf32>
    %498 = vector.extract_strided_slice %497 {offsets = [0, 0], sizes = [2, 32], strides = [1, 1]} : vector<2x128xf32> to vector<2x32xf32>
    %499 = arith.negf %498 : vector<2x32xf32>
    %500 = math.exp %499 : vector<2x32xf32>
    %cst_117 = arith.constant 1.000000e+00 : f32
    %501 = vector.broadcast %cst_117 : f32 to vector<2x32xf32>
    %502 = arith.addf %501, %500 : vector<2x32xf32>
    %503 = arith.divf %501, %502 : vector<2x32xf32>
    %504 = vector.extract_strided_slice %497 {offsets = [0, 32], sizes = [2, 32], strides = [1, 1]} : vector<2x128xf32> to vector<2x32xf32>
    %505 = arith.negf %504 : vector<2x32xf32>
    %506 = math.exp %505 : vector<2x32xf32>
    %cst_118 = arith.constant 1.000000e+00 : f32
    %507 = vector.broadcast %cst_118 : f32 to vector<2x32xf32>
    %508 = arith.addf %507, %506 : vector<2x32xf32>
    %509 = arith.divf %507, %508 : vector<2x32xf32>
    %510 = vector.extract_strided_slice %497 {offsets = [0, 64], sizes = [2, 32], strides = [1, 1]} : vector<2x128xf32> to vector<2x32xf32>
    %511 = math.tanh %510 : vector<2x32xf32>
    %512 = vector.extract_strided_slice %497 {offsets = [0, 96], sizes = [2, 32], strides = [1, 1]} : vector<2x128xf32> to vector<2x32xf32>
    %513 = arith.negf %512 : vector<2x32xf32>
    %514 = math.exp %513 : vector<2x32xf32>
    %cst_119 = arith.constant 1.000000e+00 : f32
    %515 = vector.broadcast %cst_119 : f32 to vector<2x32xf32>
    %516 = arith.addf %515, %514 : vector<2x32xf32>
    %517 = arith.divf %515, %516 : vector<2x32xf32>
    %518 = arith.mulf %509, %435 : vector<2x32xf32>
    %519 = arith.mulf %503, %511 : vector<2x32xf32>
    %520 = arith.addf %518, %519 : vector<2x32xf32>
    %521 = math.tanh %520 : vector<2x32xf32>
    %522 = arith.mulf %517, %521 : vector<2x32xf32>
    %523 = arith.addi %8, %c5_i32 : i32
    %524 = vector.broadcast %523 : i32 to vector<2x1xi32>
    %525 = arith.cmpi slt, %524, %3 : vector<2x1xi32>
    %526 = vector.shape_cast %525 : vector<2x1xi1> to vector<2x1xi1>
    %527 = vector.broadcast %526 : vector<2x1xi1> to vector<2x32xi1>
    %528 = arith.select %527, %522, %432 : vector<2x32xi1>, vector<2x32xf32>
    %529 = vector.shape_cast %525 : vector<2x1xi1> to vector<2x1xi1>
    %530 = vector.broadcast %529 : vector<2x1xi1> to vector<2x32xi1>
    %531 = arith.select %530, %520, %435 : vector<2x32xi1>, vector<2x32xf32>
    %cst_120 = arith.constant 0.000000e+00 : f32
    %532 = vector.shape_cast %525 : vector<2x1xi1> to vector<2x1xi1>
    %533 = vector.broadcast %532 : vector<2x1xi1> to vector<2x32xi1>
    %534 = vector.broadcast %cst_120 : f32 to vector<2x32xf32>
    %535 = arith.select %533, %522, %534 : vector<2x32xi1>, vector<2x32xf32>
    %536 = arith.index_cast %c5_i32 : i32 to index
    %c0_121 = arith.constant 0 : index
    %c0_122 = arith.constant 0 : index
    %537 = vector.load %arg5[%536, %c0_121, %c0_122] : memref<8x2x32xf32, #tpu.memory_space<vmem>>, vector<1x2x32xf32>
    %538 = vector.shape_cast %537 : vector<1x2x32xf32> to vector<2x32xf32>
    %539 = vector.shape_cast %535 : vector<2x32xf32> to vector<1x2x32xf32>
    tpu.vector_store %arg5[%536, %c0_121, %c0_122], %539 {strides = array<i32>} : memref<8x2x32xf32, #tpu.memory_space<vmem>>, vector<1x2x32xf32>,
    %c7_i32_123 = arith.constant 7 : i32
    %540 = arith.subi %c7_i32_123, %c5_i32 : i32
    %541 = arith.index_cast %540 : i32 to index
    %c0_124 = arith.constant 0 : index
    %c0_125 = arith.constant 0 : index
    %542 = vector.load %arg3[%541, %c0_124, %c0_125] : memref<8x2x128xf32, #tpu.memory_space<vmem>>, vector<1x2x128xf32>
    %543 = vector.shape_cast %542 : vector<1x2x128xf32> to vector<2x128xf32>
    %cst_126 = arith.constant dense<0.000000e+00> : vector<2x128xf32>
    %544 = tpu.matmul %481, %7, %cst_126 {dimension_numbers = #tpu.dot_dimension_numbers<[1], [0], [0], [1], [0, 0, 1, 1], [], []>} : vector<2x32xf32>, vector<32x128xf32>, vector<2x128xf32> -> vector<2x128xf32>
    %545 = arith.addf %543, %544 : vector<2x128xf32>
    %546 = vector.extract_strided_slice %545 {offsets = [0, 0], sizes = [2, 32], strides = [1, 1]} : vector<2x128xf32> to vector<2x32xf32>
    %547 = arith.negf %546 : vector<2x32xf32>
    %548 = math.exp %547 : vector<2x32xf32>
    %cst_127 = arith.constant 1.000000e+00 : f32
    %549 = vector.broadcast %cst_127 : f32 to vector<2x32xf32>
    %550 = arith.addf %549, %548 : vector<2x32xf32>
    %551 = arith.divf %549, %550 : vector<2x32xf32>
    %552 = vector.extract_strided_slice %545 {offsets = [0, 32], sizes = [2, 32], strides = [1, 1]} : vector<2x128xf32> to vector<2x32xf32>
    %553 = arith.negf %552 : vector<2x32xf32>
    %554 = math.exp %553 : vector<2x32xf32>
    %cst_128 = arith.constant 1.000000e+00 : f32
    %555 = vector.broadcast %cst_128 : f32 to vector<2x32xf32>
    %556 = arith.addf %555, %554 : vector<2x32xf32>
    %557 = arith.divf %555, %556 : vector<2x32xf32>
    %558 = vector.extract_strided_slice %545 {offsets = [0, 64], sizes = [2, 32], strides = [1, 1]} : vector<2x128xf32> to vector<2x32xf32>
    %559 = math.tanh %558 : vector<2x32xf32>
    %560 = vector.extract_strided_slice %545 {offsets = [0, 96], sizes = [2, 32], strides = [1, 1]} : vector<2x128xf32> to vector<2x32xf32>
    %561 = arith.negf %560 : vector<2x32xf32>
    %562 = math.exp %561 : vector<2x32xf32>
    %cst_129 = arith.constant 1.000000e+00 : f32
    %563 = vector.broadcast %cst_129 : f32 to vector<2x32xf32>
    %564 = arith.addf %563, %562 : vector<2x32xf32>
    %565 = arith.divf %563, %564 : vector<2x32xf32>
    %566 = arith.mulf %557, %484 : vector<2x32xf32>
    %567 = arith.mulf %551, %559 : vector<2x32xf32>
    %568 = arith.addf %566, %567 : vector<2x32xf32>
    %569 = math.tanh %568 : vector<2x32xf32>
    %570 = arith.mulf %565, %569 : vector<2x32xf32>
    %571 = arith.addi %8, %c5_i32 : i32
    %c7_i32_130 = arith.constant 7 : i32
    %572 = arith.subi %c7_i32_130, %571 : i32
    %573 = vector.broadcast %572 : i32 to vector<2x1xi32>
    %574 = arith.cmpi slt, %573, %3 : vector<2x1xi32>
    %575 = vector.shape_cast %574 : vector<2x1xi1> to vector<2x1xi1>
    %576 = vector.broadcast %575 : vector<2x1xi1> to vector<2x32xi1>
    %577 = arith.select %576, %570, %481 : vector<2x32xi1>, vector<2x32xf32>
    %578 = vector.shape_cast %574 : vector<2x1xi1> to vector<2x1xi1>
    %579 = vector.broadcast %578 : vector<2x1xi1> to vector<2x32xi1>
    %580 = arith.select %579, %568, %484 : vector<2x32xi1>, vector<2x32xf32>
    %cst_131 = arith.constant 0.000000e+00 : f32
    %581 = vector.shape_cast %574 : vector<2x1xi1> to vector<2x1xi1>
    %582 = vector.broadcast %581 : vector<2x1xi1> to vector<2x32xi1>
    %583 = vector.broadcast %cst_131 : f32 to vector<2x32xf32>
    %584 = arith.select %582, %570, %583 : vector<2x32xi1>, vector<2x32xf32>
    %585 = arith.index_cast %540 : i32 to index
    %c0_132 = arith.constant 0 : index
    %c0_133 = arith.constant 0 : index
    %586 = vector.load %arg6[%585, %c0_132, %c0_133] : memref<8x2x32xf32, #tpu.memory_space<vmem>>, vector<1x2x32xf32>
    %587 = vector.shape_cast %586 : vector<1x2x32xf32> to vector<2x32xf32>
    %588 = vector.shape_cast %584 : vector<2x32xf32> to vector<1x2x32xf32>
    tpu.vector_store %arg6[%585, %c0_132, %c0_133], %588 {strides = array<i32>} : memref<8x2x32xf32, #tpu.memory_space<vmem>>, vector<1x2x32xf32>,
    %c6_i32 = arith.constant 6 : i32
    %589 = arith.index_cast %c6_i32 : i32 to index
    %c0_134 = arith.constant 0 : index
    %c0_135 = arith.constant 0 : index
    %590 = vector.load %arg2[%589, %c0_134, %c0_135] : memref<8x2x128xf32, #tpu.memory_space<vmem>>, vector<1x2x128xf32>
    %591 = vector.shape_cast %590 : vector<1x2x128xf32> to vector<2x128xf32>
    %cst_136 = arith.constant dense<0.000000e+00> : vector<2x128xf32>
    %592 = tpu.matmul %528, %5, %cst_136 {dimension_numbers = #tpu.dot_dimension_numbers<[1], [0], [0], [1], [0, 0, 1, 1], [], []>} : vector<2x32xf32>, vector<32x128xf32>, vector<2x128xf32> -> vector<2x128xf32>
    %593 = arith.addf %591, %592 : vector<2x128xf32>
    %594 = vector.extract_strided_slice %593 {offsets = [0, 0], sizes = [2, 32], strides = [1, 1]} : vector<2x128xf32> to vector<2x32xf32>
    %595 = arith.negf %594 : vector<2x32xf32>
    %596 = math.exp %595 : vector<2x32xf32>
    %cst_137 = arith.constant 1.000000e+00 : f32
    %597 = vector.broadcast %cst_137 : f32 to vector<2x32xf32>
    %598 = arith.addf %597, %596 : vector<2x32xf32>
    %599 = arith.divf %597, %598 : vector<2x32xf32>
    %600 = vector.extract_strided_slice %593 {offsets = [0, 32], sizes = [2, 32], strides = [1, 1]} : vector<2x128xf32> to vector<2x32xf32>
    %601 = arith.negf %600 : vector<2x32xf32>
    %602 = math.exp %601 : vector<2x32xf32>
    %cst_138 = arith.constant 1.000000e+00 : f32
    %603 = vector.broadcast %cst_138 : f32 to vector<2x32xf32>
    %604 = arith.addf %603, %602 : vector<2x32xf32>
    %605 = arith.divf %603, %604 : vector<2x32xf32>
    %606 = vector.extract_strided_slice %593 {offsets = [0, 64], sizes = [2, 32], strides = [1, 1]} : vector<2x128xf32> to vector<2x32xf32>
    %607 = math.tanh %606 : vector<2x32xf32>
    %608 = vector.extract_strided_slice %593 {offsets = [0, 96], sizes = [2, 32], strides = [1, 1]} : vector<2x128xf32> to vector<2x32xf32>
    %609 = arith.negf %608 : vector<2x32xf32>
    %610 = math.exp %609 : vector<2x32xf32>
    %cst_139 = arith.constant 1.000000e+00 : f32
    %611 = vector.broadcast %cst_139 : f32 to vector<2x32xf32>
    %612 = arith.addf %611, %610 : vector<2x32xf32>
    %613 = arith.divf %611, %612 : vector<2x32xf32>
    %614 = arith.mulf %605, %531 : vector<2x32xf32>
    %615 = arith.mulf %599, %607 : vector<2x32xf32>
    %616 = arith.addf %614, %615 : vector<2x32xf32>
    %617 = math.tanh %616 : vector<2x32xf32>
    %618 = arith.mulf %613, %617 : vector<2x32xf32>
    %619 = arith.addi %8, %c6_i32 : i32
    %620 = vector.broadcast %619 : i32 to vector<2x1xi32>
    %621 = arith.cmpi slt, %620, %3 : vector<2x1xi32>
    %622 = vector.shape_cast %621 : vector<2x1xi1> to vector<2x1xi1>
    %623 = vector.broadcast %622 : vector<2x1xi1> to vector<2x32xi1>
    %624 = arith.select %623, %618, %528 : vector<2x32xi1>, vector<2x32xf32>
    %625 = vector.shape_cast %621 : vector<2x1xi1> to vector<2x1xi1>
    %626 = vector.broadcast %625 : vector<2x1xi1> to vector<2x32xi1>
    %627 = arith.select %626, %616, %531 : vector<2x32xi1>, vector<2x32xf32>
    %cst_140 = arith.constant 0.000000e+00 : f32
    %628 = vector.shape_cast %621 : vector<2x1xi1> to vector<2x1xi1>
    %629 = vector.broadcast %628 : vector<2x1xi1> to vector<2x32xi1>
    %630 = vector.broadcast %cst_140 : f32 to vector<2x32xf32>
    %631 = arith.select %629, %618, %630 : vector<2x32xi1>, vector<2x32xf32>
    %632 = arith.index_cast %c6_i32 : i32 to index
    %c0_141 = arith.constant 0 : index
    %c0_142 = arith.constant 0 : index
    %633 = vector.load %arg5[%632, %c0_141, %c0_142] : memref<8x2x32xf32, #tpu.memory_space<vmem>>, vector<1x2x32xf32>
    %634 = vector.shape_cast %633 : vector<1x2x32xf32> to vector<2x32xf32>
    %635 = vector.shape_cast %631 : vector<2x32xf32> to vector<1x2x32xf32>
    tpu.vector_store %arg5[%632, %c0_141, %c0_142], %635 {strides = array<i32>} : memref<8x2x32xf32, #tpu.memory_space<vmem>>, vector<1x2x32xf32>,
    %c7_i32_143 = arith.constant 7 : i32
    %636 = arith.subi %c7_i32_143, %c6_i32 : i32
    %637 = arith.index_cast %636 : i32 to index
    %c0_144 = arith.constant 0 : index
    %c0_145 = arith.constant 0 : index
    %638 = vector.load %arg3[%637, %c0_144, %c0_145] : memref<8x2x128xf32, #tpu.memory_space<vmem>>, vector<1x2x128xf32>
    %639 = vector.shape_cast %638 : vector<1x2x128xf32> to vector<2x128xf32>
    %cst_146 = arith.constant dense<0.000000e+00> : vector<2x128xf32>
    %640 = tpu.matmul %577, %7, %cst_146 {dimension_numbers = #tpu.dot_dimension_numbers<[1], [0], [0], [1], [0, 0, 1, 1], [], []>} : vector<2x32xf32>, vector<32x128xf32>, vector<2x128xf32> -> vector<2x128xf32>
    %641 = arith.addf %639, %640 : vector<2x128xf32>
    %642 = vector.extract_strided_slice %641 {offsets = [0, 0], sizes = [2, 32], strides = [1, 1]} : vector<2x128xf32> to vector<2x32xf32>
    %643 = arith.negf %642 : vector<2x32xf32>
    %644 = math.exp %643 : vector<2x32xf32>
    %cst_147 = arith.constant 1.000000e+00 : f32
    %645 = vector.broadcast %cst_147 : f32 to vector<2x32xf32>
    %646 = arith.addf %645, %644 : vector<2x32xf32>
    %647 = arith.divf %645, %646 : vector<2x32xf32>
    %648 = vector.extract_strided_slice %641 {offsets = [0, 32], sizes = [2, 32], strides = [1, 1]} : vector<2x128xf32> to vector<2x32xf32>
    %649 = arith.negf %648 : vector<2x32xf32>
    %650 = math.exp %649 : vector<2x32xf32>
    %cst_148 = arith.constant 1.000000e+00 : f32
    %651 = vector.broadcast %cst_148 : f32 to vector<2x32xf32>
    %652 = arith.addf %651, %650 : vector<2x32xf32>
    %653 = arith.divf %651, %652 : vector<2x32xf32>
    %654 = vector.extract_strided_slice %641 {offsets = [0, 64], sizes = [2, 32], strides = [1, 1]} : vector<2x128xf32> to vector<2x32xf32>
    %655 = math.tanh %654 : vector<2x32xf32>
    %656 = vector.extract_strided_slice %641 {offsets = [0, 96], sizes = [2, 32], strides = [1, 1]} : vector<2x128xf32> to vector<2x32xf32>
    %657 = arith.negf %656 : vector<2x32xf32>
    %658 = math.exp %657 : vector<2x32xf32>
    %cst_149 = arith.constant 1.000000e+00 : f32
    %659 = vector.broadcast %cst_149 : f32 to vector<2x32xf32>
    %660 = arith.addf %659, %658 : vector<2x32xf32>
    %661 = arith.divf %659, %660 : vector<2x32xf32>
    %662 = arith.mulf %653, %580 : vector<2x32xf32>
    %663 = arith.mulf %647, %655 : vector<2x32xf32>
    %664 = arith.addf %662, %663 : vector<2x32xf32>
    %665 = math.tanh %664 : vector<2x32xf32>
    %666 = arith.mulf %661, %665 : vector<2x32xf32>
    %667 = arith.addi %8, %c6_i32 : i32
    %c7_i32_150 = arith.constant 7 : i32
    %668 = arith.subi %c7_i32_150, %667 : i32
    %669 = vector.broadcast %668 : i32 to vector<2x1xi32>
    %670 = arith.cmpi slt, %669, %3 : vector<2x1xi32>
    %671 = vector.shape_cast %670 : vector<2x1xi1> to vector<2x1xi1>
    %672 = vector.broadcast %671 : vector<2x1xi1> to vector<2x32xi1>
    %673 = arith.select %672, %666, %577 : vector<2x32xi1>, vector<2x32xf32>
    %674 = vector.shape_cast %670 : vector<2x1xi1> to vector<2x1xi1>
    %675 = vector.broadcast %674 : vector<2x1xi1> to vector<2x32xi1>
    %676 = arith.select %675, %664, %580 : vector<2x32xi1>, vector<2x32xf32>
    %cst_151 = arith.constant 0.000000e+00 : f32
    %677 = vector.shape_cast %670 : vector<2x1xi1> to vector<2x1xi1>
    %678 = vector.broadcast %677 : vector<2x1xi1> to vector<2x32xi1>
    %679 = vector.broadcast %cst_151 : f32 to vector<2x32xf32>
    %680 = arith.select %678, %666, %679 : vector<2x32xi1>, vector<2x32xf32>
    %681 = arith.index_cast %636 : i32 to index
    %c0_152 = arith.constant 0 : index
    %c0_153 = arith.constant 0 : index
    %682 = vector.load %arg6[%681, %c0_152, %c0_153] : memref<8x2x32xf32, #tpu.memory_space<vmem>>, vector<1x2x32xf32>
    %683 = vector.shape_cast %682 : vector<1x2x32xf32> to vector<2x32xf32>
    %684 = vector.shape_cast %680 : vector<2x32xf32> to vector<1x2x32xf32>
    tpu.vector_store %arg6[%681, %c0_152, %c0_153], %684 {strides = array<i32>} : memref<8x2x32xf32, #tpu.memory_space<vmem>>, vector<1x2x32xf32>,
    %c7_i32_154 = arith.constant 7 : i32
    %685 = arith.index_cast %c7_i32_154 : i32 to index
    %c0_155 = arith.constant 0 : index
    %c0_156 = arith.constant 0 : index
    %686 = vector.load %arg2[%685, %c0_155, %c0_156] : memref<8x2x128xf32, #tpu.memory_space<vmem>>, vector<1x2x128xf32>
    %687 = vector.shape_cast %686 : vector<1x2x128xf32> to vector<2x128xf32>
    %cst_157 = arith.constant dense<0.000000e+00> : vector<2x128xf32>
    %688 = tpu.matmul %624, %5, %cst_157 {dimension_numbers = #tpu.dot_dimension_numbers<[1], [0], [0], [1], [0, 0, 1, 1], [], []>} : vector<2x32xf32>, vector<32x128xf32>, vector<2x128xf32> -> vector<2x128xf32>
    %689 = arith.addf %687, %688 : vector<2x128xf32>
    %690 = vector.extract_strided_slice %689 {offsets = [0, 0], sizes = [2, 32], strides = [1, 1]} : vector<2x128xf32> to vector<2x32xf32>
    %691 = arith.negf %690 : vector<2x32xf32>
    %692 = math.exp %691 : vector<2x32xf32>
    %cst_158 = arith.constant 1.000000e+00 : f32
    %693 = vector.broadcast %cst_158 : f32 to vector<2x32xf32>
    %694 = arith.addf %693, %692 : vector<2x32xf32>
    %695 = arith.divf %693, %694 : vector<2x32xf32>
    %696 = vector.extract_strided_slice %689 {offsets = [0, 32], sizes = [2, 32], strides = [1, 1]} : vector<2x128xf32> to vector<2x32xf32>
    %697 = arith.negf %696 : vector<2x32xf32>
    %698 = math.exp %697 : vector<2x32xf32>
    %cst_159 = arith.constant 1.000000e+00 : f32
    %699 = vector.broadcast %cst_159 : f32 to vector<2x32xf32>
    %700 = arith.addf %699, %698 : vector<2x32xf32>
    %701 = arith.divf %699, %700 : vector<2x32xf32>
    %702 = vector.extract_strided_slice %689 {offsets = [0, 64], sizes = [2, 32], strides = [1, 1]} : vector<2x128xf32> to vector<2x32xf32>
    %703 = math.tanh %702 : vector<2x32xf32>
    %704 = vector.extract_strided_slice %689 {offsets = [0, 96], sizes = [2, 32], strides = [1, 1]} : vector<2x128xf32> to vector<2x32xf32>
    %705 = arith.negf %704 : vector<2x32xf32>
    %706 = math.exp %705 : vector<2x32xf32>
    %cst_160 = arith.constant 1.000000e+00 : f32
    %707 = vector.broadcast %cst_160 : f32 to vector<2x32xf32>
    %708 = arith.addf %707, %706 : vector<2x32xf32>
    %709 = arith.divf %707, %708 : vector<2x32xf32>
    %710 = arith.mulf %701, %627 : vector<2x32xf32>
    %711 = arith.mulf %695, %703 : vector<2x32xf32>
    %712 = arith.addf %710, %711 : vector<2x32xf32>
    %713 = math.tanh %712 : vector<2x32xf32>
    %714 = arith.mulf %709, %713 : vector<2x32xf32>
    %715 = arith.addi %8, %c7_i32_154 : i32
    %716 = vector.broadcast %715 : i32 to vector<2x1xi32>
    %717 = arith.cmpi slt, %716, %3 : vector<2x1xi32>
    %718 = vector.shape_cast %717 : vector<2x1xi1> to vector<2x1xi1>
    %719 = vector.broadcast %718 : vector<2x1xi1> to vector<2x32xi1>
    %720 = arith.select %719, %714, %624 : vector<2x32xi1>, vector<2x32xf32>
    %721 = vector.shape_cast %717 : vector<2x1xi1> to vector<2x1xi1>
    %722 = vector.broadcast %721 : vector<2x1xi1> to vector<2x32xi1>
    %723 = arith.select %722, %712, %627 : vector<2x32xi1>, vector<2x32xf32>
    %cst_161 = arith.constant 0.000000e+00 : f32
    %724 = vector.shape_cast %717 : vector<2x1xi1> to vector<2x1xi1>
    %725 = vector.broadcast %724 : vector<2x1xi1> to vector<2x32xi1>
    %726 = vector.broadcast %cst_161 : f32 to vector<2x32xf32>
    %727 = arith.select %725, %714, %726 : vector<2x32xi1>, vector<2x32xf32>
    %728 = arith.index_cast %c7_i32_154 : i32 to index
    %c0_162 = arith.constant 0 : index
    %c0_163 = arith.constant 0 : index
    %729 = vector.load %arg5[%728, %c0_162, %c0_163] : memref<8x2x32xf32, #tpu.memory_space<vmem>>, vector<1x2x32xf32>
    %730 = vector.shape_cast %729 : vector<1x2x32xf32> to vector<2x32xf32>
    %731 = vector.shape_cast %727 : vector<2x32xf32> to vector<1x2x32xf32>
    tpu.vector_store %arg5[%728, %c0_162, %c0_163], %731 {strides = array<i32>} : memref<8x2x32xf32, #tpu.memory_space<vmem>>, vector<1x2x32xf32>,
    %c7_i32_164 = arith.constant 7 : i32
    %732 = arith.subi %c7_i32_164, %c7_i32_154 : i32
    %733 = arith.index_cast %732 : i32 to index
    %c0_165 = arith.constant 0 : index
    %c0_166 = arith.constant 0 : index
    %734 = vector.load %arg3[%733, %c0_165, %c0_166] : memref<8x2x128xf32, #tpu.memory_space<vmem>>, vector<1x2x128xf32>
    %735 = vector.shape_cast %734 : vector<1x2x128xf32> to vector<2x128xf32>
    %cst_167 = arith.constant dense<0.000000e+00> : vector<2x128xf32>
    %736 = tpu.matmul %673, %7, %cst_167 {dimension_numbers = #tpu.dot_dimension_numbers<[1], [0], [0], [1], [0, 0, 1, 1], [], []>} : vector<2x32xf32>, vector<32x128xf32>, vector<2x128xf32> -> vector<2x128xf32>
    %737 = arith.addf %735, %736 : vector<2x128xf32>
    %738 = vector.extract_strided_slice %737 {offsets = [0, 0], sizes = [2, 32], strides = [1, 1]} : vector<2x128xf32> to vector<2x32xf32>
    %739 = arith.negf %738 : vector<2x32xf32>
    %740 = math.exp %739 : vector<2x32xf32>
    %cst_168 = arith.constant 1.000000e+00 : f32
    %741 = vector.broadcast %cst_168 : f32 to vector<2x32xf32>
    %742 = arith.addf %741, %740 : vector<2x32xf32>
    %743 = arith.divf %741, %742 : vector<2x32xf32>
    %744 = vector.extract_strided_slice %737 {offsets = [0, 32], sizes = [2, 32], strides = [1, 1]} : vector<2x128xf32> to vector<2x32xf32>
    %745 = arith.negf %744 : vector<2x32xf32>
    %746 = math.exp %745 : vector<2x32xf32>
    %cst_169 = arith.constant 1.000000e+00 : f32
    %747 = vector.broadcast %cst_169 : f32 to vector<2x32xf32>
    %748 = arith.addf %747, %746 : vector<2x32xf32>
    %749 = arith.divf %747, %748 : vector<2x32xf32>
    %750 = vector.extract_strided_slice %737 {offsets = [0, 64], sizes = [2, 32], strides = [1, 1]} : vector<2x128xf32> to vector<2x32xf32>
    %751 = math.tanh %750 : vector<2x32xf32>
    %752 = vector.extract_strided_slice %737 {offsets = [0, 96], sizes = [2, 32], strides = [1, 1]} : vector<2x128xf32> to vector<2x32xf32>
    %753 = arith.negf %752 : vector<2x32xf32>
    %754 = math.exp %753 : vector<2x32xf32>
    %cst_170 = arith.constant 1.000000e+00 : f32
    %755 = vector.broadcast %cst_170 : f32 to vector<2x32xf32>
    %756 = arith.addf %755, %754 : vector<2x32xf32>
    %757 = arith.divf %755, %756 : vector<2x32xf32>
    %758 = arith.mulf %749, %676 : vector<2x32xf32>
    %759 = arith.mulf %743, %751 : vector<2x32xf32>
    %760 = arith.addf %758, %759 : vector<2x32xf32>
    %761 = math.tanh %760 : vector<2x32xf32>
    %762 = arith.mulf %757, %761 : vector<2x32xf32>
    %763 = arith.addi %8, %c7_i32_154 : i32
    %c7_i32_171 = arith.constant 7 : i32
    %764 = arith.subi %c7_i32_171, %763 : i32
    %765 = vector.broadcast %764 : i32 to vector<2x1xi32>
    %766 = arith.cmpi slt, %765, %3 : vector<2x1xi32>
    %767 = vector.shape_cast %766 : vector<2x1xi1> to vector<2x1xi1>
    %768 = vector.broadcast %767 : vector<2x1xi1> to vector<2x32xi1>
    %769 = arith.select %768, %762, %673 : vector<2x32xi1>, vector<2x32xf32>
    %770 = vector.shape_cast %766 : vector<2x1xi1> to vector<2x1xi1>
    %771 = vector.broadcast %770 : vector<2x1xi1> to vector<2x32xi1>
    %772 = arith.select %771, %760, %676 : vector<2x32xi1>, vector<2x32xf32>
    %cst_172 = arith.constant 0.000000e+00 : f32
    %773 = vector.shape_cast %766 : vector<2x1xi1> to vector<2x1xi1>
    %774 = vector.broadcast %773 : vector<2x1xi1> to vector<2x32xi1>
    %775 = vector.broadcast %cst_172 : f32 to vector<2x32xf32>
    %776 = arith.select %774, %762, %775 : vector<2x32xi1>, vector<2x32xf32>
    %777 = arith.index_cast %732 : i32 to index
    %c0_173 = arith.constant 0 : index
    %c0_174 = arith.constant 0 : index
    %778 = vector.load %arg6[%777, %c0_173, %c0_174] : memref<8x2x32xf32, #tpu.memory_space<vmem>>, vector<1x2x32xf32>
    %779 = vector.shape_cast %778 : vector<1x2x32xf32> to vector<2x32xf32>
    %780 = vector.shape_cast %776 : vector<2x32xf32> to vector<1x2x32xf32>
    tpu.vector_store %arg6[%777, %c0_173, %c0_174], %780 {strides = array<i32>} : memref<8x2x32xf32, #tpu.memory_space<vmem>>, vector<1x2x32xf32>,
    %c8_i32_175 = arith.constant 8 : i32
    %c0_176 = arith.constant 0 : index
    %c0_177 = arith.constant 0 : index
    %781 = vector.load %arg7[%c0_176, %c0_177] : memref<2x32xf32, #tpu.memory_space<vmem>>, vector<2x32xf32>
    tpu.vector_store %arg7[%c0_176, %c0_177], %720 {strides = array<i32>} : memref<2x32xf32, #tpu.memory_space<vmem>>, vector<2x32xf32>,
    %c0_178 = arith.constant 0 : index
    %c0_179 = arith.constant 0 : index
    %782 = vector.load %arg8[%c0_178, %c0_179] : memref<2x32xf32, #tpu.memory_space<vmem>>, vector<2x32xf32>
    tpu.vector_store %arg8[%c0_178, %c0_179], %723 {strides = array<i32>} : memref<2x32xf32, #tpu.memory_space<vmem>>, vector<2x32xf32>,
    %c0_180 = arith.constant 0 : index
    %c0_181 = arith.constant 0 : index
    %783 = vector.load %arg9[%c0_180, %c0_181] : memref<2x32xf32, #tpu.memory_space<vmem>>, vector<2x32xf32>
    tpu.vector_store %arg9[%c0_180, %c0_181], %769 {strides = array<i32>} : memref<2x32xf32, #tpu.memory_space<vmem>>, vector<2x32xf32>,
    %c0_182 = arith.constant 0 : index
    %c0_183 = arith.constant 0 : index
    %784 = vector.load %arg10[%c0_182, %c0_183] : memref<2x32xf32, #tpu.memory_space<vmem>>, vector<2x32xf32>
    tpu.vector_store %arg10[%c0_182, %c0_183], %772 {strides = array<i32>} : memref<2x32xf32, #tpu.memory_space<vmem>>, vector<2x32xf32>,
    return
  }
  func.func @transform_0(%arg0: i32) -> (i32, i32) {
    %c0_i32 = arith.constant 0 : i32
    %c0_i32_0 = arith.constant 0 : i32
    %c0_i32_1 = arith.constant 0 : i32
    return %c0_i32, %c0_i32_0 : i32, i32
  }
  func.func @transform_1(%arg0: i32) -> (i32, i32, i32) {
    %c0_i32 = arith.constant 0 : i32
    %c0_i32_0 = arith.constant 0 : i32
    %c0_i32_1 = arith.constant 0 : i32
    return %arg0, %c0_i32, %c0_i32_0 : i32, i32, i32
  }
  func.func @transform_2(%arg0: i32) -> (i32, i32, i32) {
    %c0_i32 = arith.constant 0 : i32
    %0 = arith.subi %c0_i32, %arg0 : i32
    %c0_i32_0 = arith.constant 0 : i32
    %c1_i32 = arith.constant 1 : i32
    %c0_i32_1 = arith.constant 0 : i32
    return %0, %c0_i32_0, %c1_i32 : i32, i32, i32
  }
  func.func @transform_3(%arg0: i32) -> (i32, i32, i32) {
    %c0_i32 = arith.constant 0 : i32
    %c0_i32_0 = arith.constant 0 : i32
    %c0_i32_1 = arith.constant 0 : i32
    %c0_i32_2 = arith.constant 0 : i32
    return %c0_i32, %c0_i32_0, %c0_i32_1 : i32, i32, i32
  }
  func.func @transform_4(%arg0: i32) -> (i32, i32, i32) {
    %c0_i32 = arith.constant 0 : i32
    %c0_i32_0 = arith.constant 0 : i32
    %c0_i32_1 = arith.constant 0 : i32
    return %arg0, %c0_i32, %c0_i32_0 : i32, i32, i32
  }
  func.func @transform_5(%arg0: i32) -> (i32, i32, i32) {
    %c0_i32 = arith.constant 0 : i32
    %0 = arith.subi %c0_i32, %arg0 : i32
    %c0_i32_0 = arith.constant 0 : i32
    %c0_i32_1 = arith.constant 0 : i32
    %c0_i32_2 = arith.constant 0 : i32
    return %0, %c0_i32_0, %c0_i32_1 : i32, i32, i32
  }
}

</mosaic_0001>

<bundles_post_ra>
// kernel: tpu_custom_call.1
= control target key start
LH: loop header
LB: loop body
LE: loop exit
PB: predicated region body
PF: predicated region fallthrough
CT: control target
= control target key end

     0   :  { %7 = vsyncpa [#allocation3], 0  ;;  %s633_s0 = inlined_call_operand.hbm [shape: f32[2,8,128], index: 0, kind: input, shape index: {}]   ;;  %s634_s1 = inlined_call_operand.hbm [shape: f32[8,128], index: 1, kind: input, shape index: {}]   ;;  %s635_s2 = inlined_call_operand.hbm [shape: f32[2,8,128], index: 2, kind: output, shape index: {}]  }
   0x1   :  { %9 = vsyncpa [#allocation3 + $0x1], 0 }
   0x2   :  { %10 = vsyncpa [#allocation6], 0 }
   0x3   :  { %11 = vsyncpa [#allocation4], 0 }
   0x4   :  { %13 = vsyncpa [#allocation4 + $0x1], 0  ;;  %s495_s9 = smov 0   ;;  %s497_s10 = smov 0  }
   0x5   :  { %s499_s11 = smov 0   ;;  %s501_s12 = smov 0  }
   0x6 LB: > { %s516_s13 = sadd.s32 4294967295, %s477_s12   ;;  %s276_s14 = sadd.s32 4294967294, %s477_s12   ;;  %s477_s12 = sphi %s501_s12, %s645_s12   ;;  %s473_s11 = sphi %s499_s11, %s644_s11   ;;  %s469_s10 = sphi %s497_s10, %s643_s10   ;;  %s465_s9 = sphi %s495_s9, %s642_s9  }
   0x7   : > { %p39_p0 = scmp.ne.s32.totalorder %s469_s10, %s465_s9  ;;  %p40_p1 = scmp.eq.s32.totalorder %s516_s13, 0 }
   0x8   : > { %p84_p2 = scmp.eq.s32.totalorder %s516_s13, 1  ;;  %p90_p3 = scmp.eq.s32.totalorder %s276_s14, 1 }
   0x9   : > { %p525_p4 = por %p40_p1, %p39_p0  ;;  %p277_p5 = scmp.ge.s32.totalorder %s477_s12, 1 }
   0xa   : > { %p530_p6 = por %p90_p3, %p39_p0  ;;  %p97_p7 = scmp.lt.s32.totalorder %s477_s12, 3 }
   0xb   : > { %s109_s19 = sshll.u32 %s634_s1, 4  ;;  %s479_s21 = smov [#allocation5]   ;;  %s110_s19 = int_to_ptr.hbm [resolvable:$true] %s109_s19 }
   0xc   : > { %p538_p8 = pnand %p277_p5, %p97_p7  ;;  %s111_s22 = sshll.u32 %s479_s21, 4  ;;  %s112_s22 = int_to_ptr.vmem [resolvable:$true] %s111_s22 }
   0xd   : > { %s548_s23 = sadd.s32 1, %s477_s12   ;;  %s26_s24 = sadd.s32 1, %s473_s11 }
   0xe   : > { %p298_p10 = pneg %p538_p8  ;;  %s23_s25 = ssub.s32 %s477_s12, %s548_s23 }
   0xf   : > { %p24_p12 = scmp.eq.s32.totalorder %s23_s25, 0  ;;  %p33_p13 = scmp.ne.s32.totalorder %s473_s11, %s469_s10 }
  0x10   : > { %p299_p11 = pnand %p298_p10, %p40_p1  ;;  %p34_p0 = scmp.eq.s32.totalorder %s477_s12, 0 }
  0x11   : > { %s557_s26 = scalar_select %p24_p12, %s473_s11, %s26_s24  }
  0x12   : > { %301 = dma.hbm_to_vmem [thread:$0]  (!%p299_p11), %s110_s19, 128, %s112_s22, [#allocation6]  }
  0x13   : > { %p561_p3 = por %p84_p2, %p33_p13  ;;  %p311_p5 = scmp.lt.s32.totalorder %s477_s12, 2 }
  0x14   : > { %s122_s28 = sand.u32 1, %s473_s11   ;;  %s281_s29 = sshll.u32 %s477_s12, 3 }
  0x15   : > { %p35_p7 = por %p34_p0, %p33_p13  ;;  %s280_s30 = sshll.u32 %s122_s28, 3 }
  0x16   : > { %s130_s5 = scalar_lea.hbm %s633_s0, %s281_s29  ;;  %s126_s7 = scalar_lea.vmem [#allocation2], %s280_s30 }
  0x17   : > { %s132_s6 = sshll.u32 %s130_s5, 4  ;;  %s134_s8 = sshll.u32 %s126_s7, 4  ;;  %s133_s6 = int_to_ptr.hbm [resolvable:$true] %s132_s6  ;;  %s135_s8 = int_to_ptr.vmem [resolvable:$true] %s134_s8 }
  0x18   : > { %p571_p10 = pnand %p311_p5, %p35_p7  ;;  %s123_s17 = scalar_lea.sflag [#allocation3], %s122_s28 }
  0x19   : > { %s377_s18 = sshra.s32 %s133_s6, 4  ;;  %s384_s24 = scalar_lea.hbm %s633_s0, 16  ;;  %s378_s18 = int_to_ptr.hbm [resolvable:$true] %s377_s18 }
  0x1a   : > { %s379_s19 = scalar_lea.hbm %s378_s18, 8  ;;  %p381_p11 = pneg %p571_p10 }
  0x1b   : > { %p380_p2 = scmp.ne.s32.totalorder %s378_s18, %s379_s19  ;;  %p385_p0 = scmp.lt.s32.totalorder %s378_s18, %s633_s0 }
  0x1c   : > { %p386_p5 = scmp.lt.s32.totalorder %s384_s24, %s379_s19 }
  0x1d   : > { %p382_p12 = pnand %p381_p11, %p380_p2 }
  0x1e   : > { %p387_p7 = por %p386_p5, %p385_p0 }
  0x1f   : > { %p383_p13 = pneg %p382_p12 }
  0x21   : > { %p388_p9 = pnand %p387_p7, %p383_p13 }
  0x23   : > { %391 = shalt.err (!%p388_p9)
}
  0x24   : > { %305 = dma.hbm_to_vmem [thread:$0]  (!%p571_p10), %s133_s6, 128, %s135_s8, %s123_s17  }
  0x25   : > { %143 = sbr.rel (%p538_p8) target bundleno = 60 (0x3c), region = 28  ;;  %s588_s28 = sand.u32 (!%p538_p8), 1, %s469_s10  }
  0x26   : > { %s283_s30 = sshll.u32 (!%p538_p8), %s588_s28, 3  ;;  %s146_s3 = scalar_lea.sflag (!%p538_p8), [#allocation3], %s588_s28 }
  0x27   : > { %s149_s4 = scalar_lea.vmem (!%p538_p8), [#allocation2], %s283_s30 }
  0x2a   : > { %452 = dma.done.wait (%p525_p4), %s146_s3, 128  }
  0x2b   : > { %454 = vsyncadd (%p525_p4), %s146_s3, 4294967168 }
  0x2c   : > { %456 = dma.done.wait (%p40_p1), [#allocation6], 128  }
  0x2d   : > { %458 = vsyncadd (%p40_p1), [#allocation6], 4294967168  ;;  %s287_s20 = sshll.u32 %s516_s13, 3  ;;  %s175_s8 = scalar_lea.vmem [#allocation7], %s283_s30  ;;  %v176_v0 = vld [vmem:[%s149_s4] sm:$0xff]  ;;  %v177_v1 = vld [vmem:[#allocation5] sm:$0xff] }
  0x2e   : > { %s191_s7 = scalar_lea.hbm %s635_s2, %s287_s20  ;;  %s193_s14 = sshll.u32 %s175_s8, 4  ;;  %v178_v2 = vadd.f32 %v177_v1, %v176_v0  ;;  %s194_s14 = int_to_ptr.vmem [resolvable:$true] %s193_s14 }
  0x2f   : > { %s195_s17 = sshll.u32 %s191_s7, 4  ;;  %s181_s15 = scalar_lea.sflag [#allocation4], %s588_s28  ;;  %s196_s17 = int_to_ptr.hbm [resolvable:$true] %s195_s17 }
  0x30   : > { %179 = vst [vmem:[%s175_s8] sm:$0xff] %v178_v2  ;;  %s421_s18 = sshra.s32 %s196_s17, 4  ;;  %s427_s22 = scalar_lea.hbm %s635_s2, 16  ;;  %s422_s18 = int_to_ptr.hbm [resolvable:$true] %s421_s18 }
  0x31   : > { %s423_s19 = scalar_lea.hbm %s422_s18, 8  ;;  %p428_p9 = scmp.lt.s32.totalorder %s422_s18, %s635_s2 }
  0x32   : > { %p424_p1 = scmp.ne.s32.totalorder %s422_s18, %s423_s19  ;;  %p429_p10 = scmp.lt.s32.totalorder %s427_s22, %s423_s19 }
  0x34   : > { %p425_p4 = pnand %p424_p1, %p561_p3  ;;  %p430_p2 = por %p429_p10, %p428_p9 }
  0x36   : > { %p426_p8 = pneg %p425_p4 }
  0x38   : > { %p431_p11 = pnand %p430_p2, %p426_p8 }
  0x3a   : > { %434 = shalt.err (!%p431_p11)
}
  0x3b   : > { %296 = dma.vmem_to_hbm [thread:$0]  (%p561_p3), %s194_s14, 128, %s196_s17, %s181_s15  }
  0x3c PF: > { %s207_s29 = sand.u32 1, %s465_s9   ;;  %p641_p12 = scmp.ge.s32.totalorder %s477_s12, 2 }
  0x3d   : > { %s208_s28 = scalar_lea.sflag [#allocation4], %s207_s29 }
  0x3e   : > { %p307_p13 = pnand %p641_p12, %p530_p6 }
  0x40   : > { %p308_p0 = pneg %p307_p13 }
  0x42   : > { %460 = dma.done.wait (%p308_p0), %s208_s28, 128  }
  0x43   : > { %462 = vsyncadd (%p308_p0), %s208_s28, 4294967168  ;;  %p16_p5 = scmp.ge.s32.totalorder %s548_s23, 4   ;;  %s642_s9 = smov %s469_s10 }
  0x44   : > { %s643_s10 = smov %s473_s11  ;;  %s644_s11 = smov %s557_s26 }
  0x45   : > { %s645_s12 = smov %s548_s23  ;;  %18 = sbr.rel (!%p16_p5) target bundleno = 6 (0x6), region = 77 }
  0x4a   :  { %214 = vsyncpa [#allocation3], 1 }
  0x4b   :  { %216 = vsyncpa [#allocation3 + $0x1], 1 }
  0x4c   :  { %217 = vsyncpa [#allocation6], 1 }
  0x4d   :  { %218 = vsyncpa [#allocation4], 1 }
  0x4e   :  { %220 = vsyncpa [#allocation4 + $0x1], 1 }

// kernel: stacked_shortcut_lstm.3
= control target key start
LH: loop header
LB: loop body
LE: loop exit
PB: predicated region body
PF: predicated region fallthrough
CT: control target
= control target key end

     0   :  { %s2598_s0 = inlined_call_operand.vmem [shape: s32[2,1], index: 0, kind: input, shape index: {}]   ;;  %s2599_s1 = inlined_call_operand.vmem [shape: f32[8,2,256], index: 1, kind: input, shape index: {}, may-alias: {1,2}]   ;;  %s2600_s2 = inlined_call_operand.vmem [shape: f32[8,2,256], index: 2, kind: input, shape index: {}, may-alias: {1,2}]   ;;  %s2601_s3 = inlined_call_operand.hbm [shape: f32[2,32,128], index: 3, kind: input, shape index: {}]   ;;  %s2602_s4 = inlined_call_operand.vmem [shape: f32[8,2,32], index: 4, kind: output, shape index: {0}]   ;;  %s2603_s5 = inlined_call_operand.vmem [shape: f32[8,2,32], index: 5, kind: output, shape index: {1}]  }
   0x1   :  { %v32_v0 = vld [vmem:[%s2599_s1] sm:$0x3]  ;;  %v34_v1 = vld [vmem:[%s2599_s1 + $0x4] sm:$0x3]  ;;  %v36_v2 = vld [vmem:[%s2599_s1 + $0x8] sm:$0x3] }
   0x2   :  { %33 = vst [vmem:[#allocation6] sm:$0x3] %v32_v0  ;;  %v38_v3 = vld [vmem:[%s2599_s1 + $0xc] sm:$0x3]  ;;  %v40_v4 = vld [vmem:[%s2599_s1 + $0x10] sm:$0x3] }
   0x3   :  { %35 = vst [vmem:[#allocation6 + $0x2] sm:$0x3] %v34_v1  ;;  %v42_v5 = vld [vmem:[%s2599_s1 + $0x14] sm:$0x3]  ;;  %v44_v6 = vld [vmem:[%s2599_s1 + $0x18] sm:$0x3] }
   0x4   :  { %37 = vst [vmem:[#allocation6 + $0x4] sm:$0x3] %v36_v2  ;;  %v46_v7 = vld [vmem:[%s2599_s1 + $0x1c] sm:$0x3]  ;;  %v1605_v8 = vld [vmem:[%s2600_s2 + $0x2] sm:$0x3] }
   0x5   :  { %39 = vst [vmem:[#allocation6 + $0x6] sm:$0x3] %v38_v3  ;;  %v1606_v9 = vld [vmem:[%s2600_s2 + $0x6] sm:$0x3]  ;;  %v1607_v10 = vld [vmem:[%s2600_s2 + $0xa] sm:$0x3] }
   0x6   :  { %41 = vst [vmem:[#allocation6 + $0x8] sm:$0x3] %v40_v4 }
   0x7   :  { %43 = vst [vmem:[#allocation6 + $0xa] sm:$0x3] %v42_v5 }
   0x8   :  { %45 = vst [vmem:[#allocation6 + $0xc] sm:$0x3] %v44_v6 }
   0x9   :  { %11 = vsyncpa [#allocation9], 0  ;;  %47 = vst [vmem:[#allocation6 + $0xe] sm:$0x3] %v46_v7  ;;  %v1608_v11 = vld [vmem:[%s2600_s2 + $0xe] sm:$0x3] }
   0xa   :  { %s166_s18 = sshll.u32 %s2601_s3, 4  ;;  %110 = vst [vmem:[#allocation7] sm:$0x3] %v1605_v8  ;;  %v1609_v12 = vld [vmem:[%s2600_s2 + $0x12] sm:$0x3]  ;;  %s1840_s21 = smov [#allocation8]   ;;  %s167_s18 = int_to_ptr.hbm [resolvable:$true] %s166_s18 }
   0xb   :  { %s168_s22 = sshll.u32 %s1840_s21, 4  ;;  %112 = vst [vmem:[#allocation7 + $0x2] sm:$0x3] %v1606_v9  ;;  %v1610_v13 = vld [vmem:[%s2600_s2 + $0x16] sm:$0x3]  ;;  %s1841_s3 = smov 128   ;;  %s169_s22 = int_to_ptr.vmem [resolvable:$true] %s168_s22 }
   0xc   :  { %114 = vst [vmem:[#allocation7 + $0x4] sm:$0x3] %v1607_v10  ;;  %v1611_v14 = vld [vmem:[%s2600_s2 + $0x1a] sm:$0x3]  ;;  %s1842_s27 = smov 8  }
   0xd   :  { %116 = vst [vmem:[#allocation7 + $0x6] sm:$0x3] %v1608_v11  ;;  %174 = dma.hbm_to_vmem [thread:$0]  %s167_s18, 1024, %s169_s22, [#allocation9], %s1841_s3, %s1841_s3, %s1842_s27  }
   0xe   :  { %118 = vst [vmem:[#allocation7 + $0x8] sm:$0x3] %v1609_v12  ;;  %v1612_v15 = vld [vmem:[%s2600_s2 + $0x1e] sm:$0x3] }
   0xf   :  { %120 = vst [vmem:[#allocation7 + $0xa] sm:$0x3] %v1610_v13 }
  0x10   :  { %122 = vst [vmem:[#allocation7 + $0xc] sm:$0x3] %v1611_v14 }
  0x11   :  { %124 = vst [vmem:[#allocation7 + $0xe] sm:$0x3] %v1612_v15 }
  0x12   :  { %1838 = dma.done.wait [#allocation9], 1024  }
  0x13   :  { %1839 = vsyncadd [#allocation9], 4294966272  ;;  %vm203_vm0 = vcmask 254976   ;;  %v1843_v16 = vmov 0.0   ;;  %v1933_v17 = vld [vmem:[#allocation8 + $0x18] sm:$0xff]  ;;  %v1937_v19 = vld [vmem:[#allocation8 + $0x10] sm:$0xff] }
  0x14   :  { %204 = vst.msk [vmem:[#allocation2] sm:$0x3] %vm203_vm0, %v1843_v16  ;;  %v1935_v18 = vld [vmem:[#allocation8 + $0x38] sm:$0xff]  ;;  %240 = vmatpush.msra.mxu0 %v1933_v17  ;;  %v1941_v20 = vld [vmem:[#allocation8 + $0x30] sm:$0xff]  ;;  %v1943_v21 = vld [vmem:[#allocation8 + $0x8] sm:$0xff]  ;;  %415 = vmatpush.msra.mxu2 %v1933_v17  ;;  %s1844_s2 = smov 32  }
  0x15   :  { %205 = vst.msk [vmem:[#allocation3] sm:$0x3] %vm203_vm0, %v1843_v16  ;;  %326 = vmatpush.msra.mxu1 %v1935_v18  ;;  %v1945_v22 = vld [vmem:[#allocation8 + $0x28] sm:$0xff]  ;;  %497 = vmatpush.msra.mxu3 %v1935_v18  ;;  %v1951_v24 = vld [vmem:[#allocation8] sm:$0xff]  ;;  %vm224_vm1 = vcmask 261120   ;;  %s1845_s30 = smov 64  }
  0x16   :  { %206 = vst.msk [vmem:[#allocation4] sm:$0x3] %vm203_vm0, %v1843_v16  ;;  %241 = vmatpush.msra.mxu0 %v1937_v19  ;;  %v1953_v25 = vld [vmem:[#allocation8 + $0x20] sm:$0xff]  ;;  %416 = vmatpush.msra.mxu2 %v1937_v19  ;;  %v1846_v44 = vmov 0   ;;  %v2008_v4 = vld [vmem:[%s2598_s0] sm:$0x3] }
  0x17   :  { %207 = vst.msk [vmem:[#allocation5] sm:$0x3] %vm203_vm0, %v1843_v16  ;;  %327 = vmatpush.msra.mxu1 %v1941_v20  ;;  %498 = vmatpush.msra.mxu3 %v1941_v20  ;;  %v223_v29 = vld [vmem:[#allocation6] sm:$0x3]  ;;  %vm1615_vm10 = vcmp.gt.s32.totalorder %v2008_v4, 0  ;;  %s1847_s8 = smov 96  }
  0x18   :  { %242 = vmatpush.msra.mxu0 %v1943_v21  ;;  %417 = vmatpush.msra.mxu2 %v1943_v21  ;;  %v310_v32 = vld [vmem:[#allocation7 + $0xe] sm:$0x3]  ;;  %v2013_v5 = vsel %vm1615_vm10, 1, %v1846_v44  ;;  %vm1618_vm11 = vcmp.gt.s32.totalorder %v2008_v4, 7 }
  0x19   :  { %328 = vmatpush.msra.mxu1 %v1945_v22  ;;  %499 = vmatpush.msra.mxu3 %v1945_v22  ;;  %v2033_v15 = vsel %vm1618_vm11, 1, %v1846_v44 }
  0x1a   :  { %243 = vmatpush.msra.mxu0 %v1951_v24  ;;  %418 = vmatpush.msra.mxu2 %v1951_v24 }
  0x1b   :  { %v1959_v26 = vld [vmem:[#allocation2] sm:$0x3]  ;;  %329 = vmatpush.msra.mxu1 %v1953_v25  ;;  %500 = vmatpush.msra.mxu3 %v1953_v25 }
  0x1c   :  { %v220_v23 = vld [vmem:[#allocation3] sm:$0x3]  ;;  %1613 = vmatmul.msk.f32.vlgmr.msra.gmra.mxu0 %vm224_vm1, %v1959_v26  ;;  %743 = vmatpush.msrb.mxu2 %v1933_v17 }
  0x1d   :  { %270 = vrot.lane.b32.xlu1 %v220_v23, %s1844_s2  ;;  %v1961_v27 = vld [vmem:[#allocation4] sm:$0x3]  ;;  %579 = vmatpush.msrb.mxu0 %v1933_v17 }
  0x1e   :  { %1616 = vmatmul.msk.f32.vlgmr.msra.gmra.mxu1 %vm224_vm1, %v1961_v27  ;;  %v222_v28 = vld [vmem:[#allocation5] sm:$0x3]  ;;  %825 = vmatpush.msrb.mxu3 %v1935_v18 }
  0x1f   :  { %661 = vmatpush.msrb.mxu1 %v1935_v18  ;;  %580 = vmatpush.msrb.mxu0 %v1937_v19 }
  0x20   :  { %826 = vmatpush.msrb.mxu3 %v1941_v20  ;;  %744 = vmatpush.msrb.mxu2 %v1937_v19 }
  0x21   :  { %662 = vmatpush.msrb.mxu1 %v1941_v20  ;;  %581 = vmatpush.msrb.mxu0 %v1943_v21 }
  0x22   :  { %827 = vmatpush.msrb.mxu3 %v1945_v22  ;;  %745 = vmatpush.msrb.mxu2 %v1943_v21 }
  0x23   :  { %663 = vmatpush.msrb.mxu1 %v1945_v22  ;;  %582 = vmatpush.msrb.mxu0 %v1951_v24 }
  0x24   :  { %828 = vmatpush.msrb.mxu3 %v1953_v25  ;;  %746 = vmatpush.msrb.mxu2 %v1951_v24 }
  0x25   :  { %356 = vrot.lane.b32.xlu1 %v222_v28, %s1844_s2  ;;  %664 = vmatpush.msrb.mxu1 %v1953_v25 }
  0x26   :  { %907 = vmatpush.msra.mxu0 %v1933_v17  ;;  %1683 = vset.pattern.permute.xlu2 %v1846_v44 }
  0x27   :  { %989 = vmatpush.msra.mxu1 %v1935_v18  ;;  %1684 = vset.pattern.permute.xlu0 %v1846_v44 }
  0x28   :  { %908 = vmatpush.msra.mxu0 %v1937_v19  ;;  %1685 = vset.pattern.permute.xlu1 %v1846_v44 }
  0x29   :  { %990 = vmatpush.msra.mxu1 %v1941_v20 }
  0x2a   :  { %909 = vmatpush.msra.mxu0 %v1943_v21 }
  0x2b   :  { %991 = vmatpush.msra.mxu1 %v1945_v22 }
  0x2c   :  { %910 = vmatpush.msra.mxu0 %v1951_v24 }
  0x2d   :  { %992 = vmatpush.msra.mxu1 %v1953_v25 }
  0x8f   :  { %v2018_v6 = vpop.permute.xlu1 %270 }
  0x97   :  { %v2024_v10 = vpop.permute.xlu1 %356 }
  0x99   :  { %v245_v30 = vpop.f32.mrf.mxu0 }
  0x9a   :  { %v248_v31 = vadd.f32 %v245_v30, %v223_v29 }
  0x9b   :  { %v331_v33 = vpop.f32.mrf.mxu1 }
  0x9c   :  { %1686 = vtanh.f32 %v248_v31  ;;  %v334_v34 = vadd.f32 %v331_v33, %v310_v32  ;;  %v1614_v37 = vmul.f32 -1.442695, %v248_v31 }
  0x9e   :  { %1688 = vtanh.f32 %v334_v34  ;;  %v1617_v38 = vmul.f32 -1.442695, %v334_v34 }
  0x9f   :  { %1690 = vpow2.f32 %v1614_v37 }
  0xa0   :  { %1692 = vpow2.f32 %v1617_v38  ;;  %v479_v38 = vld [vmem:[#allocation7 + $0xc] sm:$0x3] }
  0xa2   :  { %v1687_v35 = vpop.eup %1686 }
  0xa3   :  { %275 = vrot.lane.b32.xlu0 %v1687_v35, %s1845_s30 }
  0xa4   :  { %v1689_v36 = vpop.eup %1688 }
  0xa5   :  { %v1691_v39 = vpop.eup %1690 }
  0xa6   :  { %v252_v40 = vadd.f32 1.0, %v1691_v39  ;;  %v1693_v41 = vpop.eup %1692 }
  0xa7   :  { %v338_v42 = vadd.f32 1.0, %v1693_v41 }
  0xa8   :  { %1694 = vrcp.f32 %v252_v40  ;;  %v264_v52 = vand.u32 2147483648, %v252_v40  ;;  %vm258_vm3 = vweird.f32 %v252_v40  ;;  %v262_v53 = vand.u32 2147483647, %v252_v40 }
  0xa9   :  { %1696 = vrcp.f32 %v338_v42  ;;  %vm344_vm6 = vweird.f32 %v338_v42  ;;  %v350_v61 = vand.u32 2147483648, %v338_v42  ;;  %v348_v62 = vand.u32 2147483647, %v338_v42 }
  0xaa   :  { %v265_v56 = vor.u32 1.1754944e-38, %v264_v52  ;;  %vm263_vm5 = vcmp.eq.f32.partialorder %v262_v53, 8.507059e+37 }
  0xab   :  { %361 = vrot.lane.b32.xlu0 %v1689_v36, %s1845_s30  ;;  %v351_v0 = vor.u32 1.1754944e-38, %v350_v61  ;;  %vm349_vm9 = vcmp.eq.f32.partialorder %v348_v62, 8.507059e+37 }
  0xae   :  { %v1695_v43 = vpop.eup %1694 }
  0xaf   :  { %v254_v45 = vmul.f32 %v1695_v43, %v252_v40  ;;  %v1697_v47 = vpop.eup %1696  ;;  %vm259_vm2 = vweird.f32 %v1695_v43 }
  0xb0   :  { %v340_v49 = vmul.f32 %v1697_v47, %v338_v42  ;;  %vm260_vm4 = vmor %vm258_vm3, %vm259_vm2  ;;  %vm345_vm7 = vweird.f32 %v1697_v47  ;;  %v397_v42 = vld [vmem:[#allocation6 + $0x2] sm:$0x3] }
  0xb1   :  { %v255_v46 = vsub.f32 1.0, %v254_v45  ;;  %vm346_vm8 = vmor %vm344_vm6, %vm345_vm7 }
  0xb2   :  { %v341_v51 = vsub.f32 1.0, %v340_v49 }
  0xb3   :  { %v256_v48 = vmul.f32 %v1695_v43, %v255_v46 }
  0xb4   :  { %v342_v55 = vmul.f32 %v1697_v47, %v341_v51 }
  0xb5   :  { %v257_v50 = vadd.f32 %v1695_v43, %v256_v48 }
  0xb6   :  { %v343_v59 = vadd.f32 %v1697_v47, %v342_v55 }
  0xb7   :  { %v261_v54 = vsel %vm260_vm4, %v1695_v43, %v257_v50  ;;  %vm1622_vm4 = vcmp.gt.s32.totalorder %v2008_v4, 1 }
  0xb8   :  { %v266_v57 = vsel %vm263_vm5, %v265_v56, %v261_v54  ;;  %v347_v63 = vsel %vm346_vm8, %v1697_v47, %v343_v59 }
  0xb9   :  { %v352_v1 = vsel %vm349_vm9, %v351_v0, %v347_v63  ;;  %v273_v7 = vmul.f32 %v2018_v6, %v266_v57  ;;  %vm1626_vm9 = vcmp.gt.s32.totalorder %v2008_v4, 6 }
  0xba   :  { %v359_v11 = vmul.f32 %v2024_v10, %v352_v1 }
 0x115   :  { %v276_v58 = vpop.permute.xlu0 %275 }
 0x116   :  { %v278_v60 = vmul.f32 %v276_v58, %v266_v57 }
 0x118   :  { %280 = vrot.lane.b32.xlu2 %v278_v60, %s1844_s2 }
 0x11d   :  { %v362_v2 = vpop.permute.xlu0 %361 }
 0x11e   :  { %v364_v3 = vmul.f32 %v362_v2, %v352_v1  ;;  %v2079_v2 = vsel %vm1622_vm4, 1, %v1846_v44 }
 0x120   :  { %366 = vrot.lane.b32.xlu2 %v364_v3, %s1844_s2 }
 0x128   :  { %294 = vperm.xlu2 %1683, %v2013_v5  }
 0x130   :  { %384 = vrot.lane.b32.xlu2 %v1961_v27, %s1847_s8 }
 0x172   :  { %v281_v8 = vpop.permute.xlu2 %280 }
 0x173   :  { %v2021_v9 = vadd.f32 %v281_v8, %v273_v7 }
 0x175   :  { %1698 = vtanh.f32 %v2021_v9 }
 0x17a   :  { %v367_v12 = vpop.permute.xlu2 %366 }
 0x17b   :  { %v1699_v13 = vpop.eup %1698  ;;  %v2027_v14 = vadd.f32 %v367_v12, %v359_v11 }
 0x17c   :  { %286 = vrot.lane.b32.xlu0 %v1699_v13, %s1845_s30 }
 0x17d   :  { %1700 = vtanh.f32 %v2027_v14 }
 0x182   :  { %v2039_v23 = vpop.permute.xlu2 %294 }
 0x183   :  { %v1701_v16 = vpop.eup %1700  ;;  %vm296_vm13 = vcmp.eq.s32.totalorder %v2039_v23, 1 }
 0x184   :  { %372 = vrot.lane.b32.xlu1 %v1701_v16, %s1845_s30  ;;  %381 = vperm.xlu0 %1684, %v2033_v15  }
 0x18a   :  { %v385_v28 = vpop.permute.xlu2 %384 }
 0x18c   :  { %297 = vrot.lane.b32.xlu1 %v1959_v26, %s1847_s8 }
 0x1ee   :  { %v287_v27 = vpop.permute.xlu0 %286 }
 0x1ef   :  { %v2054_v26 = vmul.f32 %v287_v27, %v266_v57 }
 0x1f6   :  { %v373_v29 = vpop.permute.xlu1 %372  ;;  %v2041_v30 = vpop.permute.xlu0 %381 }
 0x1f7   :  { %v375_v31 = vmul.f32 %v373_v29, %v352_v1  ;;  %vm383_vm12 = vcmp.eq.s32.totalorder %v2041_v30, 1  ;;  %v2107_v30 = vsel %vm1626_vm9, 1, %v1846_v44 }
 0x1f9   :  { %v2046_v32 = vsel %vm383_vm12, %v375_v31, %v385_v28  ;;  %v2050_v33 = vsel %vm383_vm12, %v375_v31, 0.0 }
 0x1fa   :  { %481 = vrot.lane.b32.xlu2 %v2046_v32, %s1844_s2 }
 0x1fe   :  { %v298_v34 = vpop.permute.xlu1 %297 }
 0x1ff   :  { %v2060_v35 = vsel %vm296_vm13, %v2054_v26, %v298_v34  ;;  %v2087_v34 = vsel %vm383_vm12, %v2027_v14, %v2024_v10 }
 0x200   :  { %399 = vrot.lane.b32.xlu1 %v2060_v35, %s1844_s2 }
 0x254   :  { %v482_v36 = vpop.permute.xlu2 %481 }
 0x255   :  { %1624 = vmatmul.msk.f32.vlgmr.msra.gmra.mxu3 %vm224_vm1, %v482_v36 }
 0x256   :  { %1153 = vmatpush.msra.mxu3 %v1935_v18 }
 0x258   :  { %1154 = vmatpush.msra.mxu3 %v1941_v20 }
 0x25a   :  { %1155 = vmatpush.msra.mxu3 %v1945_v22 }
 0x25c   :  { %1156 = vmatpush.msra.mxu3 %v1953_v25 }
 0x272   :  { %v400_v37 = vpop.permute.xlu1 %399 }
 0x273   :  { %1620 = vmatmul.msk.f32.vlgmr.msra.gmra.mxu2 %vm224_vm1, %v400_v37 }
 0x274   :  { %1071 = vmatpush.msra.mxu2 %v1933_v17 }
 0x276   :  { %1072 = vmatpush.msra.mxu2 %v1937_v19 }
 0x278   :  { %1073 = vmatpush.msra.mxu2 %v1943_v21 }
 0x27a   :  { %1074 = vmatpush.msra.mxu2 %v1951_v24 }
 0x2d8   :  { %v502_v39 = vpop.f32.mrf.mxu3 }
 0x2d9   :  { %v505_v40 = vadd.f32 %v502_v39, %v479_v38  ;;  %v2097_v39 = vsel %vm296_vm13, %v2021_v9, %v2018_v6 }
 0x2db   :  { %1702 = vtanh.f32 %v505_v40  ;;  %v1625_v47 = vmul.f32 -1.442695, %v505_v40 }
 0x2e1   :  { %v1703_v41 = vpop.eup %1702 }
 0x2e2   :  { %528 = vrot.lane.b32.xlu1 %v1703_v41, %s1845_s30 }
 0x2f6   :  { %v420_v43 = vpop.f32.mrf.mxu2 }
 0x2f7   :  { %v423_v45 = vadd.f32 %v420_v43, %v397_v42 }
 0x2f9   :  { %1704 = vtanh.f32 %v423_v45  ;;  %v1621_v52 = vmul.f32 -1.442695, %v423_v45 }
 0x2fa   :  { %1706 = vpow2.f32 %v1625_v47 }
 0x2ff   :  { %v1705_v46 = vpop.eup %1704 }
 0x300   :  { %446 = vrot.lane.b32.xlu0 %v1705_v46, %s1845_s30  ;;  %v1707_v48 = vpop.eup %1706 }
 0x301   :  { %v509_v49 = vadd.f32 1.0, %v1707_v48 }
 0x303   :  { %1708 = vrcp.f32 %v509_v49  ;;  %v521_v56 = vand.u32 2147483648, %v509_v49  ;;  %vm515_vm15 = vweird.f32 %v509_v49  ;;  %v519_v58 = vand.u32 2147483647, %v509_v49 }
 0x304   :  { %1710 = vpow2.f32 %v1621_v52 }
 0x305   :  { %v522_v61 = vor.u32 1.1754944e-38, %v521_v56  ;;  %vm520_vm3 = vcmp.eq.f32.partialorder %v519_v58, 8.507059e+37 }
 0x309   :  { %v1709_v50 = vpop.eup %1708 }
 0x30a   :  { %v511_v51 = vmul.f32 %v1709_v50, %v509_v49  ;;  %vm516_vm14 = vweird.f32 %v1709_v50  ;;  %v1711_v57 = vpop.eup %1710 }
 0x30b   :  { %vm517_vm2 = vmor %vm515_vm15, %vm516_vm14  ;;  %v427_v60 = vadd.f32 1.0, %v1711_v57 }
 0x30c   :  { %v512_v53 = vsub.f32 1.0, %v511_v51  ;;  %v561_v51 = vld [vmem:[#allocation6 + $0x4] sm:$0x3] }
 0x30d   :  { %1712 = vrcp.f32 %v427_v60  ;;  %v439_v12 = vand.u32 2147483648, %v427_v60  ;;  %vm433_vm6 = vweird.f32 %v427_v60  ;;  %v437_v13 = vand.u32 2147483647, %v427_v60 }
 0x30e   :  { %v513_v54 = vmul.f32 %v1709_v50, %v512_v53 }
 0x30f   :  { %v440_v27 = vor.u32 1.1754944e-38, %v439_v12  ;;  %vm438_vm8 = vcmp.eq.f32.partialorder %v437_v13, 8.507059e+37 }
 0x310   :  { %v514_v55 = vadd.f32 %v1709_v50, %v513_v54 }
 0x312   :  { %v518_v59 = vsel %vm517_vm2, %v1709_v50, %v514_v55  ;;  %v643_v55 = vld [vmem:[#allocation7 + $0xa] sm:$0x3] }
 0x313   :  { %v523_v63 = vsel %vm520_vm3, %v522_v61, %v518_v59  ;;  %v1713_v1 = vpop.eup %1712 }
 0x314   :  { %v429_v3 = vmul.f32 %v1713_v1, %v427_v60  ;;  %vm434_vm5 = vweird.f32 %v1713_v1  ;;  %v526_v36 = vmul.f32 %v523_v63, %v2087_v34 }
 0x315   :  { %vm435_vm7 = vmor %vm433_vm6, %vm434_vm5 }
 0x316   :  { %v430_v7 = vsub.f32 1.0, %v429_v3 }
 0x318   :  { %v431_v8 = vmul.f32 %v1713_v1, %v430_v7 }
 0x31a   :  { %v432_v11 = vadd.f32 %v1713_v1, %v431_v8 }
 0x31c   :  { %v436_v16 = vsel %vm435_vm7, %v1713_v1, %v432_v11  ;;  %vm1630_vm7 = vcmp.gt.s32.totalorder %v2008_v4, 2 }
 0x31d   :  { %v441_v28 = vsel %vm438_vm8, %v440_v27, %v436_v16  ;;  %vm1634_vm8 = vcmp.gt.s32.totalorder %v2008_v4, 5 }
 0x31e   :  { %v444_v40 = vmul.f32 %v441_v28, %v2097_v39 }
 0x354   :  { %v529_v62 = vpop.permute.xlu1 %528 }
 0x355   :  { %v531_v0 = vmul.f32 %v529_v62, %v523_v63 }
 0x357   :  { %533 = vrot.lane.b32.xlu0 %v531_v0, %s1844_s2 }
 0x35f   :  { %466 = vperm.xlu0 %1684, %v2079_v2  }
 0x372   :  { %v447_v29 = vpop.permute.xlu0 %446 }
 0x373   :  { %v449_v31 = vmul.f32 %v447_v29, %v441_v28 }
 0x375   :  { %451 = vrot.lane.b32.xlu2 %v449_v31, %s1844_s2 }
 0x3c9   :  { %v534_v37 = vpop.permute.xlu0 %533 }
 0x3ca   :  { %v2090_v38 = vadd.f32 %v534_v37, %v526_v36 }
 0x3cc   :  { %1714 = vtanh.f32 %v2090_v38 }
 0x3cf   :  { %v452_v41 = vpop.permute.xlu2 %451 }
 0x3d0   :  { %v2100_v42 = vadd.f32 %v452_v41, %v444_v40 }
 0x3d1   :  { %v2110_v6 = vpop.permute.xlu0 %466 }
 0x3d2   :  { %v1715_v10 = vpop.eup %1714  ;;  %1716 = vtanh.f32 %v2100_v42  ;;  %vm468_vm10 = vcmp.eq.s32.totalorder %v2110_v6, 1 }
 0x3d3   :  { %539 = vrot.lane.b32.xlu2 %v1715_v10, %s1845_s30 }
 0x3d8   :  { %v1717_v14 = vpop.eup %1716 }
 0x3d9   :  { %457 = vrot.lane.b32.xlu1 %v1717_v14, %s1845_s30 }
 0x3e1   :  { %548 = vperm.xlu1 %1685, %v2107_v30  }
 0x42d   :  { %v540_v46 = vpop.permute.xlu2 %539 }
 0x42e   :  { %v542_v47 = vmul.f32 %v540_v46, %v523_v63 }
 0x44b   :  { %v458_v9 = vpop.permute.xlu1 %457 }
 0x44c   :  { %v2112_v43 = vmul.f32 %v458_v9, %v441_v28 }
 0x44e   :  { %v2119_v45 = vsel %vm468_vm10, %v2112_v43, %v2060_v35 }
 0x44f   :  { %563 = vrot.lane.b32.xlu2 %v2119_v45, %s1844_s2 }
 0x453   :  { %v2123_v48 = vpop.permute.xlu1 %548 }
 0x454   :  { %vm550_vm11 = vcmp.eq.s32.totalorder %v2123_v48, 1 }
 0x455   :  { %v2129_v49 = vsel %vm550_vm11, %v542_v47, %v2046_v32  ;;  %v2133_v50 = vsel %vm550_vm11, %v542_v47, 0.0 }
 0x456   :  { %645 = vrot.lane.b32.xlu0 %v2129_v49, %s1844_s2 }
 0x4a9   :  { %v564_v35 = vpop.permute.xlu2 %563 }
 0x4aa   :  { %1628 = vmatmul.msk.f32.vlgmr.msrb.gmra.mxu0 %vm224_vm1, %v564_v35 }
 0x4ab   :  { %1235 = vmatpush.msrb.mxu0 %v1933_v17 }
 0x4ad   :  { %1236 = vmatpush.msrb.mxu0 %v1937_v19 }
 0x4af   :  { %1237 = vmatpush.msrb.mxu0 %v1943_v21 }
 0x4b1   :  { %1238 = vmatpush.msrb.mxu0 %v1951_v24 }
 0x4c8   :  { %v646_v32 = vpop.permute.xlu0 %645 }
 0x4c9   :  { %1632 = vmatmul.msk.f32.vlgmr.msrb.gmra.mxu1 %vm224_vm1, %v646_v32 }
 0x4ca   :  { %1317 = vmatpush.msrb.mxu1 %v1935_v18 }
 0x4cc   :  { %1318 = vmatpush.msrb.mxu1 %v1941_v20 }
 0x4ce   :  { %1319 = vmatpush.msrb.mxu1 %v1945_v22 }
 0x4d0   :  { %1320 = vmatpush.msrb.mxu1 %v1953_v25 }
 0x527   :  { %v584_v52 = vpop.f32.mrf.mxu0 }
 0x528   :  { %v587_v53 = vadd.f32 %v584_v52, %v561_v51  ;;  %v2153_v52 = vsel %vm1630_vm7, 1, %v1846_v44  ;;  %vm1638_vm7 = vcmp.gt.s32.totalorder %v2008_v4, 3 }
 0x52a   :  { %1718 = vtanh.f32 %v587_v53  ;;  %v1629_v59 = vmul.f32 -1.442695, %v587_v53  ;;  %v2160_v53 = vsel %vm468_vm10, %v2100_v42, %v2097_v39  ;;  %v2179_v42 = vsel %vm1634_vm8, 1, %v1846_v44 }
 0x52b   :  { %vm1642_vm8 = vcmp.gt.s32.totalorder %v2008_v4, 4 }
 0x530   :  { %v1719_v54 = vpop.eup %1718 }
 0x531   :  { %610 = vrot.lane.b32.xlu1 %v1719_v54, %s1845_s30 }
 0x546   :  { %v666_v56 = vpop.f32.mrf.mxu1 }
 0x547   :  { %v669_v57 = vadd.f32 %v666_v56, %v643_v55 }
 0x549   :  { %1720 = vtanh.f32 %v669_v57  ;;  %v1633_v60 = vmul.f32 -1.442695, %v669_v57  ;;  %v2170_v57 = vsel %vm550_vm11, %v2090_v38, %v2087_v34 }
 0x54a   :  { %1722 = vpow2.f32 %v1629_v59 }
 0x54b   :  { %1724 = vpow2.f32 %v1633_v60 }
 0x54f   :  { %v1721_v58 = vpop.eup %1720 }
 0x550   :  { %692 = vrot.lane.b32.xlu2 %v1721_v58, %s1845_s30  ;;  %v1723_v61 = vpop.eup %1722 }
 0x551   :  { %v591_v62 = vadd.f32 1.0, %v1723_v61  ;;  %v1725_v63 = vpop.eup %1724 }
 0x552   :  { %v673_v0 = vadd.f32 1.0, %v1725_v63 }
 0x553   :  { %1726 = vrcp.f32 %v591_v62  ;;  %v603_v27 = vand.u32 2147483648, %v591_v62  ;;  %vm597_vm14 = vweird.f32 %v591_v62  ;;  %v601_v28 = vand.u32 2147483647, %v591_v62 }
 0x554   :  { %1728 = vrcp.f32 %v673_v0  ;;  %v685_v14 = vand.u32 2147483648, %v673_v0  ;;  %vm679_vm4 = vweird.f32 %v673_v0  ;;  %v683_v9 = vand.u32 2147483647, %v673_v0 }
 0x555   :  { %v604_v36 = vor.u32 1.1754944e-38, %v603_v27  ;;  %vm602_vm2 = vcmp.eq.f32.partialorder %v601_v28, 8.507059e+37 }
 0x556   :  { %v686_v47 = vor.u32 1.1754944e-38, %v685_v14  ;;  %vm684_vm6 = vcmp.eq.f32.partialorder %v683_v9, 8.507059e+37 }
 0x559   :  { %v1727_v1 = vpop.eup %1726 }
 0x55a   :  { %v593_v3 = vmul.f32 %v1727_v1, %v591_v62  ;;  %v1729_v7 = vpop.eup %1728  ;;  %vm598_vm12 = vweird.f32 %v1727_v1 }
 0x55b   :  { %v675_v11 = vmul.f32 %v1729_v7, %v673_v0  ;;  %vm599_vm15 = vmor %vm597_vm14, %vm598_vm12  ;;  %vm680_vm3 = vweird.f32 %v1729_v7 }
 0x55c   :  { %v594_v8 = vsub.f32 1.0, %v593_v3  ;;  %vm681_vm5 = vmor %vm679_vm4, %vm680_vm3 }
 0x55d   :  { %v676_v13 = vsub.f32 1.0, %v675_v11 }
 0x55e   :  { %v595_v12 = vmul.f32 %v1727_v1, %v594_v8  ;;  %v725_v8 = vld [vmem:[#allocation6 + $0x6] sm:$0x3] }
 0x55f   :  { %v677_v29 = vmul.f32 %v1729_v7, %v676_v13 }
 0x560   :  { %v596_v16 = vadd.f32 %v1727_v1, %v595_v12 }
 0x561   :  { %v678_v41 = vadd.f32 %v1729_v7, %v677_v29 }
 0x562   :  { %v600_v31 = vsel %vm599_vm15, %v1727_v1, %v596_v16 }
 0x563   :  { %v605_v40 = vsel %vm602_vm2, %v604_v36, %v600_v31  ;;  %v682_v46 = vsel %vm681_vm5, %v1729_v7, %v678_v41 }
 0x564   :  { %v687_v32 = vsel %vm684_vm6, %v686_v47, %v682_v46  ;;  %v608_v54 = vmul.f32 %v605_v40, %v2160_v53 }
 0x565   :  { %v690_v58 = vmul.f32 %v687_v32, %v2170_v57 }
 0x5a3   :  { %v611_v37 = vpop.permute.xlu1 %610 }
 0x5a4   :  { %v613_v10 = vmul.f32 %v611_v37, %v605_v40 }
 0x5a6   :  { %615 = vrot.lane.b32.xlu0 %v613_v10, %s1844_s2 }
 0x5aa   :  { %v693_v35 = vpop.permute.xlu2 %692 }
 0x5ab   :  { %v695_v51 = vmul.f32 %v693_v35, %v687_v32 }
 0x5ad   :  { %697 = vrot.lane.b32.xlu1 %v695_v51, %s1844_s2 }
 0x5b5   :  { %630 = vperm.xlu1 %1685, %v2153_v52  }
 0x618   :  { %v616_v55 = vpop.permute.xlu0 %615 }
 0x619   :  { %v2163_v56 = vadd.f32 %v616_v55, %v608_v54 }
 0x61b   :  { %1730 = vtanh.f32 %v2163_v56 }
 0x61f   :  { %v698_v59 = vpop.permute.xlu1 %697 }
 0x620   :  { %v2173_v60 = vadd.f32 %v698_v59, %v690_v58 }
 0x621   :  { %v1731_v39 = vpop.eup %1730 }
 0x622   :  { %1732 = vtanh.f32 %v2173_v60  ;;  %621 = vrot.lane.b32.xlu2 %v1731_v39, %s1845_s30 }
 0x627   :  { %v2183_v34 = vpop.permute.xlu1 %630 }
 0x628   :  { %v1733_v61 = vpop.eup %1732  ;;  %vm632_vm9 = vcmp.eq.s32.totalorder %v2183_v34, 1 }
 0x629   :  { %703 = vrot.lane.b32.xlu0 %v1733_v61, %s1845_s30 }
 0x62a   :  { %712 = vperm.xlu2 %1683, %v2179_v42  }
 0x67c   :  { %v622_v38 = vpop.permute.xlu2 %621 }
 0x67d   :  { %v2185_v48 = vmul.f32 %v622_v38, %v605_v40 }
 0x67f   :  { %v2192_v62 = vsel %vm632_vm9, %v2185_v48, %v2119_v45 }
 0x680   :  { %727 = vrot.lane.b32.xlu0 %v2192_v62, %s1844_s2 }
 0x684   :  { %v2196_v63 = vpop.permute.xlu2 %712 }
 0x685   :  { %vm714_vm11 = vcmp.eq.s32.totalorder %v2196_v63, 1 }
 0x69b   :  { %v704_v0 = vpop.permute.xlu0 %703 }
 0x69c   :  { %v706_v1 = vmul.f32 %v704_v0, %v687_v32 }
 0x69e   :  { %v2202_v3 = vsel %vm714_vm11, %v706_v1, %v2129_v49  ;;  %v2206_v7 = vsel %vm714_vm11, %v706_v1, 0.0 }
 0x69f   :  { %809 = vrot.lane.b32.xlu1 %v2202_v3, %s1844_s2 }
 0x6f2   :  { %v728_v45 = vpop.permute.xlu0 %727 }
 0x6f3   :  { %1636 = vmatmul.msk.f32.vlgmr.msrb.gmra.mxu2 %vm224_vm1, %v728_v45  ;;  %v2226_v45 = vsel %vm1638_vm7, 1, %v1846_v44 }
 0x6f4   :  { %1399 = vmatpush.msrb.mxu2 %v1933_v17 }
 0x6f6   :  { %1400 = vmatpush.msrb.mxu2 %v1937_v19 }
 0x6f8   :  { %1401 = vmatpush.msrb.mxu2 %v1943_v21  ;;  %v807_v21 = vld [vmem:[#allocation7 + $0x8] sm:$0x3] }
 0x6fa   :  { %1402 = vmatpush.msrb.mxu2 %v1951_v24 }
 0x711   :  { %v810_v49 = vpop.permute.xlu1 %809 }
 0x712   :  { %1640 = vmatmul.msk.f32.vlgmr.msrb.gmra.mxu3 %vm224_vm1, %v810_v49  ;;  %v2233_v49 = vsel %vm632_vm9, %v2163_v56, %v2160_v53  ;;  %v2249_v53 = vsel %vm714_vm11, %v2173_v60, %v2170_v57 }
 0x713   :  { %1480 = vmatpush.msrb.mxu3 %v1935_v18 }
 0x715   :  { %1481 = vmatpush.msrb.mxu3 %v1941_v20 }
 0x717   :  { %1482 = vmatpush.msrb.mxu3 %v1945_v22 }
 0x719   :  { %1483 = vmatpush.msrb.mxu3 %v1953_v25 }
 0x776   :  { %v748_v11 = vpop.f32.mrf.mxu2 }
 0x777   :  { %v751_v17 = vadd.f32 %v748_v11, %v725_v8 }
 0x779   :  { %1734 = vtanh.f32 %v751_v17  ;;  %v1637_v18 = vmul.f32 -1.442695, %v751_v17 }
 0x77f   :  { %v1735_v19 = vpop.eup %1734 }
 0x780   :  { %774 = vrot.lane.b32.xlu2 %v1735_v19, %s1845_s30 }
 0x795   :  { %v830_v24 = vpop.f32.mrf.mxu3 }
 0x796   :  { %v833_v12 = vadd.f32 %v830_v24, %v807_v21  ;;  %v2242_v21 = vsel %vm1642_vm8, 1, %v1846_v44 }
 0x798   :  { %1736 = vtanh.f32 %v833_v12  ;;  %v1641_v9 = vmul.f32 -1.442695, %v833_v12 }
 0x799   :  { %1738 = vpow2.f32 %v1637_v18 }
 0x79e   :  { %v1737_v13 = vpop.eup %1736 }
 0x79f   :  { %856 = vrot.lane.b32.xlu0 %v1737_v13, %s1845_s30  ;;  %v1739_v20 = vpop.eup %1738 }
 0x7a0   :  { %v755_v22 = vadd.f32 1.0, %v1739_v20 }
 0x7a2   :  { %1740 = vrcp.f32 %v755_v22  ;;  %v767_v31 = vand.u32 2147483648, %v755_v22  ;;  %vm761_vm14 = vweird.f32 %v755_v22  ;;  %v765_v36 = vand.u32 2147483647, %v755_v22 }
 0x7a3   :  { %1742 = vpow2.f32 %v1641_v9 }
 0x7a4   :  { %v768_v40 = vor.u32 1.1754944e-38, %v767_v31  ;;  %vm766_vm2 = vcmp.eq.f32.partialorder %v765_v36, 8.507059e+37  ;;  %v971_v31 = vld [vmem:[#allocation7 + $0x6] sm:$0x3] }
 0x7a8   :  { %v1741_v25 = vpop.eup %1740 }
 0x7a9   :  { %v757_v16 = vmul.f32 %v1741_v25, %v755_v22  ;;  %vm762_vm12 = vweird.f32 %v1741_v25  ;;  %v1743_v46 = vpop.eup %1742 }
 0x7aa   :  { %vm763_vm15 = vmor %vm761_vm14, %vm762_vm12  ;;  %v837_v47 = vadd.f32 1.0, %v1743_v46 }
 0x7ab   :  { %v758_v27 = vsub.f32 1.0, %v757_v16 }
 0x7ac   :  { %1744 = vrcp.f32 %v837_v47  ;;  %v849_v58 = vand.u32 2147483648, %v837_v47  ;;  %vm843_vm4 = vweird.f32 %v837_v47  ;;  %v847_v59 = vand.u32 2147483647, %v837_v47 }
 0x7ad   :  { %v759_v28 = vmul.f32 %v1741_v25, %v758_v27  ;;  %v889_v27 = vld [vmem:[#allocation6 + $0x8] sm:$0x3] }
 0x7ae   :  { %v850_v61 = vor.u32 1.1754944e-38, %v849_v58  ;;  %vm848_vm6 = vcmp.eq.f32.partialorder %v847_v59, 8.507059e+37 }
 0x7af   :  { %v760_v29 = vadd.f32 %v1741_v25, %v759_v28 }
 0x7b1   :  { %v764_v37 = vsel %vm763_vm15, %v1741_v25, %v760_v29 }
 0x7b2   :  { %v769_v10 = vsel %vm766_vm2, %v768_v40, %v764_v37  ;;  %v1745_v35 = vpop.eup %1744 }
 0x7b3   :  { %v839_v32 = vmul.f32 %v1745_v35, %v837_v47  ;;  %vm844_vm3 = vweird.f32 %v1745_v35  ;;  %v772_v8 = vmul.f32 %v769_v10, %v2233_v49 }
 0x7b4   :  { %vm845_vm5 = vmor %vm843_vm4, %vm844_vm3 }
 0x7b5   :  { %v840_v51 = vsub.f32 1.0, %v839_v32 }
 0x7b7   :  { %v841_v54 = vmul.f32 %v1745_v35, %v840_v51 }
 0x7b9   :  { %v842_v55 = vadd.f32 %v1745_v35, %v841_v54 }
 0x7bb   :  { %v846_v39 = vsel %vm845_vm5, %v1745_v35, %v842_v55 }
 0x7bc   :  { %v851_v38 = vsel %vm848_vm6, %v850_v61, %v846_v39 }
 0x7bd   :  { %v854_v56 = vmul.f32 %v851_v38, %v2249_v53 }
 0x7da   :  { %v775_v41 = vpop.permute.xlu2 %774 }
 0x7db   :  { %v777_v14 = vmul.f32 %v775_v41, %v769_v10 }
 0x7dd   :  { %779 = vrot.lane.b32.xlu1 %v777_v14, %s1844_s2 }
 0x811   :  { %v857_v0 = vpop.permute.xlu0 %856 }
 0x812   :  { %v859_v1 = vmul.f32 %v857_v0, %v851_v38 }
 0x814   :  { %861 = vrot.lane.b32.xlu2 %v859_v1, %s1844_s2 }
 0x81c   :  { %794 = vperm.xlu2 %1683, %v2226_v45  }
 0x84f   :  { %v780_v11 = vpop.permute.xlu1 %779 }
 0x850   :  { %v2236_v17 = vadd.f32 %v780_v11, %v772_v8 }
 0x852   :  { %1746 = vtanh.f32 %v2236_v17 }
 0x858   :  { %v1747_v19 = vpop.eup %1746 }
 0x859   :  { %785 = vrot.lane.b32.xlu0 %v1747_v19, %s1845_s30 }
 0x861   :  { %876 = vperm.xlu0 %1684, %v2242_v21  }
 0x86e   :  { %v862_v24 = vpop.permute.xlu2 %861 }
 0x86f   :  { %v2252_v12 = vadd.f32 %v862_v24, %v854_v56 }
 0x871   :  { %1748 = vtanh.f32 %v2252_v12 }
 0x876   :  { %v2256_v44 = vpop.permute.xlu2 %794 }
 0x877   :  { %v1749_v13 = vpop.eup %1748  ;;  %vm796_vm12 = vcmp.eq.s32.totalorder %v2256_v44, 1 }
 0x878   :  { %867 = vrot.lane.b32.xlu1 %v1749_v13, %s1845_s30 }
 0x8cb   :  { %v786_v4 = vpop.permute.xlu0 %785 }
 0x8cc   :  { %v2258_v18 = vmul.f32 %v786_v4, %v769_v10 }
 0x8ce   :  { %v2265_v57 = vsel %vm796_vm12, %v2258_v18, %v2192_v62 }
 0x8cf   :  { %891 = vrot.lane.b32.xlu1 %v2265_v57, %s1844_s2 }
 0x8d3   :  { %v2269_v60 = vpop.permute.xlu0 %876 }
 0x8d4   :  { %vm878_vm11 = vcmp.eq.s32.totalorder %v2269_v60, 1 }
 0x8ea   :  { %v868_v63 = vpop.permute.xlu1 %867 }
 0x8eb   :  { %v870_v20 = vmul.f32 %v868_v63, %v851_v38 }
 0x8ed   :  { %v2275_v22 = vsel %vm878_vm11, %v870_v20, %v2202_v3  ;;  %v2279_v25 = vsel %vm878_vm11, %v870_v20, 0.0 }
 0x8ee   :  { %973 = vrot.lane.b32.xlu2 %v2275_v22, %s1844_s2 }
 0x941   :  { %v892_v62 = vpop.permute.xlu1 %891 }
 0x942   :  { %1644 = vmatmul.msk.f32.vlgmr.msra.gmra.mxu0 %vm224_vm1, %v892_v62 }
 0x948   :  { %v974_v16 = vpop.permute.xlu2 %973 }
 0x949   :  { %1648 = vmatmul.msk.f32.vlgmr.msra.gmra.mxu1 %vm224_vm1, %v974_v16 }
 0x9bf   :  { %v912_v28 = vpop.f32.mrf.mxu0 }
 0x9c0   :  { %v915_v29 = vadd.f32 %v912_v28, %v889_v27  ;;  %v2294_v28 = vsel %vm796_vm12, %v2236_v17, %v2233_v49 }
 0x9c2   :  { %1750 = vtanh.f32 %v915_v29  ;;  %v1645_v41 = vmul.f32 -1.442695, %v915_v29 }
 0x9c6   :  { %v994_v3 = vpop.f32.mrf.mxu1 }
 0x9c7   :  { %v997_v36 = vadd.f32 %v994_v3, %v971_v31 }
 0x9c8   :  { %v1751_v37 = vpop.eup %1750 }
 0x9c9   :  { %1752 = vtanh.f32 %v997_v36  ;;  %938 = vrot.lane.b32.xlu0 %v1751_v37, %s1845_s30  ;;  %v1649_v10 = vmul.f32 -1.442695, %v997_v36 }
 0x9ca   :  { %1754 = vpow2.f32 %v1645_v41 }
 0x9cb   :  { %1756 = vpow2.f32 %v1649_v10 }
 0x9cf   :  { %v1753_v40 = vpop.eup %1752 }
 0x9d0   :  { %1020 = vrot.lane.b32.xlu1 %v1753_v40, %s1845_s30  ;;  %v1755_v14 = vpop.eup %1754 }
 0x9d1   :  { %v919_v9 = vadd.f32 1.0, %v1755_v14  ;;  %v1757_v46 = vpop.eup %1756 }
 0x9d2   :  { %v1001_v47 = vadd.f32 1.0, %v1757_v46 }
 0x9d3   :  { %1758 = vrcp.f32 %v919_v9  ;;  %v931_v61 = vand.u32 2147483648, %v919_v9  ;;  %vm925_vm15 = vweird.f32 %v919_v9  ;;  %v929_v38 = vand.u32 2147483647, %v919_v9 }
 0x9d4   :  { %1760 = vrcp.f32 %v1001_v47  ;;  %v1013_v13 = vand.u32 2147483648, %v1001_v47  ;;  %vm1007_vm5 = vweird.f32 %v1001_v47  ;;  %v1011_v4 = vand.u32 2147483647, %v1001_v47 }
 0x9d5   :  { %v932_v8 = vor.u32 1.1754944e-38, %v931_v61  ;;  %vm930_vm3 = vcmp.eq.f32.partialorder %v929_v38, 8.507059e+37 }
 0x9d6   :  { %v1014_v20 = vor.u32 1.1754944e-38, %v1013_v13  ;;  %vm1012_vm7 = vcmp.eq.f32.partialorder %v1011_v4, 8.507059e+37 }
 0x9d9   :  { %v1759_v35 = vpop.eup %1758 }
 0x9da   :  { %v921_v32 = vmul.f32 %v1759_v35, %v919_v9  ;;  %v1761_v51 = vpop.eup %1760  ;;  %vm926_vm14 = vweird.f32 %v1759_v35 }
 0x9db   :  { %v1003_v55 = vmul.f32 %v1761_v51, %v1001_v47  ;;  %vm927_vm2 = vmor %vm925_vm15, %vm926_vm14  ;;  %vm1008_vm4 = vweird.f32 %v1761_v51 }
 0x9dc   :  { %v922_v54 = vsub.f32 1.0, %v921_v32  ;;  %vm1009_vm6 = vmor %vm1007_vm5, %vm1008_vm4 }
 0x9dd   :  { %v1004_v59 = vsub.f32 1.0, %v1003_v55 }
 0x9de   :  { %v923_v58 = vmul.f32 %v1759_v35, %v922_v54 }
 0x9df   :  { %v1005_v0 = vmul.f32 %v1761_v51, %v1004_v59 }
 0x9e0   :  { %v924_v39 = vadd.f32 %v1759_v35, %v923_v58 }
 0x9e1   :  { %v1006_v56 = vadd.f32 %v1761_v51, %v1005_v0 }
 0x9e2   :  { %v928_v1 = vsel %vm927_vm2, %v1759_v35, %v924_v39  ;;  %v1053_v35 = vld [vmem:[#allocation6 + $0xa] sm:$0x3] }
 0x9e3   :  { %v933_v11 = vsel %vm930_vm3, %v932_v8, %v928_v1  ;;  %v1010_v63 = vsel %vm1009_vm6, %v1761_v51, %v1006_v56 }
 0x9e4   :  { %v1015_v16 = vsel %vm1012_vm7, %v1014_v20, %v1010_v63  ;;  %v936_v29 = vmul.f32 %v933_v11, %v2294_v28 }
 0xa3b   :  { %v939_v19 = vpop.permute.xlu0 %938 }
 0xa3c   :  { %v941_v24 = vmul.f32 %v939_v19, %v933_v11 }
 0xa3e   :  { %943 = vrot.lane.b32.xlu2 %v941_v24, %s1844_s2 }
 0xa42   :  { %v1021_v62 = vpop.permute.xlu1 %1020 }
 0xa43   :  { %v1023_v27 = vmul.f32 %v1021_v62, %v1015_v16 }
 0xa45   :  { %1025 = vrot.lane.b32.xlu0 %v1023_v27, %s1844_s2 }
 0xa4d   :  { %958 = vperm.xlu0 %1684, %v2242_v21   ;;  %v2306_v21 = vsel %vm878_vm11, %v2252_v12, %v2249_v53 }
 0xa4e   :  { %v1018_v49 = vmul.f32 %v1015_v16, %v2306_v21 }
 0xa98   :  { %v944_v31 = vpop.permute.xlu2 %943 }
 0xa99   :  { %v2297_v3 = vadd.f32 %v944_v31, %v936_v29 }
 0xa9b   :  { %1762 = vtanh.f32 %v2297_v3 }
 0xaa1   :  { %v1763_v36 = vpop.eup %1762 }
 0xaa2   :  { %949 = vrot.lane.b32.xlu1 %v1763_v36, %s1845_s30 }
 0xaaa   :  { %1040 = vperm.xlu1 %1685, %v2226_v45  }
 0xab7   :  { %v1026_v17 = vpop.permute.xlu0 %1025 }
 0xab8   :  { %v2309_v37 = vadd.f32 %v1026_v17, %v1018_v49 }
 0xaba   :  { %1764 = vtanh.f32 %v2309_v37 }
 0xabf   :  { %v2313_v41 = vpop.permute.xlu0 %958 }
 0xac0   :  { %v1765_v40 = vpop.eup %1764  ;;  %vm960_vm8 = vcmp.eq.s32.totalorder %v2313_v41, 1 }
 0xac1   :  { %1031 = vrot.lane.b32.xlu2 %v1765_v40, %s1845_s30 }
 0xb14   :  { %v950_v10 = vpop.permute.xlu1 %949 }
 0xb15   :  { %v2315_v45 = vmul.f32 %v950_v10, %v933_v11 }
 0xb17   :  { %v2322_v53 = vsel %vm960_vm8, %v2315_v45, %v2265_v57 }
 0xb18   :  { %1055 = vrot.lane.b32.xlu2 %v2322_v53, %s1844_s2 }
 0xb1b   :  { %v1032_v12 = vpop.permute.xlu2 %1031 }
 0xb1c   :  { %v1034_v60 = vmul.f32 %v1032_v12, %v1015_v16  ;;  %v2326_v14 = vpop.permute.xlu1 %1040 }
 0xb1d   :  { %vm1042_vm11 = vcmp.eq.s32.totalorder %v2326_v14, 1 }
 0xb1e   :  { %v2332_v9 = vsel %vm1042_vm11, %v1034_v60, %v2275_v22  ;;  %v2336_v46 = vsel %vm1042_vm11, %v1034_v60, 0.0  ;;  %v1135_v22 = vld [vmem:[#allocation7 + $0x4] sm:$0x3] }
 0xb1f   :  { %1137 = vrot.lane.b32.xlu0 %v2332_v9, %s1844_s2 }
 0xb72   :  { %v1056_v57 = vpop.permute.xlu2 %1055 }
 0xb73   :  { %1652 = vmatmul.msk.f32.vlgmr.msra.gmra.mxu2 %vm224_vm1, %v1056_v57 }
 0xb91   :  { %v1138_v47 = vpop.permute.xlu0 %1137 }
 0xb92   :  { %1656 = vmatmul.msk.f32.vlgmr.msra.gmra.mxu3 %vm224_vm1, %v1138_v47 }
 0xbf6   :  { %v1076_v32 = vpop.f32.mrf.mxu2 }
 0xbf7   :  { %v1079_v51 = vadd.f32 %v1076_v32, %v1053_v35 }
 0xbf9   :  { %1766 = vtanh.f32 %v1079_v51  ;;  %v1653_v39 = vmul.f32 -1.442695, %v1079_v51  ;;  %v2351_v51 = vsel %vm960_vm8, %v2297_v3, %v2294_v28 }
 0xbff   :  { %v1767_v54 = vpop.eup %1766 }
 0xc00   :  { %1102 = vrot.lane.b32.xlu1 %v1767_v54, %s1845_s30 }
 0xc15   :  { %v1158_v55 = vpop.f32.mrf.mxu3 }
 0xc16   :  { %v1161_v58 = vadd.f32 %v1158_v55, %v1135_v22 }
 0xc18   :  { %1768 = vtanh.f32 %v1161_v58  ;;  %v1657_v61 = vmul.f32 -1.442695, %v1161_v58  ;;  %v2361_v58 = vsel %vm1042_vm11, %v2309_v37, %v2306_v21 }
 0xc19   :  { %1770 = vpow2.f32 %v1653_v39 }
 0xc1a   :  { %1772 = vpow2.f32 %v1657_v61 }
 0xc1e   :  { %v1769_v59 = vpop.eup %1768 }
 0xc1f   :  { %1184 = vrot.lane.b32.xlu2 %v1769_v59, %s1845_s30  ;;  %v1771_v38 = vpop.eup %1770 }
 0xc20   :  { %v1083_v0 = vadd.f32 1.0, %v1771_v38  ;;  %v1773_v1 = vpop.eup %1772 }
 0xc21   :  { %v1165_v8 = vadd.f32 1.0, %v1773_v1 }
 0xc22   :  { %1774 = vrcp.f32 %v1083_v0  ;;  %v1095_v62 = vand.u32 2147483648, %v1083_v0  ;;  %vm1089_vm15 = vweird.f32 %v1083_v0  ;;  %v1093_v16 = vand.u32 2147483647, %v1083_v0 }
 0xc23   :  { %1776 = vrcp.f32 %v1165_v8  ;;  %v1177_v10 = vand.u32 2147483648, %v1165_v8  ;;  %vm1171_vm5 = vweird.f32 %v1165_v8  ;;  %v1175_v12 = vand.u32 2147483647, %v1165_v8 }
 0xc24   :  { %v1096_v31 = vor.u32 1.1754944e-38, %v1095_v62  ;;  %vm1094_vm3 = vcmp.eq.f32.partialorder %v1093_v16, 8.507059e+37 }
 0xc25   :  { %v1178_v57 = vor.u32 1.1754944e-38, %v1177_v10  ;;  %vm1176_vm7 = vcmp.eq.f32.partialorder %v1175_v12, 8.507059e+37 }
 0xc28   :  { %v1775_v11 = vpop.eup %1774 }
 0xc29   :  { %v1085_v19 = vmul.f32 %v1775_v11, %v1083_v0  ;;  %v1777_v56 = vpop.eup %1776  ;;  %vm1090_vm14 = vweird.f32 %v1775_v11 }
 0xc2a   :  { %v1167_v13 = vmul.f32 %v1777_v56, %v1165_v8  ;;  %vm1091_vm2 = vmor %vm1089_vm15, %vm1090_vm14  ;;  %vm1172_vm4 = vweird.f32 %v1777_v56 }
 0xc2b   :  { %v1086_v24 = vsub.f32 1.0, %v1085_v19  ;;  %vm1173_vm6 = vmor %vm1171_vm5, %vm1172_vm4  ;;  %v1217_v19 = vld [vmem:[#allocation6 + $0xc] sm:$0x3] }
 0xc2c   :  { %v1168_v63 = vsub.f32 1.0, %v1167_v13 }
 0xc2d   :  { %v1087_v4 = vmul.f32 %v1775_v11, %v1086_v24 }
 0xc2e   :  { %v1169_v27 = vmul.f32 %v1777_v56, %v1168_v63 }
 0xc2f   :  { %v1088_v20 = vadd.f32 %v1775_v11, %v1087_v4 }
 0xc30   :  { %v1170_v17 = vadd.f32 %v1777_v56, %v1169_v27 }
 0xc31   :  { %v1092_v29 = vsel %vm1091_vm2, %v1775_v11, %v1088_v20 }
 0xc32   :  { %v1097_v49 = vsel %vm1094_vm3, %v1096_v31, %v1092_v29  ;;  %v1174_v60 = vsel %vm1173_vm6, %v1777_v56, %v1170_v17 }
 0xc33   :  { %v1179_v35 = vsel %vm1176_vm7, %v1178_v57, %v1174_v60  ;;  %v1100_v54 = vmul.f32 %v1097_v49, %v2351_v51 }
 0xc72   :  { %v1103_v36 = vpop.permute.xlu1 %1102 }
 0xc73   :  { %v1105_v40 = vmul.f32 %v1103_v36, %v1097_v49 }
 0xc75   :  { %1107 = vrot.lane.b32.xlu0 %v1105_v40, %s1844_s2 }
 0xc79   :  { %v1185_v47 = vpop.permute.xlu2 %1184 }
 0xc7a   :  { %v1187_v32 = vmul.f32 %v1185_v47, %v1179_v35 }
 0xc7c   :  { %1189 = vrot.lane.b32.xlu1 %v1187_v32, %s1844_s2 }
 0xc84   :  { %1122 = vperm.xlu1 %1685, %v2179_v42   ;;  %v1182_v42 = vmul.f32 %v1179_v35, %v2361_v58 }
 0xce7   :  { %v1108_v22 = vpop.permute.xlu0 %1107 }
 0xce8   :  { %v2354_v55 = vadd.f32 %v1108_v22, %v1100_v54 }
 0xcea   :  { %1778 = vtanh.f32 %v2354_v55 }
 0xcee   :  { %v1190_v59 = vpop.permute.xlu1 %1189 }
 0xcef   :  { %v2364_v39 = vadd.f32 %v1190_v59, %v1182_v42 }
 0xcf0   :  { %v1779_v28 = vpop.eup %1778 }
 0xcf1   :  { %1780 = vtanh.f32 %v2364_v39  ;;  %1113 = vrot.lane.b32.xlu2 %v1779_v28, %s1845_s30 }
 0xcf6   :  { %v2370_v61 = vpop.permute.xlu1 %1122 }
 0xcf7   :  { %v1781_v3 = vpop.eup %1780  ;;  %vm1124_vm11 = vcmp.eq.s32.totalorder %v2370_v61, 1  ;;  %v471_v61 = vsel %vm468_vm10, %v2112_v43, 0.0 }
 0xcf8   :  { %1195 = vrot.lane.b32.xlu0 %v1781_v3, %s1845_s30 }
 0xcf9   :  { %1204 = vperm.xlu2 %1683, %v2153_v52  }
 0xd4b   :  { %v1114_v14 = vpop.permute.xlu2 %1113 }
 0xd4c   :  { %v2372_v21 = vmul.f32 %v1114_v14, %v1097_v49 }
 0xd4e   :  { %v2379_v37 = vsel %vm1124_vm11, %v2372_v21, %v2322_v53  ;;  %v1127_v23 = vsel %vm1124_vm11, %v2372_v21, 0.0 }
 0xd4f   :  { %1219 = vrot.lane.b32.xlu0 %v2379_v37, %s1844_s2 }
 0xd53   :  { %v2383_v38 = vpop.permute.xlu2 %1204 }
 0xd54   :  { %vm1206_vm14 = vcmp.eq.s32.totalorder %v2383_v38, 1 }
 0xd6a   :  { %v1196_v0 = vpop.permute.xlu0 %1195 }
 0xd6b   :  { %v1198_v52 = vmul.f32 %v1196_v0, %v1179_v35 }
 0xd6d   :  { %v2389_v1 = vsel %vm1206_vm14, %v1198_v52, %v2332_v9  ;;  %v2393_v8 = vsel %vm1206_vm14, %v1198_v52, 0.0  ;;  %v1299_v9 = vld [vmem:[#allocation7 + $0x2] sm:$0x3] }
 0xd6e   :  { %1301 = vrot.lane.b32.xlu1 %v2389_v1, %s1844_s2 }
 0xdc1   :  { %v1220_v53 = vpop.permute.xlu0 %1219 }
 0xdc2   :  { %1660 = vmatmul.msk.f32.vlgmr.msrb.gmra.mxu0 %vm224_vm1, %v1220_v53 }
 0xde0   :  { %v1302_v11 = vpop.permute.xlu1 %1301 }
 0xde1   :  { %1664 = vmatmul.msk.f32.vlgmr.msrb.gmra.mxu1 %vm224_vm1, %v1302_v11 }
 0xe3f   :  { %v1240_v56 = vpop.f32.mrf.mxu0 }
 0xe40   :  { %v1243_v24 = vadd.f32 %v1240_v56, %v1217_v19 }
 0xe42   :  { %1782 = vtanh.f32 %v1243_v24  ;;  %v1661_v62 = vmul.f32 -1.442695, %v1243_v24 }
 0xe48   :  { %v1783_v13 = vpop.eup %1782 }
 0xe49   :  { %1266 = vrot.lane.b32.xlu2 %v1783_v13, %s1845_s30  ;;  %v2408_v13 = vsel %vm1124_vm11, %v2354_v55, %v2351_v51 }
 0xe5e   :  { %v1322_v4 = vpop.f32.mrf.mxu1 }
 0xe5f   :  { %v1325_v63 = vadd.f32 %v1322_v4, %v1299_v9 }
 0xe61   :  { %1784 = vtanh.f32 %v1325_v63  ;;  %v1665_v32 = vmul.f32 -1.442695, %v1325_v63 }
 0xe62   :  { %1786 = vpow2.f32 %v1661_v62 }
 0xe67   :  { %v1785_v20 = vpop.eup %1784 }
 0xe68   :  { %1348 = vrot.lane.b32.xlu0 %v1785_v20, %s1845_s30  ;;  %v1787_v16 = vpop.eup %1786 }
 0xe69   :  { %v1247_v27 = vadd.f32 1.0, %v1787_v16 }
 0xe6b   :  { %1788 = vrcp.f32 %v1247_v27  ;;  %v1259_v40 = vand.u32 2147483648, %v1247_v27  ;;  %vm1253_vm2 = vweird.f32 %v1247_v27  ;;  %v1257_v10 = vand.u32 2147483647, %v1247_v27 }
 0xe6c   :  { %1790 = vpow2.f32 %v1665_v32 }
 0xe6d   :  { %v1260_v60 = vor.u32 1.1754944e-38, %v1259_v40  ;;  %vm1258_vm4 = vcmp.eq.f32.partialorder %v1257_v10, 8.507059e+37  ;;  %v1381_v40 = vld [vmem:[#allocation6 + $0xe] sm:$0x3] }
 0xe71   :  { %v1789_v29 = vpop.eup %1788 }
 0xe72   :  { %v1249_v31 = vmul.f32 %v1789_v29, %v1247_v27  ;;  %vm1254_vm15 = vweird.f32 %v1789_v29  ;;  %v1791_v54 = vpop.eup %1790 }
 0xe73   :  { %vm1255_vm3 = vmor %vm1253_vm2, %vm1254_vm15  ;;  %v1329_v22 = vadd.f32 1.0, %v1791_v54 }
 0xe74   :  { %v1250_v36 = vsub.f32 1.0, %v1249_v31 }
 0xe75   :  { %1792 = vrcp.f32 %v1329_v22  ;;  %v1341_v0 = vand.u32 2147483648, %v1329_v22  ;;  %vm1335_vm6 = vweird.f32 %v1329_v22  ;;  %v1339_v52 = vand.u32 2147483647, %v1329_v22 }
 0xe76   :  { %v1251_v49 = vmul.f32 %v1789_v29, %v1250_v36 }
 0xe77   :  { %v1342_v11 = vor.u32 1.1754944e-38, %v1341_v0  ;;  %vm1340_vm15 = vcmp.eq.f32.partialorder %v1339_v52, 8.507059e+37 }
 0xe78   :  { %v1252_v17 = vadd.f32 %v1789_v29, %v1251_v49 }
 0xe7a   :  { %v1256_v12 = vsel %vm1255_vm3, %v1789_v29, %v1252_v17 }
 0xe7b   :  { %v1261_v47 = vsel %vm1258_vm4, %v1260_v60, %v1256_v12  ;;  %v1793_v42 = vpop.eup %1792  ;;  %v1462_v60 = vld [vmem:[#allocation7] sm:$0x3] }
 0xe7c   :  { %v1331_v59 = vmul.f32 %v1793_v42, %v1329_v22  ;;  %vm1336_vm5 = vweird.f32 %v1793_v42  ;;  %v1264_v9 = vmul.f32 %v1261_v47, %v2408_v13 }
 0xe7d   :  { %vm1337_vm7 = vmor %vm1335_vm6, %vm1336_vm5 }
 0xe7e   :  { %v1332_v28 = vsub.f32 1.0, %v1331_v59 }
 0xe80   :  { %v1333_v3 = vmul.f32 %v1793_v42, %v1332_v28 }
 0xe82   :  { %v1334_v14 = vadd.f32 %v1793_v42, %v1333_v3 }
 0xe84   :  { %v1338_v53 = vsel %vm1337_vm7, %v1793_v42, %v1334_v14 }
 0xe85   :  { %v1343_v19 = vsel %vm1340_vm15, %v1342_v11, %v1338_v53 }
 0xea3   :  { %v1267_v57 = vpop.permute.xlu2 %1266 }
 0xea4   :  { %v1269_v35 = vmul.f32 %v1267_v57, %v1261_v47 }
 0xea6   :  { %1271 = vrot.lane.b32.xlu1 %v1269_v35, %s1844_s2 }
 0xeda   :  { %v1349_v56 = vpop.permute.xlu0 %1348 }
 0xedb   :  { %v1351_v24 = vmul.f32 %v1349_v56, %v1343_v19 }
 0xedd   :  { %1353 = vrot.lane.b32.xlu2 %v1351_v24, %s1844_s2 }
 0xee5   :  { %1286 = vperm.xlu2 %1683, %v2107_v30   ;;  %v2420_v30 = vsel %vm1206_vm14, %v2364_v39, %v2361_v58 }
 0xee6   :  { %v1346_v51 = vmul.f32 %v1343_v19, %v2420_v30 }
 0xf18   :  { %v1272_v4 = vpop.permute.xlu1 %1271 }
 0xf19   :  { %v2411_v63 = vadd.f32 %v1272_v4, %v1264_v9 }
 0xf1b   :  { %1794 = vtanh.f32 %v2411_v63 }
 0xf21   :  { %v1795_v20 = vpop.eup %1794 }
 0xf22   :  { %1277 = vrot.lane.b32.xlu0 %v1795_v20, %s1845_s30 }
 0xf2a   :  { %1368 = vperm.xlu0 %1684, %v2079_v2  }
 0xf37   :  { %v1354_v55 = vpop.permute.xlu2 %1353 }
 0xf38   :  { %v2423_v62 = vadd.f32 %v1354_v55, %v1346_v51 }
 0xf3a   :  { %1796 = vtanh.f32 %v2423_v62 }
 0xf3f   :  { %v2427_v27 = vpop.permute.xlu2 %1286 }
 0xf40   :  { %v1797_v16 = vpop.eup %1796  ;;  %vm1288_vm2 = vcmp.eq.s32.totalorder %v2427_v27, 1 }
 0xf41   :  { %1359 = vrot.lane.b32.xlu1 %v1797_v16, %s1845_s30 }
 0xf94   :  { %v1278_v29 = vpop.permute.xlu0 %1277 }
 0xf95   :  { %v2429_v2 = vmul.f32 %v1278_v29, %v1261_v47 }
 0xf97   :  { %v2436_v58 = vsel %vm1288_vm2, %v2429_v2, %v2379_v37  ;;  %v1291_v44 = vsel %vm1288_vm2, %v2429_v2, 0.0 }
 0xf98   :  { %1383 = vrot.lane.b32.xlu1 %v2436_v58, %s1844_s2 }
 0xf9c   :  { %v2440_v39 = vpop.permute.xlu0 %1368 }
 0xf9d   :  { %vm1370_vm14 = vcmp.eq.s32.totalorder %v2440_v39, 1 }
 0xf9e   :  { %v1372_v21 = vsel %vm1370_vm14, %v2423_v62, %v2420_v30 }
 0xfb3   :  { %v1360_v38 = vpop.permute.xlu1 %1359 }
 0xfb4   :  { %v1362_v31 = vmul.f32 %v1360_v38, %v1343_v19 }
 0xfb6   :  { %v2446_v36 = vsel %vm1370_vm14, %v1362_v31, %v2389_v1  ;;  %v2450_v49 = vsel %vm1370_vm14, %v1362_v31, 0.0 }
 0xfb7   :  { %1464 = vrot.lane.b32.xlu2 %v2446_v36, %s1844_s2 }
0x100a   :  { %v1384_v37 = vpop.permute.xlu1 %1383 }
0x100b   :  { %1668 = vmatmul.msk.f32.vlgmr.msrb.gmra.mxu2 %vm224_vm1, %v1384_v37 }
0x1011   :  { %v1465_v17 = vpop.permute.xlu2 %1464 }
0x1012   :  { %1672 = vmatmul.msk.f32.vlgmr.msrb.gmra.mxu3 %vm224_vm1, %v1465_v17 }
0x108e   :  { %v1404_v10 = vpop.f32.mrf.mxu2 }
0x108f   :  { %v1407_v12 = vadd.f32 %v1404_v10, %v1381_v40 }
0x1091   :  { %1798 = vtanh.f32 %v1407_v12  ;;  %v1669_v32 = vmul.f32 -1.442695, %v1407_v12 }
0x1095   :  { %v1485_v1 = vpop.f32.mrf.mxu3 }
0x1096   :  { %v1488_v57 = vadd.f32 %v1485_v1, %v1462_v60  ;;  %v302_v60 = vsel %vm296_vm13, %v2054_v26, 0.0  ;;  %v635_v1 = vsel %vm632_vm9, %v2185_v48, 0.0 }
0x1097   :  { %v1799_v47 = vpop.eup %1798 }
0x1098   :  { %1800 = vtanh.f32 %v1488_v57  ;;  %1430 = vrot.lane.b32.xlu0 %v1799_v47, %s1845_s30  ;;  %v1673_v54 = vmul.f32 -1.442695, %v1488_v57  ;;  %v963_v57 = vsel %vm960_vm8, %v2315_v45, 0.0  ;;  %v799_v45 = vsel %vm796_vm12, %v2258_v18, 0.0 }
0x1099   :  { %1802 = vpow2.f32 %v1669_v32 }
0x109a   :  { %1804 = vpow2.f32 %v1673_v54 }
0x109e   :  { %v1801_v35 = vpop.eup %1800 }
0x109f   :  { %1511 = vrot.lane.b32.xlu1 %v1801_v35, %s1845_s30  ;;  %v1803_v22 = vpop.eup %1802 }
0x10a0   :  { %v1411_v42 = vadd.f32 1.0, %v1803_v22  ;;  %v1805_v59 = vpop.eup %1804 }
0x10a1   :  { %v1492_v28 = vadd.f32 1.0, %v1805_v59 }
0x10a2   :  { %1806 = vrcp.f32 %v1411_v42  ;;  %vm1417_vm3 = vweird.f32 %v1411_v42  ;;  %v1421_v24 = vand.u32 2147483647, %v1411_v42 }
0x10a3   :  { %1808 = vrcp.f32 %v1492_v28  ;;  %v1504_v38 = vand.u32 2147483648, %v1492_v28  ;;  %vm1498_vm7 = vweird.f32 %v1492_v28  ;;  %v1502_v31 = vand.u32 2147483647, %v1492_v28 }
0x10a4   :  { %vm1422_vm5 = vcmp.eq.f32.partialorder %v1421_v24, 8.507059e+37 }
0x10a5   :  { %v1505_v17 = vor.u32 1.1754944e-38, %v1504_v38 }
0x10a7   :  { %1531 = vperm.xlu1 %1685, %v2013_v5   ;;  %v1423_v5 = vand.u32 2147483648, %v1411_v42 }
0x10a8   :  { %v1807_v3 = vpop.eup %1806 }
0x10a9   :  { %v1413_v14 = vmul.f32 %v1807_v3, %v1411_v42  ;;  %v1809_v0 = vpop.eup %1808  ;;  %vm1418_vm1 = vweird.f32 %v1807_v3  ;;  %v1424_v20 = vor.u32 1.1754944e-38, %v1423_v5 }
0x10aa   :  { %v1494_v53 = vmul.f32 %v1809_v0, %v1492_v28  ;;  %vm1419_vm4 = vmor %vm1417_vm3, %vm1418_vm1  ;;  %vm1499_vm6 = vweird.f32 %v1809_v0  ;;  %vm1503_vm1 = vcmp.eq.f32.partialorder %v1502_v31, 8.507059e+37 }
0x10ab   :  { %v1414_v52 = vsub.f32 1.0, %v1413_v14  ;;  %vm1500_vm15 = vmor %vm1498_vm7, %vm1499_vm6 }
0x10ac   :  { %v1495_v19 = vsub.f32 1.0, %v1494_v53 }
0x10ad   :  { %v1415_v11 = vmul.f32 %v1807_v3, %v1414_v52 }
0x10ae   :  { %v1496_v9 = vmul.f32 %v1809_v0, %v1495_v19 }
0x10af   :  { %v1416_v56 = vadd.f32 %v1807_v3, %v1415_v11 }
0x10b0   :  { %v1497_v16 = vadd.f32 %v1809_v0, %v1496_v9 }
0x10b1   :  { %v1420_v4 = vsel %vm1419_vm4, %v1807_v3, %v1416_v56 }
0x10b2   :  { %v2459_v51 = vsel %vm1422_vm5, %v1424_v20, %v1420_v4  ;;  %v1501_v37 = vsel %vm1500_vm15, %v1809_v0, %v1497_v16 }
0x10b3   :  { %v1506_v10 = vsel %vm1503_vm1, %v1505_v17, %v1501_v37 }
0x110a   :  { %v1431_v55 = vpop.permute.xlu0 %1430 }
0x110b   :  { %v1433_v29 = vmul.f32 %v1431_v55, %v2459_v51 }
0x110d   :  { %1435 = vrot.lane.b32.xlu2 %v1433_v29, %s1844_s2 }
0x1111   :  { %v1512_v40 = vpop.permute.xlu1 %1511 }
0x1112   :  { %v1514_v12 = vmul.f32 %v1512_v40, %v1506_v10 }
0x1114   :  { %1516 = vrot.lane.b32.xlu0 %v1514_v12, %s1844_s2 }
0x1115   :  { %304 = vrot.lane.b32.xlu2 %v302_v60, %s1844_s2 }
0x1119   :  { %v1532_v62 = vpop.permute.xlu1 %1531 }
0x111a   :  { %vm1533_vm10 = vcmp.eq.s32.totalorder %v1532_v62, 1 }
0x111c   :  { %1450 = vperm.xlu0 %1684, %v2033_v15   ;;  %v1290_v15 = vsel %vm1288_vm2, %v2411_v63, %v2408_v13  ;;  %v1509_v13 = vmul.f32 %v1506_v10, %v1372_v21 }
0x1124   :  { %391 = vrot.lane.b32.xlu0 %v2050_v33, %s1844_s2  ;;  %v1428_v33 = vmul.f32 %v2459_v51, %v1290_v15 }
0x112c   :  { %637 = vrot.lane.b32.xlu0 %v635_v1, %s1844_s2 }
0x1134   :  { %883 = vrot.lane.b32.xlu0 %v2279_v25, %s1844_s2 }
0x113c   :  { %1129 = vrot.lane.b32.xlu0 %v1127_v23, %s1844_s2 }
0x1144   :  { %1375 = vrot.lane.b32.xlu0 %v2450_v49, %s1844_s2 }
0x1167   :  { %v1436_v26 = vpop.permute.xlu2 %1435 }
0x1168   :  { %v1438_v34 = vadd.f32 %v1436_v26, %v1428_v33 }
0x116a   :  { %1810 = vtanh.f32 %v1438_v34 }
0x116f   :  { %v305_v48 = vpop.permute.xlu2 %304 }
0x1170   :  { %v1811_v25 = vpop.eup %1810  ;;  %308 = vst.msk [vmem:[%s2602_s4] sm:$0x3] %vm203_vm0, %v305_v48 }
0x1171   :  { %1441 = vrot.lane.b32.xlu1 %v1811_v25, %s1845_s30 }
0x1179   :  { %473 = vrot.lane.b32.xlu1 %v471_v61, %s1844_s2 }
0x1181   :  { %719 = vrot.lane.b32.xlu1 %v2206_v7, %s1844_s2 }
0x1186   :  { %v1517_v63 = vpop.permute.xlu0 %1516 }
0x1187   :  { %v1519_v49 = vadd.f32 %v1517_v63, %v1509_v13 }
0x1189   :  { %1812 = vtanh.f32 %v1519_v49  ;;  %965 = vrot.lane.b32.xlu1 %v963_v57, %s1844_s2  ;;  %v1535_v22 = vsel %vm1533_vm10, %v1519_v49, %v1372_v21 }
0x118e   :  { %v1451_v6 = vpop.permute.xlu0 %1450 }
0x118f   :  { %v1813_v43 = vpop.eup %1812  ;;  %vm1452_vm13 = vcmp.eq.s32.totalorder %v1451_v6, 1 }
0x1190   :  { %1522 = vrot.lane.b32.xlu2 %v1813_v43, %s1845_s30  ;;  %v1454_v7 = vsel %vm1452_vm13, %v1438_v34, %v1290_v15 }
0x1191   :  { %1211 = vrot.lane.b32.xlu1 %v2393_v8, %s1844_s2 }
0x1196   :  { %v392_v30 = vpop.permute.xlu0 %391 }
0x1197   :  { %1619 = vst.msk [vmem:[%s2603_s5 + $0xe] sm:$0x3] %vm203_vm0, %v392_v30 }
0x1198   :  { %555 = vrot.lane.b32.xlu2 %v2133_v50, %s1844_s2 }
0x119e   :  { %v638_v41 = vpop.permute.xlu0 %637 }
0x119f   :  { %1631 = vst.msk [vmem:[%s2602_s4 + $0x4] sm:$0x3] %vm203_vm0, %v638_v41 }
0x11a0   :  { %801 = vrot.lane.b32.xlu2 %v799_v45, %s1844_s2 }
0x11a6   :  { %v884_v8 = vpop.permute.xlu0 %883 }
0x11a7   :  { %1643 = vst.msk [vmem:[%s2603_s5 + $0x8] sm:$0x3] %vm203_vm0, %v884_v8 }
0x11a8   :  { %1047 = vrot.lane.b32.xlu2 %v2336_v46, %s1844_s2 }
0x11ae   :  { %v1130_v50 = vpop.permute.xlu0 %1129 }
0x11af   :  { %1655 = vst.msk [vmem:[%s2602_s4 + $0xa] sm:$0x3] %vm203_vm0, %v1130_v50 }
0x11b0   :  { %1293 = vrot.lane.b32.xlu2 %v1291_v44, %s1844_s2 }
0x11b6   :  { %v1376_v18 = vpop.permute.xlu0 %1375 }
0x11b7   :  { %1667 = vst.msk [vmem:[%s2603_s5 + $0x2] sm:$0x3] %vm203_vm0, %v1376_v18 }
0x11e3   :  { %v1442_v46 = vpop.permute.xlu1 %1441 }
0x11e4   :  { %v1444_v39 = vmul.f32 %v1442_v46, %v2459_v51 }
0x11e6   :  { %v1455_v47 = vsel %vm1452_vm13, %v1444_v39, 0.0  ;;  %v1453_v35 = vsel %vm1452_vm13, %v1444_v39, %v2436_v58 }
0x11e7   :  { %1457 = vrot.lane.b32.xlu1 %v1455_v47, %s1844_s2  ;;  %1543 = vrot.lane.b32.xlu0 %v1453_v35, %s1844_s2 }
0x11ea   :  { %v1523_v27 = vpop.permute.xlu2 %1522 }
0x11eb   :  { %v1525_v2 = vmul.f32 %v1523_v27, %v1506_v10  ;;  %v474_v32 = vpop.permute.xlu1 %473 }
0x11ec   :  { %1623 = vst.msk [vmem:[%s2602_s4 + $0x2] sm:$0x3] %vm203_vm0, %v474_v32 }
0x11ed   :  { %v1536_v54 = vsel %vm1533_vm10, %v1525_v2, 0.0  ;;  %v1534_v59 = vsel %vm1533_vm10, %v1525_v2, %v2446_v36 }
0x11ee   :  { %1538 = vrot.lane.b32.xlu2 %v1536_v54, %s1844_s2 }
0x11ef   :  { %1548 = vrot.lane.b32.xlu1 %v1454_v7, %s1847_s8  ;;  %1558 = vrot.lane.b32.xlu0 %v1535_v22, %s1847_s8 }
0x11f2   :  { %v556_v58 = vpop.permute.xlu2 %555 }
0x11f3   :  { %1627 = vst.msk [vmem:[%s2603_s5 + $0xc] sm:$0x3] %vm203_vm0, %v556_v58  ;;  %v720_v42 = vpop.permute.xlu1 %719 }
0x11f4   :  { %1635 = vst.msk [vmem:[%s2603_s5 + $0xa] sm:$0x3] %vm203_vm0, %v720_v42 }
0x11f6   :  { %1553 = vrot.lane.b32.xlu2 %v1534_v59, %s1844_s2 }
0x11fa   :  { %v802_v28 = vpop.permute.xlu2 %801 }
0x11fb   :  { %1639 = vst.msk [vmem:[%s2602_s4 + $0x6] sm:$0x3] %vm203_vm0, %v802_v28  ;;  %v966_v3 = vpop.permute.xlu1 %965 }
0x11fc   :  { %1647 = vst.msk [vmem:[%s2602_s4 + $0x8] sm:$0x3] %vm203_vm0, %v966_v3 }
0x1202   :  { %v1048_v14 = vpop.permute.xlu2 %1047 }
0x1203   :  { %1651 = vst.msk [vmem:[%s2603_s5 + $0x6] sm:$0x3] %vm203_vm0, %v1048_v14  ;;  %v1212_v36 = vpop.permute.xlu1 %1211 }
0x1204   :  { %1659 = vst.msk [vmem:[%s2603_s5 + $0x4] sm:$0x3] %vm203_vm0, %v1212_v36 }
0x120a   :  { %v1294_v0 = vpop.permute.xlu2 %1293 }
0x120b   :  { %1663 = vst.msk [vmem:[%s2602_s4 + $0xc] sm:$0x3] %vm203_vm0, %v1294_v0 }
0x1248   :  { %v1539_v52 = vpop.permute.xlu2 %1538 }
0x1249   :  { %1541 = vst.msk [vmem:[%s2603_s5] sm:$0x3] %vm203_vm0, %v1539_v52 }
0x1250   :  { %v1554_v53 = vpop.permute.xlu2 %1553 }
0x1251   :  { %1556 = vst.msk [vmem:[#allocation4] sm:$0x3] %vm203_vm0, %v1554_v53 }
0x1259   :  { %v1458_v11 = vpop.permute.xlu1 %1457  ;;  %v1544_v19 = vpop.permute.xlu0 %1543 }
0x125a   :  { %1671 = vst.msk [vmem:[%s2602_s4 + $0xe] sm:$0x3] %vm203_vm0, %v1458_v11 }
0x125b   :  { %1546 = vst.msk [vmem:[#allocation2] sm:$0x3] %vm203_vm0, %v1544_v19 }
0x1261   :  { %v1549_v56 = vpop.permute.xlu1 %1548  ;;  %v1559_v5 = vpop.permute.xlu0 %1558 }
0x1262   :  { %1551 = vst.msk [vmem:[#allocation3] sm:$0x3] %vm203_vm0, %v1549_v56 }
0x1263   :  { %1561 = vst.msk [vmem:[#allocation5] sm:$0x3] %vm203_vm0, %v1559_v5 }
0x1264   :  { %1584 = vsyncpa [#allocation9], 1 }

// kernel: stacked_shortcut_lstm.4
= control target key start
LH: loop header
LB: loop body
LE: loop exit
PB: predicated region body
PF: predicated region fallthrough
CT: control target
= control target key end

     0   :  { %vm187_vm0 = vcmask 254976   ;;  %v1798_v4 = vmov 0.0   ;;  %vm208_vm1 = vcmask 261120   ;;  %s1800_s13 = smov 64   ;;  %v1801_v30 = vmov 0   ;;  %s1802_s16 = smov 96   ;;  %s2574_s0 = inlined_call_operand.vmem [shape: s32[2,1], index: 0, kind: input, shape index: {}]   ;;  %s2575_s1 = inlined_call_operand.vmem [shape: f32[8,2,256], index: 1, kind: input, shape index: {}, may-alias: {1,2}]   ;;  %s2576_s2 = inlined_call_operand.vmem [shape: f32[8,2,256], index: 2, kind: input, shape index: {}, may-alias: {1,2}]   ;;  %s2577_s3 = inlined_call_operand.vmem [shape: f32[2,32,128], index: 3, kind: input, shape index: {}]   ;;  %s2578_s4 = inlined_call_operand.vmem [shape: f32[8,2,32], index: 4, kind: output, shape index: {0}]   ;;  %s2579_s5 = inlined_call_operand.vmem [shape: f32[8,2,32], index: 5, kind: output, shape index: {1}]  }
   0x1   :  { %v1836_v0 = vld [vmem:[%s2577_s3 + $0x18] sm:$0xff]  ;;  %v1846_v2 = vld [vmem:[%s2577_s3 + $0x10] sm:$0xff]  ;;  %188 = vst.msk [vmem:[#allocation2] sm:$0x3] %vm187_vm0, %v1798_v4  ;;  %v1859_v5 = vld [vmem:[%s2577_s3 + $0x8] sm:$0xff]  ;;  %1667 = vset.pattern.permute.xlu2 %v1801_v30  ;;  %1668 = vset.pattern.permute.xlu0 %v1801_v30 }
   0x2   :  { %v1841_v1 = vld [vmem:[%s2577_s3 + $0x38] sm:$0xff]  ;;  %224 = vmatpush.msra.mxu0 %v1836_v0  ;;  %v1853_v3 = vld [vmem:[%s2577_s3 + $0x30] sm:$0xff]  ;;  %v1864_v6 = vld [vmem:[%s2577_s3 + $0x28] sm:$0xff]  ;;  %189 = vst.msk [vmem:[#allocation3] sm:$0x3] %vm187_vm0, %v1798_v4  ;;  %399 = vmatpush.msra.mxu2 %v1836_v0 }
   0x3   :  { %310 = vmatpush.msra.mxu1 %v1841_v1  ;;  %v31_v7 = vld [vmem:[%s2575_s1] sm:$0x3]  ;;  %481 = vmatpush.msra.mxu3 %v1841_v1  ;;  %190 = vst.msk [vmem:[#allocation4] sm:$0x3] %vm187_vm0, %v1798_v4  ;;  %v1595_v14 = vld [vmem:[%s2576_s2 + $0x1e] sm:$0x3] }
   0x4   :  { %225 = vmatpush.msra.mxu0 %v1846_v2  ;;  %v1878_v8 = vld [vmem:[%s2577_s3] sm:$0xff]  ;;  %191 = vst.msk [vmem:[#allocation5] sm:$0x3] %vm187_vm0, %v1798_v4  ;;  %400 = vmatpush.msra.mxu2 %v1846_v2 }
   0x5   :  { %311 = vmatpush.msra.mxu1 %v1853_v3  ;;  %v1883_v9 = vld [vmem:[%s2577_s3 + $0x20] sm:$0xff]  ;;  %482 = vmatpush.msra.mxu3 %v1853_v3  ;;  %32 = vst [vmem:[#allocation6] sm:$0x3] %v31_v7  ;;  %s1799_s3 = smov 32  }
   0x6   :  { %226 = vmatpush.msra.mxu0 %v1859_v5  ;;  %401 = vmatpush.msra.mxu2 %v1859_v5  ;;  %123 = vst [vmem:[#allocation7 + $0xe] sm:$0x3] %v1595_v14  ;;  %v1942_v54 = vld [vmem:[%s2574_s0] sm:$0x3] }
   0x7   :  { %312 = vmatpush.msra.mxu1 %v1864_v6  ;;  %483 = vmatpush.msra.mxu3 %v1864_v6  ;;  %vm1602_vm10 = vcmp.gt.s32.totalorder %v1942_v54, 0  ;;  %vm1605_vm11 = vcmp.gt.s32.totalorder %v1942_v54, 7 }
   0x8   :  { %227 = vmatpush.msra.mxu0 %v1878_v8  ;;  %v1894_v10 = vld [vmem:[#allocation2] sm:$0x3]  ;;  %402 = vmatpush.msra.mxu2 %v1878_v8  ;;  %v1947_v55 = vsel %vm1602_vm10, 1, %v1801_v30  ;;  %v1967_v7 = vsel %vm1605_vm11, 1, %v1801_v30 }
   0x9   :  { %313 = vmatpush.msra.mxu1 %v1883_v9  ;;  %484 = vmatpush.msra.mxu3 %v1883_v9  ;;  %v204_v11 = vld [vmem:[#allocation3] sm:$0x3] }
   0xa   :  { %1600 = vmatmul.msk.f32.vlgmr.msra.gmra.mxu0 %vm208_vm1, %v1894_v10  ;;  %v1901_v12 = vld [vmem:[#allocation4] sm:$0x3]  ;;  %254 = vrot.lane.b32.xlu1 %v204_v11, %s1799_s3 }
   0xb   :  { %645 = vmatpush.msrb.mxu1 %v1841_v1  ;;  %563 = vmatpush.msrb.mxu0 %v1836_v0  ;;  %v206_v13 = vld [vmem:[#allocation5] sm:$0x3] }
   0xc   :  { %1603 = vmatmul.msk.f32.vlgmr.msra.gmra.mxu1 %vm208_vm1, %v1901_v12  ;;  %727 = vmatpush.msrb.mxu2 %v1836_v0  ;;  %v207_v15 = vld [vmem:[#allocation6] sm:$0x3] }
   0xd   :  { %564 = vmatpush.msrb.mxu0 %v1846_v2  ;;  %646 = vmatpush.msrb.mxu1 %v1853_v3  ;;  %v294_v18 = vld [vmem:[#allocation7 + $0xe] sm:$0x3] }
   0xe   :  { %728 = vmatpush.msrb.mxu2 %v1846_v2  ;;  %809 = vmatpush.msrb.mxu3 %v1841_v1 }
   0xf   :  { %565 = vmatpush.msrb.mxu0 %v1859_v5  ;;  %647 = vmatpush.msrb.mxu1 %v1864_v6 }
  0x10   :  { %729 = vmatpush.msrb.mxu2 %v1859_v5  ;;  %810 = vmatpush.msrb.mxu3 %v1853_v3 }
  0x11   :  { %566 = vmatpush.msrb.mxu0 %v1878_v8  ;;  %648 = vmatpush.msrb.mxu1 %v1883_v9 }
  0x12   :  { %730 = vmatpush.msrb.mxu2 %v1878_v8  ;;  %811 = vmatpush.msrb.mxu3 %v1864_v6 }
  0x13   :  { %340 = vrot.lane.b32.xlu1 %v206_v13, %s1799_s3  ;;  %891 = vmatpush.msra.mxu0 %v1836_v0 }
  0x14   :  { %812 = vmatpush.msrb.mxu3 %v1883_v9  ;;  %973 = vmatpush.msra.mxu1 %v1841_v1 }
  0x15   :  { %892 = vmatpush.msra.mxu0 %v1846_v2  ;;  %1669 = vset.pattern.permute.xlu1 %v1801_v30 }
  0x16   :  { %974 = vmatpush.msra.mxu1 %v1853_v3 }
  0x17   :  { %893 = vmatpush.msra.mxu0 %v1859_v5 }
  0x18   :  { %975 = vmatpush.msra.mxu1 %v1864_v6 }
  0x19   :  { %894 = vmatpush.msra.mxu0 %v1878_v8 }
  0x1a   :  { %976 = vmatpush.msra.mxu1 %v1883_v9 }
  0x7c   :  { %v1952_v56 = vpop.permute.xlu1 %254 }
  0x85   :  { %v1958_v60 = vpop.permute.xlu1 %340 }
  0x87   :  { %v229_v16 = vpop.f32.mrf.mxu0 }
  0x88   :  { %v232_v17 = vadd.f32 %v229_v16, %v207_v15 }
  0x89   :  { %v315_v19 = vpop.f32.mrf.mxu1 }
  0x8a   :  { %1670 = vtanh.f32 %v232_v17  ;;  %v318_v20 = vadd.f32 %v315_v19, %v294_v18  ;;  %v1601_v23 = vmul.f32 -1.442695, %v232_v17 }
  0x8c   :  { %1672 = vtanh.f32 %v318_v20  ;;  %v1604_v24 = vmul.f32 -1.442695, %v318_v20 }
  0x8d   :  { %1674 = vpow2.f32 %v1601_v23 }
  0x8e   :  { %1676 = vpow2.f32 %v1604_v24 }
  0x90   :  { %v1671_v21 = vpop.eup %1670 }
  0x91   :  { %259 = vrot.lane.b32.xlu0 %v1671_v21, %s1800_s13 }
  0x92   :  { %v1673_v22 = vpop.eup %1672 }
  0x93   :  { %v1675_v25 = vpop.eup %1674 }
  0x94   :  { %v236_v26 = vadd.f32 1.0, %v1675_v25  ;;  %v1677_v27 = vpop.eup %1676  ;;  %v33_v25 = vld [vmem:[%s2575_s1 + $0x4] sm:$0x3] }
  0x95   :  { %v322_v28 = vadd.f32 1.0, %v1677_v27  ;;  %34 = vst [vmem:[#allocation6 + $0x2] sm:$0x3] %v33_v25 }
  0x96   :  { %1678 = vrcp.f32 %v236_v26  ;;  %v248_v38 = vand.u32 2147483648, %v236_v26  ;;  %vm242_vm3 = vweird.f32 %v236_v26  ;;  %v246_v39 = vand.u32 2147483647, %v236_v26 }
  0x97   :  { %1680 = vrcp.f32 %v322_v28  ;;  %vm328_vm6 = vweird.f32 %v322_v28  ;;  %v334_v47 = vand.u32 2147483648, %v322_v28  ;;  %v332_v48 = vand.u32 2147483647, %v322_v28 }
  0x98   :  { %v249_v42 = vor.u32 1.1754944e-38, %v248_v38  ;;  %vm247_vm5 = vcmp.eq.f32.partialorder %v246_v39, 8.507059e+37 }
  0x99   :  { %345 = vrot.lane.b32.xlu0 %v1673_v22, %s1800_s13  ;;  %v335_v50 = vor.u32 1.1754944e-38, %v334_v47  ;;  %vm333_vm9 = vcmp.eq.f32.partialorder %v332_v48, 8.507059e+37  ;;  %v1594_v22 = vld [vmem:[%s2576_s2 + $0x1a] sm:$0x3] }
  0x9a   :  { %121 = vst [vmem:[#allocation7 + $0xc] sm:$0x3] %v1594_v22 }
  0x9c   :  { %v1679_v29 = vpop.eup %1678 }
  0x9d   :  { %v238_v31 = vmul.f32 %v1679_v29, %v236_v26  ;;  %v1681_v33 = vpop.eup %1680  ;;  %vm243_vm2 = vweird.f32 %v1679_v29 }
  0x9e   :  { %v324_v35 = vmul.f32 %v1681_v33, %v322_v28  ;;  %vm244_vm4 = vmor %vm242_vm3, %vm243_vm2  ;;  %vm329_vm7 = vweird.f32 %v1681_v33 }
  0x9f   :  { %v239_v32 = vsub.f32 1.0, %v238_v31  ;;  %vm330_vm8 = vmor %vm328_vm6, %vm329_vm7  ;;  %v381_v31 = vld [vmem:[#allocation6 + $0x2] sm:$0x3] }
  0xa0   :  { %v325_v37 = vsub.f32 1.0, %v324_v35 }
  0xa1   :  { %v240_v34 = vmul.f32 %v1679_v29, %v239_v32  ;;  %v463_v26 = vld [vmem:[#allocation7 + $0xc] sm:$0x3] }
  0xa2   :  { %v326_v41 = vmul.f32 %v1681_v33, %v325_v37 }
  0xa3   :  { %v241_v36 = vadd.f32 %v1679_v29, %v240_v34 }
  0xa4   :  { %v327_v45 = vadd.f32 %v1681_v33, %v326_v41 }
  0xa5   :  { %v245_v40 = vsel %vm244_vm4, %v1679_v29, %v241_v36  ;;  %vm1609_vm4 = vcmp.gt.s32.totalorder %v1942_v54, 1 }
  0xa6   :  { %v250_v43 = vsel %vm247_vm5, %v249_v42, %v245_v40  ;;  %v331_v49 = vsel %vm330_vm8, %v1681_v33, %v327_v45 }
  0xa7   :  { %v336_v51 = vsel %vm333_vm9, %v335_v50, %v331_v49  ;;  %v257_v57 = vmul.f32 %v1952_v56, %v250_v43  ;;  %vm1613_vm9 = vcmp.gt.s32.totalorder %v1942_v54, 6 }
  0xa8   :  { %v343_v61 = vmul.f32 %v1958_v60, %v336_v51 }
 0x103   :  { %v260_v44 = vpop.permute.xlu0 %259 }
 0x104   :  { %v262_v46 = vmul.f32 %v260_v44, %v250_v43 }
 0x106   :  { %264 = vrot.lane.b32.xlu2 %v262_v46, %s1799_s3 }
 0x10b   :  { %v346_v52 = vpop.permute.xlu0 %345 }
 0x10c   :  { %v348_v53 = vmul.f32 %v346_v52, %v336_v51 }
 0x10e   :  { %350 = vrot.lane.b32.xlu2 %v348_v53, %s1799_s3 }
 0x116   :  { %278 = vperm.xlu2 %1667, %v1947_v55  }
 0x11e   :  { %368 = vrot.lane.b32.xlu2 %v1901_v12, %s1802_s16 }
 0x160   :  { %v265_v58 = vpop.permute.xlu2 %264 }
 0x161   :  { %v1955_v59 = vadd.f32 %v265_v58, %v257_v57  ;;  %v2019_v57 = vsel %vm1609_vm4, 1, %v1801_v30 }
 0x163   :  { %1682 = vtanh.f32 %v1955_v59 }
 0x168   :  { %v351_v62 = vpop.permute.xlu2 %350 }
 0x169   :  { %v1683_v63 = vpop.eup %1682  ;;  %v1961_v4 = vadd.f32 %v351_v62, %v343_v61 }
 0x16a   :  { %270 = vrot.lane.b32.xlu0 %v1683_v63, %s1800_s13 }
 0x16b   :  { %1684 = vtanh.f32 %v1961_v4 }
 0x170   :  { %v1973_v12 = vpop.permute.xlu2 %278 }
 0x171   :  { %v1685_v11 = vpop.eup %1684  ;;  %vm280_vm13 = vcmp.eq.s32.totalorder %v1973_v12, 1 }
 0x172   :  { %356 = vrot.lane.b32.xlu1 %v1685_v11, %s1800_s13  ;;  %365 = vperm.xlu0 %1668, %v1967_v7  }
 0x178   :  { %v369_v14 = vpop.permute.xlu2 %368 }
 0x17a   :  { %281 = vrot.lane.b32.xlu1 %v1894_v10, %s1802_s16 }
 0x1dc   :  { %v271_v13 = vpop.permute.xlu0 %270 }
 0x1dd   :  { %v1988_v10 = vmul.f32 %v271_v13, %v250_v43 }
 0x1e4   :  { %v357_v15 = vpop.permute.xlu1 %356  ;;  %v1975_v16 = vpop.permute.xlu0 %365 }
 0x1e5   :  { %v359_v17 = vmul.f32 %v357_v15, %v336_v51  ;;  %vm367_vm12 = vcmp.eq.s32.totalorder %v1975_v16, 1  ;;  %v2047_v16 = vsel %vm1613_vm9, 1, %v1801_v30 }
 0x1e7   :  { %v1980_v18 = vsel %vm367_vm12, %v359_v17, %v369_v14  ;;  %v1984_v19 = vsel %vm367_vm12, %v359_v17, 0.0 }
 0x1e8   :  { %465 = vrot.lane.b32.xlu2 %v1980_v18, %s1799_s3 }
 0x1ec   :  { %v282_v20 = vpop.permute.xlu1 %281 }
 0x1ed   :  { %v1994_v21 = vsel %vm280_vm13, %v1988_v10, %v282_v20 }
 0x1ee   :  { %383 = vrot.lane.b32.xlu1 %v1994_v21, %s1799_s3 }
 0x242   :  { %v466_v23 = vpop.permute.xlu2 %465 }
 0x243   :  { %1611 = vmatmul.msk.f32.vlgmr.msra.gmra.mxu3 %vm208_vm1, %v466_v23  ;;  %v2027_v23 = vsel %vm367_vm12, %v1961_v4, %v1958_v60 }
 0x244   :  { %1137 = vmatpush.msra.mxu3 %v1841_v1 }
 0x246   :  { %1138 = vmatpush.msra.mxu3 %v1853_v3 }
 0x248   :  { %1139 = vmatpush.msra.mxu3 %v1864_v6 }
 0x24a   :  { %1140 = vmatpush.msra.mxu3 %v1883_v9 }
 0x260   :  { %v384_v24 = vpop.permute.xlu1 %383 }
 0x261   :  { %1607 = vmatmul.msk.f32.vlgmr.msra.gmra.mxu2 %vm208_vm1, %v384_v24 }
 0x262   :  { %1055 = vmatpush.msra.mxu2 %v1836_v0 }
 0x264   :  { %1056 = vmatpush.msra.mxu2 %v1846_v2 }
 0x266   :  { %1057 = vmatpush.msra.mxu2 %v1859_v5 }
 0x268   :  { %1058 = vmatpush.msra.mxu2 %v1878_v8 }
 0x2c6   :  { %v486_v27 = vpop.f32.mrf.mxu3 }
 0x2c7   :  { %v489_v28 = vadd.f32 %v486_v27, %v463_v26  ;;  %v2037_v27 = vsel %vm280_vm13, %v1955_v59, %v1952_v56 }
 0x2c9   :  { %1686 = vtanh.f32 %v489_v28  ;;  %v1612_v35 = vmul.f32 -1.442695, %v489_v28 }
 0x2cf   :  { %v1687_v29 = vpop.eup %1686 }
 0x2d0   :  { %512 = vrot.lane.b32.xlu1 %v1687_v29, %s1800_s13 }
 0x2e4   :  { %v404_v32 = vpop.f32.mrf.mxu2 }
 0x2e5   :  { %v407_v33 = vadd.f32 %v404_v32, %v381_v31 }
 0x2e7   :  { %1688 = vtanh.f32 %v407_v33  ;;  %v1608_v40 = vmul.f32 -1.442695, %v407_v33 }
 0x2e8   :  { %1690 = vpow2.f32 %v1612_v35 }
 0x2ed   :  { %v1689_v34 = vpop.eup %1688 }
 0x2ee   :  { %430 = vrot.lane.b32.xlu0 %v1689_v34, %s1800_s13  ;;  %v1691_v36 = vpop.eup %1690 }
 0x2ef   :  { %v493_v37 = vadd.f32 1.0, %v1691_v36 }
 0x2f1   :  { %1692 = vrcp.f32 %v493_v37  ;;  %v505_v44 = vand.u32 2147483648, %v493_v37  ;;  %vm499_vm15 = vweird.f32 %v493_v37  ;;  %v503_v46 = vand.u32 2147483647, %v493_v37 }
 0x2f2   :  { %1694 = vpow2.f32 %v1608_v40  ;;  %v1593_v40 = vld [vmem:[%s2576_s2 + $0x16] sm:$0x3] }
 0x2f3   :  { %v506_v49 = vor.u32 1.1754944e-38, %v505_v44  ;;  %vm504_vm3 = vcmp.eq.f32.partialorder %v503_v46, 8.507059e+37  ;;  %119 = vst [vmem:[#allocation7 + $0xa] sm:$0x3] %v1593_v40 }
 0x2f7   :  { %v1693_v38 = vpop.eup %1692 }
 0x2f8   :  { %v495_v39 = vmul.f32 %v1693_v38, %v493_v37  ;;  %vm500_vm14 = vweird.f32 %v1693_v38  ;;  %v1695_v45 = vpop.eup %1694 }
 0x2f9   :  { %vm501_vm2 = vmor %vm499_vm15, %vm500_vm14  ;;  %v411_v48 = vadd.f32 1.0, %v1695_v45 }
 0x2fa   :  { %v496_v41 = vsub.f32 1.0, %v495_v39  ;;  %v35_v39 = vld [vmem:[%s2575_s1 + $0x8] sm:$0x3]  ;;  %v627_v45 = vld [vmem:[#allocation7 + $0xa] sm:$0x3] }
 0x2fb   :  { %1696 = vrcp.f32 %v411_v48  ;;  %v423_v11 = vand.u32 2147483648, %v411_v48  ;;  %vm417_vm6 = vweird.f32 %v411_v48  ;;  %v421_v13 = vand.u32 2147483647, %v411_v48  ;;  %36 = vst [vmem:[#allocation6 + $0x4] sm:$0x3] %v35_v39 }
 0x2fc   :  { %v497_v42 = vmul.f32 %v1693_v38, %v496_v41 }
 0x2fd   :  { %v424_v15 = vor.u32 1.1754944e-38, %v423_v11  ;;  %vm422_vm8 = vcmp.eq.f32.partialorder %v421_v13, 8.507059e+37 }
 0x2fe   :  { %v498_v43 = vadd.f32 %v1693_v38, %v497_v42 }
 0x300   :  { %v502_v47 = vsel %vm501_vm2, %v1693_v38, %v498_v43 }
 0x301   :  { %v507_v51 = vsel %vm504_vm3, %v506_v49, %v502_v47  ;;  %v1697_v53 = vpop.eup %1696 }
 0x302   :  { %v413_v58 = vmul.f32 %v1697_v53, %v411_v48  ;;  %vm418_vm5 = vweird.f32 %v1697_v53  ;;  %v510_v24 = vmul.f32 %v507_v51, %v2027_v23  ;;  %v545_v41 = vld [vmem:[#allocation6 + $0x4] sm:$0x3] }
 0x303   :  { %vm419_vm7 = vmor %vm417_vm6, %vm418_vm5 }
 0x304   :  { %v414_v61 = vsub.f32 1.0, %v413_v58 }
 0x306   :  { %v415_v62 = vmul.f32 %v1697_v53, %v414_v61 }
 0x308   :  { %v416_v63 = vadd.f32 %v1697_v53, %v415_v62 }
 0x30a   :  { %v420_v14 = vsel %vm419_vm7, %v1697_v53, %v416_v63  ;;  %vm1617_vm7 = vcmp.gt.s32.totalorder %v1942_v54, 2 }
 0x30b   :  { %v425_v17 = vsel %vm422_vm8, %v424_v15, %v420_v14  ;;  %vm1621_vm8 = vcmp.gt.s32.totalorder %v1942_v54, 5 }
 0x30c   :  { %v428_v28 = vmul.f32 %v425_v17, %v2037_v27 }
 0x342   :  { %v513_v50 = vpop.permute.xlu1 %512 }
 0x343   :  { %v515_v52 = vmul.f32 %v513_v50, %v507_v51 }
 0x345   :  { %517 = vrot.lane.b32.xlu0 %v515_v52, %s1799_s3 }
 0x34d   :  { %450 = vperm.xlu0 %1668, %v2019_v57  }
 0x360   :  { %v431_v20 = vpop.permute.xlu0 %430 }
 0x361   :  { %v433_v22 = vmul.f32 %v431_v20, %v425_v17 }
 0x363   :  { %435 = vrot.lane.b32.xlu2 %v433_v22, %s1799_s3 }
 0x3b7   :  { %v518_v25 = vpop.permute.xlu0 %517 }
 0x3b8   :  { %v2030_v26 = vadd.f32 %v518_v25, %v510_v24 }
 0x3ba   :  { %1698 = vtanh.f32 %v2030_v26 }
 0x3bd   :  { %v436_v29 = vpop.permute.xlu2 %435 }
 0x3be   :  { %v2040_v31 = vadd.f32 %v436_v29, %v428_v28 }
 0x3bf   :  { %v2050_v56 = vpop.permute.xlu0 %450 }
 0x3c0   :  { %v1699_v60 = vpop.eup %1698  ;;  %1700 = vtanh.f32 %v2040_v31  ;;  %vm452_vm10 = vcmp.eq.s32.totalorder %v2050_v56, 1 }
 0x3c1   :  { %523 = vrot.lane.b32.xlu2 %v1699_v60, %s1800_s13 }
 0x3c6   :  { %v1701_v4 = vpop.eup %1700 }
 0x3c7   :  { %441 = vrot.lane.b32.xlu1 %v1701_v4, %s1800_s13 }
 0x3cf   :  { %532 = vperm.xlu1 %1669, %v2047_v16  }
 0x41b   :  { %v524_v34 = vpop.permute.xlu2 %523 }
 0x41c   :  { %v526_v35 = vmul.f32 %v524_v34, %v507_v51 }
 0x439   :  { %v442_v59 = vpop.permute.xlu1 %441 }
 0x43a   :  { %v2052_v32 = vmul.f32 %v442_v59, %v425_v17 }
 0x43c   :  { %v2059_v33 = vsel %vm452_vm10, %v2052_v32, %v1994_v21 }
 0x43d   :  { %547 = vrot.lane.b32.xlu2 %v2059_v33, %s1799_s3 }
 0x441   :  { %v2063_v36 = vpop.permute.xlu1 %532 }
 0x442   :  { %vm534_vm11 = vcmp.eq.s32.totalorder %v2063_v36, 1 }
 0x443   :  { %v2069_v37 = vsel %vm534_vm11, %v526_v35, %v1980_v18  ;;  %v2073_v38 = vsel %vm534_vm11, %v526_v35, 0.0 }
 0x444   :  { %629 = vrot.lane.b32.xlu0 %v2069_v37, %s1799_s3 }
 0x497   :  { %v548_v21 = vpop.permute.xlu2 %547 }
 0x498   :  { %1615 = vmatmul.msk.f32.vlgmr.msrb.gmra.mxu0 %vm208_vm1, %v548_v21 }
 0x499   :  { %1219 = vmatpush.msrb.mxu0 %v1836_v0 }
 0x49b   :  { %1220 = vmatpush.msrb.mxu0 %v1846_v2 }
 0x49d   :  { %1221 = vmatpush.msrb.mxu0 %v1859_v5 }
 0x49f   :  { %1222 = vmatpush.msrb.mxu0 %v1878_v8 }
 0x4b6   :  { %v630_v18 = vpop.permute.xlu0 %629 }
 0x4b7   :  { %1619 = vmatmul.msk.f32.vlgmr.msrb.gmra.mxu1 %vm208_vm1, %v630_v18 }
 0x4b8   :  { %1301 = vmatpush.msrb.mxu1 %v1841_v1 }
 0x4ba   :  { %1302 = vmatpush.msrb.mxu1 %v1853_v3 }
 0x4bc   :  { %1303 = vmatpush.msrb.mxu1 %v1864_v6 }
 0x4be   :  { %1304 = vmatpush.msrb.mxu1 %v1883_v9 }
 0x515   :  { %v568_v42 = vpop.f32.mrf.mxu0 }
 0x516   :  { %v571_v43 = vadd.f32 %v568_v42, %v545_v41  ;;  %v2099_v42 = vsel %vm1617_vm7, 1, %v1801_v30  ;;  %vm1625_vm7 = vcmp.gt.s32.totalorder %v1942_v54, 3 }
 0x518   :  { %1702 = vtanh.f32 %v571_v43  ;;  %v1616_v49 = vmul.f32 -1.442695, %v571_v43  ;;  %v2106_v43 = vsel %vm452_vm10, %v2040_v31, %v2037_v27  ;;  %v2125_v31 = vsel %vm1621_vm8, 1, %v1801_v30 }
 0x519   :  { %vm1629_vm8 = vcmp.gt.s32.totalorder %v1942_v54, 4 }
 0x51e   :  { %v1703_v44 = vpop.eup %1702 }
 0x51f   :  { %594 = vrot.lane.b32.xlu1 %v1703_v44, %s1800_s13 }
 0x534   :  { %v650_v46 = vpop.f32.mrf.mxu1 }
 0x535   :  { %v653_v47 = vadd.f32 %v650_v46, %v627_v45 }
 0x537   :  { %1704 = vtanh.f32 %v653_v47  ;;  %v1620_v50 = vmul.f32 -1.442695, %v653_v47  ;;  %v2116_v47 = vsel %vm534_vm11, %v2030_v26, %v2027_v23 }
 0x538   :  { %1706 = vpow2.f32 %v1616_v49 }
 0x539   :  { %1708 = vpow2.f32 %v1620_v50 }
 0x53d   :  { %v1705_v48 = vpop.eup %1704 }
 0x53e   :  { %676 = vrot.lane.b32.xlu2 %v1705_v48, %s1800_s13  ;;  %v1707_v51 = vpop.eup %1706 }
 0x53f   :  { %v575_v52 = vadd.f32 1.0, %v1707_v51  ;;  %v1709_v53 = vpop.eup %1708 }
 0x540   :  { %v657_v58 = vadd.f32 1.0, %v1709_v53 }
 0x541   :  { %1710 = vrcp.f32 %v575_v52  ;;  %v587_v20 = vand.u32 2147483648, %v575_v52  ;;  %vm581_vm14 = vweird.f32 %v575_v52  ;;  %v585_v22 = vand.u32 2147483647, %v575_v52 }
 0x542   :  { %1712 = vrcp.f32 %v657_v58  ;;  %v669_v34 = vand.u32 2147483648, %v657_v58  ;;  %vm663_vm4 = vweird.f32 %v657_v58  ;;  %v667_v35 = vand.u32 2147483647, %v657_v58 }
 0x543   :  { %v588_v28 = vor.u32 1.1754944e-38, %v587_v20  ;;  %vm586_vm2 = vcmp.eq.f32.partialorder %v585_v22, 8.507059e+37 }
 0x544   :  { %v670_v39 = vor.u32 1.1754944e-38, %v669_v34  ;;  %vm668_vm6 = vcmp.eq.f32.partialorder %v667_v35, 8.507059e+37 }
 0x547   :  { %v1711_v61 = vpop.eup %1710 }
 0x548   :  { %v577_v62 = vmul.f32 %v1711_v61, %v575_v52  ;;  %v1713_v63 = vpop.eup %1712  ;;  %vm582_vm12 = vweird.f32 %v1711_v61 }
 0x549   :  { %v659_v13 = vmul.f32 %v1713_v63, %v657_v58  ;;  %vm583_vm15 = vmor %vm581_vm14, %vm582_vm12  ;;  %vm664_vm3 = vweird.f32 %v1713_v63 }
 0x54a   :  { %v578_v11 = vsub.f32 1.0, %v577_v62  ;;  %vm665_vm5 = vmor %vm663_vm4, %vm664_vm3 }
 0x54b   :  { %v660_v15 = vsub.f32 1.0, %v659_v13 }
 0x54c   :  { %v579_v14 = vmul.f32 %v1711_v61, %v578_v11  ;;  %v37_v11 = vld [vmem:[%s2575_s1 + $0xc] sm:$0x3] }
 0x54d   :  { %v661_v24 = vmul.f32 %v1713_v63, %v660_v15  ;;  %38 = vst [vmem:[#allocation6 + $0x6] sm:$0x3] %v37_v11 }
 0x54e   :  { %v580_v17 = vadd.f32 %v1711_v61, %v579_v14 }
 0x54f   :  { %v662_v4 = vadd.f32 %v1713_v63, %v661_v24 }
 0x550   :  { %v584_v25 = vsel %vm583_vm15, %v1711_v61, %v580_v17 }
 0x551   :  { %v589_v60 = vsel %vm586_vm2, %v588_v28, %v584_v25  ;;  %v666_v21 = vsel %vm665_vm5, %v1713_v63, %v662_v4 }
 0x552   :  { %v671_v40 = vsel %vm668_vm6, %v670_v39, %v666_v21  ;;  %v592_v44 = vmul.f32 %v589_v60, %v2106_v43 }
 0x553   :  { %v674_v48 = vmul.f32 %v671_v40, %v2116_v47 }
 0x591   :  { %v595_v29 = vpop.permute.xlu1 %594 }
 0x592   :  { %v597_v59 = vmul.f32 %v595_v29, %v589_v60 }
 0x594   :  { %599 = vrot.lane.b32.xlu0 %v597_v59, %s1799_s3 }
 0x598   :  { %v677_v18 = vpop.permute.xlu2 %676 }
 0x599   :  { %v679_v41 = vmul.f32 %v677_v18, %v671_v40 }
 0x59b   :  { %681 = vrot.lane.b32.xlu1 %v679_v41, %s1799_s3 }
 0x5a3   :  { %614 = vperm.xlu1 %1669, %v2099_v42  }
 0x606   :  { %v600_v45 = vpop.permute.xlu0 %599 }
 0x607   :  { %v2109_v46 = vadd.f32 %v600_v45, %v592_v44 }
 0x609   :  { %1714 = vtanh.f32 %v2109_v46 }
 0x60d   :  { %v682_v49 = vpop.permute.xlu1 %681 }
 0x60e   :  { %v2119_v50 = vadd.f32 %v682_v49, %v674_v48 }
 0x60f   :  { %v1715_v27 = vpop.eup %1714 }
 0x610   :  { %1716 = vtanh.f32 %v2119_v50  ;;  %605 = vrot.lane.b32.xlu2 %v1715_v27, %s1800_s13 }
 0x615   :  { %v2129_v23 = vpop.permute.xlu1 %614 }
 0x616   :  { %v1717_v51 = vpop.eup %1716  ;;  %vm616_vm9 = vcmp.eq.s32.totalorder %v2129_v23, 1 }
 0x617   :  { %687 = vrot.lane.b32.xlu0 %v1717_v51, %s1800_s13 }
 0x618   :  { %696 = vperm.xlu2 %1667, %v2125_v31  }
 0x66a   :  { %v606_v26 = vpop.permute.xlu2 %605 }
 0x66b   :  { %v2131_v36 = vmul.f32 %v606_v26, %v589_v60 }
 0x66d   :  { %v2138_v52 = vsel %vm616_vm9, %v2131_v36, %v2059_v33 }
 0x66e   :  { %711 = vrot.lane.b32.xlu0 %v2138_v52, %s1799_s3 }
 0x672   :  { %v2142_v53 = vpop.permute.xlu2 %696 }
 0x673   :  { %vm698_vm11 = vcmp.eq.s32.totalorder %v2142_v53, 1 }
 0x689   :  { %v688_v58 = vpop.permute.xlu0 %687 }
 0x68a   :  { %v690_v61 = vmul.f32 %v688_v58, %v671_v40 }
 0x68c   :  { %v2148_v62 = vsel %vm698_vm11, %v690_v61, %v2069_v37  ;;  %v2152_v63 = vsel %vm698_vm11, %v690_v61, 0.0 }
 0x68d   :  { %793 = vrot.lane.b32.xlu1 %v2148_v62, %s1799_s3 }
 0x6e0   :  { %v712_v33 = vpop.permute.xlu0 %711 }
 0x6e1   :  { %1623 = vmatmul.msk.f32.vlgmr.msrb.gmra.mxu2 %vm208_vm1, %v712_v33 }
 0x6e2   :  { %1383 = vmatpush.msrb.mxu2 %v1836_v0  ;;  %v1592_v0 = vld [vmem:[%s2576_s2 + $0x12] sm:$0x3] }
 0x6e3   :  { %117 = vst [vmem:[#allocation7 + $0x8] sm:$0x3] %v1592_v0  ;;  %v2185_v0 = vsel %vm616_vm9, %v2109_v46, %v2106_v43  ;;  %v2201_v43 = vsel %vm698_vm11, %v2119_v50, %v2116_v47 }
 0x6e4   :  { %1384 = vmatpush.msrb.mxu2 %v1846_v2  ;;  %v709_v2 = vld [vmem:[#allocation6 + $0x6] sm:$0x3] }
 0x6e6   :  { %1385 = vmatpush.msrb.mxu2 %v1859_v5 }
 0x6e8   :  { %1386 = vmatpush.msrb.mxu2 %v1878_v8 }
 0x6ea   :  { %v791_v14 = vld [vmem:[#allocation7 + $0x8] sm:$0x3] }
 0x6ff   :  { %v794_v37 = vpop.permute.xlu1 %793 }
 0x700   :  { %1627 = vmatmul.msk.f32.vlgmr.msrb.gmra.mxu3 %vm208_vm1, %v794_v37  ;;  %v2178_v37 = vsel %vm1625_vm7, 1, %v1801_v30 }
 0x701   :  { %1464 = vmatpush.msrb.mxu3 %v1841_v1 }
 0x703   :  { %1465 = vmatpush.msrb.mxu3 %v1853_v3 }
 0x705   :  { %1466 = vmatpush.msrb.mxu3 %v1864_v6 }
 0x707   :  { %1467 = vmatpush.msrb.mxu3 %v1883_v9 }
 0x764   :  { %v732_v5 = vpop.f32.mrf.mxu2 }
 0x765   :  { %v735_v13 = vadd.f32 %v732_v5, %v709_v2 }
 0x767   :  { %1718 = vtanh.f32 %v735_v13  ;;  %v1624_v6 = vmul.f32 -1.442695, %v735_v13 }
 0x76d   :  { %v1719_v8 = vpop.eup %1718 }
 0x76e   :  { %758 = vrot.lane.b32.xlu2 %v1719_v8, %s1800_s13 }
 0x783   :  { %v814_v1 = vpop.f32.mrf.mxu3 }
 0x784   :  { %v817_v15 = vadd.f32 %v814_v1, %v791_v14  ;;  %v2194_v14 = vsel %vm1629_vm8, 1, %v1801_v30 }
 0x786   :  { %1720 = vtanh.f32 %v817_v15  ;;  %v1628_v39 = vmul.f32 -1.442695, %v817_v15 }
 0x787   :  { %1722 = vpow2.f32 %v1624_v6 }
 0x78c   :  { %v1721_v3 = vpop.eup %1720 }
 0x78d   :  { %840 = vrot.lane.b32.xlu0 %v1721_v3, %s1800_s13  ;;  %v1723_v9 = vpop.eup %1722 }
 0x78e   :  { %v739_v17 = vadd.f32 1.0, %v1723_v9 }
 0x790   :  { %1724 = vrcp.f32 %v739_v17  ;;  %v751_v29 = vand.u32 2147483648, %v739_v17  ;;  %vm745_vm14 = vweird.f32 %v739_v17  ;;  %v749_v60 = vand.u32 2147483647, %v739_v17 }
 0x791   :  { %1726 = vpow2.f32 %v1628_v39 }
 0x792   :  { %v752_v59 = vor.u32 1.1754944e-38, %v751_v29  ;;  %vm750_vm2 = vcmp.eq.f32.partialorder %v749_v60, 8.507059e+37 }
 0x796   :  { %v1725_v20 = vpop.eup %1724 }
 0x797   :  { %v741_v22 = vmul.f32 %v1725_v20, %v739_v17  ;;  %vm746_vm12 = vweird.f32 %v1725_v20  ;;  %v1727_v18 = vpop.eup %1726 }
 0x798   :  { %vm747_vm15 = vmor %vm745_vm14, %vm746_vm12  ;;  %v821_v40 = vadd.f32 1.0, %v1727_v18 }
 0x799   :  { %v742_v24 = vsub.f32 1.0, %v741_v22 }
 0x79a   :  { %1728 = vrcp.f32 %v821_v40  ;;  %v833_v27 = vand.u32 2147483648, %v821_v40  ;;  %vm827_vm4 = vweird.f32 %v821_v40  ;;  %v831_v51 = vand.u32 2147483647, %v821_v40 }
 0x79b   :  { %v743_v25 = vmul.f32 %v1725_v20, %v742_v24 }
 0x79c   :  { %v834_v58 = vor.u32 1.1754944e-38, %v833_v27  ;;  %vm832_vm6 = vcmp.eq.f32.partialorder %v831_v51, 8.507059e+37 }
 0x79d   :  { %v744_v28 = vadd.f32 %v1725_v20, %v743_v25 }
 0x79f   :  { %v748_v4 = vsel %vm747_vm15, %v1725_v20, %v744_v28 }
 0x7a0   :  { %v753_v35 = vsel %vm750_vm2, %v752_v59, %v748_v4  ;;  %v1729_v41 = vpop.eup %1728 }
 0x7a1   :  { %v823_v44 = vmul.f32 %v1729_v41, %v821_v40  ;;  %vm828_vm3 = vweird.f32 %v1729_v41  ;;  %v756_v2 = vmul.f32 %v753_v35, %v2185_v0 }
 0x7a2   :  { %vm829_vm5 = vmor %vm827_vm4, %vm828_vm3 }
 0x7a3   :  { %v824_v45 = vsub.f32 1.0, %v823_v44 }
 0x7a5   :  { %v825_v48 = vmul.f32 %v1729_v41, %v824_v45 }
 0x7a7   :  { %v826_v49 = vadd.f32 %v1729_v41, %v825_v48 }
 0x7a9   :  { %v830_v26 = vsel %vm829_vm5, %v1729_v41, %v826_v49 }
 0x7aa   :  { %v835_v61 = vsel %vm832_vm6, %v834_v58, %v830_v26 }
 0x7ab   :  { %v838_v46 = vmul.f32 %v835_v61, %v2201_v43 }
 0x7c8   :  { %v759_v34 = vpop.permute.xlu2 %758 }
 0x7c9   :  { %v761_v21 = vmul.f32 %v759_v34, %v753_v35 }
 0x7cb   :  { %763 = vrot.lane.b32.xlu1 %v761_v21, %s1799_s3 }
 0x7ff   :  { %v841_v33 = vpop.permute.xlu0 %840 }
 0x800   :  { %v843_v11 = vmul.f32 %v841_v33, %v835_v61 }
 0x802   :  { %845 = vrot.lane.b32.xlu2 %v843_v11, %s1799_s3 }
 0x80a   :  { %778 = vperm.xlu2 %1667, %v2178_v37  }
 0x83d   :  { %v764_v5 = vpop.permute.xlu1 %763 }
 0x83e   :  { %v2188_v13 = vadd.f32 %v764_v5, %v756_v2 }
 0x840   :  { %1730 = vtanh.f32 %v2188_v13 }
 0x846   :  { %v1731_v8 = vpop.eup %1730 }
 0x847   :  { %769 = vrot.lane.b32.xlu0 %v1731_v8, %s1800_s13 }
 0x84f   :  { %860 = vperm.xlu0 %1668, %v2194_v14  }
 0x85c   :  { %v846_v1 = vpop.permute.xlu2 %845 }
 0x85d   :  { %v2204_v15 = vadd.f32 %v846_v1, %v838_v46 }
 0x85f   :  { %1732 = vtanh.f32 %v2204_v15 }
 0x864   :  { %v2208_v30 = vpop.permute.xlu2 %778 }
 0x865   :  { %v1733_v3 = vpop.eup %1732  ;;  %vm780_vm12 = vcmp.eq.s32.totalorder %v2208_v30, 1 }
 0x866   :  { %851 = vrot.lane.b32.xlu1 %v1733_v3, %s1800_s13 }
 0x8b9   :  { %v770_v54 = vpop.permute.xlu0 %769 }
 0x8ba   :  { %v2210_v6 = vmul.f32 %v770_v54, %v753_v35 }
 0x8bc   :  { %v2217_v47 = vsel %vm780_vm12, %v2210_v6, %v2138_v52  ;;  %v39_v52 = vld [vmem:[%s2575_s1 + $0x10] sm:$0x3] }
 0x8bd   :  { %875 = vrot.lane.b32.xlu1 %v2217_v47, %s1799_s3  ;;  %40 = vst [vmem:[#allocation6 + $0x8] sm:$0x3] %v39_v52 }
 0x8c1   :  { %v2221_v50 = vpop.permute.xlu0 %860 }
 0x8c2   :  { %vm862_vm11 = vcmp.eq.s32.totalorder %v2221_v50, 1 }
 0x8c4   :  { %v873_v25 = vld [vmem:[#allocation6 + $0x8] sm:$0x3] }
 0x8d8   :  { %v852_v53 = vpop.permute.xlu1 %851 }
 0x8d9   :  { %v854_v9 = vmul.f32 %v852_v53, %v835_v61 }
 0x8db   :  { %v2227_v17 = vsel %vm862_vm11, %v854_v9, %v2148_v62  ;;  %v2231_v20 = vsel %vm862_vm11, %v854_v9, 0.0  ;;  %v1591_v62 = vld [vmem:[%s2576_s2 + $0xe] sm:$0x3] }
 0x8dc   :  { %957 = vrot.lane.b32.xlu2 %v2227_v17, %s1799_s3  ;;  %115 = vst [vmem:[#allocation7 + $0x6] sm:$0x3] %v1591_v62 }
 0x8e3   :  { %v955_v60 = vld [vmem:[#allocation7 + $0x6] sm:$0x3] }
 0x92f   :  { %v876_v22 = vpop.permute.xlu1 %875 }
 0x930   :  { %1631 = vmatmul.msk.f32.vlgmr.msra.gmra.mxu0 %vm208_vm1, %v876_v22 }
 0x936   :  { %v958_v24 = vpop.permute.xlu2 %957 }
 0x937   :  { %1635 = vmatmul.msk.f32.vlgmr.msra.gmra.mxu1 %vm208_vm1, %v958_v24 }
 0x9ad   :  { %v896_v28 = vpop.f32.mrf.mxu0 }
 0x9ae   :  { %v899_v29 = vadd.f32 %v896_v28, %v873_v25  ;;  %v2252_v28 = vsel %vm780_vm12, %v2188_v13, %v2185_v0 }
 0x9b0   :  { %1734 = vtanh.f32 %v899_v29  ;;  %v1632_v21 = vmul.f32 -1.442695, %v899_v29 }
 0x9b4   :  { %v978_v4 = vpop.f32.mrf.mxu1 }
 0x9b5   :  { %v981_v59 = vadd.f32 %v978_v4, %v955_v60 }
 0x9b6   :  { %v1735_v34 = vpop.eup %1734 }
 0x9b7   :  { %1736 = vtanh.f32 %v981_v59  ;;  %922 = vrot.lane.b32.xlu0 %v1735_v34, %s1800_s13  ;;  %v1636_v39 = vmul.f32 -1.442695, %v981_v59 }
 0x9b8   :  { %1738 = vpow2.f32 %v1632_v21 }
 0x9b9   :  { %1740 = vpow2.f32 %v1636_v39 }
 0x9bd   :  { %v1737_v35 = vpop.eup %1736 }
 0x9be   :  { %1004 = vrot.lane.b32.xlu1 %v1737_v35, %s1800_s13  ;;  %v1739_v18 = vpop.eup %1738 }
 0x9bf   :  { %v903_v40 = vadd.f32 1.0, %v1739_v18  ;;  %v1741_v41 = vpop.eup %1740 }
 0x9c0   :  { %v985_v44 = vadd.f32 1.0, %v1741_v41 }
 0x9c1   :  { %1742 = vrcp.f32 %v903_v40  ;;  %v915_v33 = vand.u32 2147483648, %v903_v40  ;;  %vm909_vm15 = vweird.f32 %v903_v40  ;;  %v913_v11 = vand.u32 2147483647, %v903_v40 }
 0x9c2   :  { %1744 = vrcp.f32 %v985_v44  ;;  %v997_v53 = vand.u32 2147483648, %v985_v44  ;;  %vm991_vm5 = vweird.f32 %v985_v44  ;;  %v995_v9 = vand.u32 2147483647, %v985_v44 }
 0x9c3   :  { %v916_v8 = vor.u32 1.1754944e-38, %v915_v33  ;;  %vm914_vm3 = vcmp.eq.f32.partialorder %v913_v11, 8.507059e+37 }
 0x9c4   :  { %v998_v22 = vor.u32 1.1754944e-38, %v997_v53  ;;  %vm996_vm7 = vcmp.eq.f32.partialorder %v995_v9, 8.507059e+37 }
 0x9c7   :  { %v1743_v45 = vpop.eup %1742 }
 0x9c8   :  { %v905_v48 = vmul.f32 %v1743_v45, %v903_v40  ;;  %v1745_v49 = vpop.eup %1744  ;;  %vm910_vm14 = vweird.f32 %v1743_v45 }
 0x9c9   :  { %v987_v51 = vmul.f32 %v1745_v49, %v985_v44  ;;  %vm911_vm2 = vmor %vm909_vm15, %vm910_vm14  ;;  %vm992_vm4 = vweird.f32 %v1745_v49  ;;  %v41_v44 = vld [vmem:[%s2575_s1 + $0x14] sm:$0x3] }
 0x9ca   :  { %v906_v27 = vsub.f32 1.0, %v905_v48  ;;  %vm993_vm6 = vmor %vm991_vm5, %vm992_vm4  ;;  %42 = vst [vmem:[#allocation6 + $0xa] sm:$0x3] %v41_v44 }
 0x9cb   :  { %v988_v58 = vsub.f32 1.0, %v987_v51 }
 0x9cc   :  { %v907_v26 = vmul.f32 %v1743_v45, %v906_v27 }
 0x9cd   :  { %v989_v2 = vmul.f32 %v1745_v49, %v988_v58 }
 0x9ce   :  { %v908_v61 = vadd.f32 %v1743_v45, %v907_v26 }
 0x9cf   :  { %v990_v3 = vadd.f32 %v1745_v49, %v989_v2 }
 0x9d0   :  { %v912_v5 = vsel %vm911_vm2, %v1743_v45, %v908_v61 }
 0x9d1   :  { %v917_v46 = vsel %vm914_vm3, %v916_v8, %v912_v5  ;;  %v994_v52 = vsel %vm993_vm6, %v1745_v49, %v990_v3  ;;  %v1037_v48 = vld [vmem:[#allocation6 + $0xa] sm:$0x3] }
 0x9d2   :  { %v999_v62 = vsel %vm996_vm7, %v998_v22, %v994_v52  ;;  %v920_v29 = vmul.f32 %v917_v46, %v2252_v28 }
 0xa29   :  { %v923_v1 = vpop.permute.xlu0 %922 }
 0xa2a   :  { %v925_v54 = vmul.f32 %v923_v1, %v917_v46 }
 0xa2c   :  { %927 = vrot.lane.b32.xlu2 %v925_v54, %s1799_s3 }
 0xa30   :  { %v1005_v24 = vpop.permute.xlu1 %1004 }
 0xa31   :  { %v1007_v25 = vmul.f32 %v1005_v24, %v999_v62 }
 0xa33   :  { %1009 = vrot.lane.b32.xlu0 %v1007_v25, %s1799_s3 }
 0xa3b   :  { %942 = vperm.xlu0 %1668, %v2194_v14   ;;  %v2264_v14 = vsel %vm862_vm11, %v2204_v15, %v2201_v43 }
 0xa3c   :  { %v1002_v0 = vmul.f32 %v999_v62, %v2264_v14 }
 0xa86   :  { %v928_v60 = vpop.permute.xlu2 %927 }
 0xa87   :  { %v2255_v4 = vadd.f32 %v928_v60, %v920_v29 }
 0xa89   :  { %1746 = vtanh.f32 %v2255_v4 }
 0xa8f   :  { %v1747_v59 = vpop.eup %1746 }
 0xa90   :  { %933 = vrot.lane.b32.xlu1 %v1747_v59, %s1800_s13 }
 0xa98   :  { %1024 = vperm.xlu1 %1669, %v2178_v37  }
 0xaa5   :  { %v1010_v13 = vpop.permute.xlu0 %1009 }
 0xaa6   :  { %v2267_v34 = vadd.f32 %v1010_v13, %v1002_v0 }
 0xaa8   :  { %1748 = vtanh.f32 %v2267_v34 }
 0xaad   :  { %v2271_v21 = vpop.permute.xlu0 %942 }
 0xaae   :  { %v1749_v35 = vpop.eup %1748  ;;  %vm944_vm8 = vcmp.eq.s32.totalorder %v2271_v21, 1 }
 0xaaf   :  { %1015 = vrot.lane.b32.xlu2 %v1749_v35, %s1800_s13 }
 0xb02   :  { %v934_v39 = vpop.permute.xlu1 %933 }
 0xb03   :  { %v2273_v37 = vmul.f32 %v934_v39, %v917_v46 }
 0xb05   :  { %v2280_v43 = vsel %vm944_vm8, %v2273_v37, %v2217_v47 }
 0xb06   :  { %1039 = vrot.lane.b32.xlu2 %v2280_v43, %s1799_s3 }
 0xb09   :  { %v1016_v15 = vpop.permute.xlu2 %1015 }
 0xb0a   :  { %v1018_v50 = vmul.f32 %v1016_v15, %v999_v62  ;;  %v2284_v18 = vpop.permute.xlu1 %1024 }
 0xb0b   :  { %vm1026_vm11 = vcmp.eq.s32.totalorder %v2284_v18, 1 }
 0xb0c   :  { %v2290_v40 = vsel %vm1026_vm11, %v1018_v50, %v2227_v17  ;;  %v2294_v41 = vsel %vm1026_vm11, %v1018_v50, 0.0  ;;  %v1590_v17 = vld [vmem:[%s2576_s2 + $0xa] sm:$0x3] }
 0xb0d   :  { %1121 = vrot.lane.b32.xlu0 %v2290_v40, %s1799_s3  ;;  %113 = vst [vmem:[#allocation7 + $0x4] sm:$0x3] %v1590_v17 }
 0xb14   :  { %v1119_v26 = vld [vmem:[#allocation7 + $0x4] sm:$0x3] }
 0xb60   :  { %v1040_v47 = vpop.permute.xlu2 %1039 }
 0xb61   :  { %1639 = vmatmul.msk.f32.vlgmr.msra.gmra.mxu2 %vm208_vm1, %v1040_v47 }
 0xb7f   :  { %v1122_v45 = vpop.permute.xlu0 %1121 }
 0xb80   :  { %1643 = vmatmul.msk.f32.vlgmr.msra.gmra.mxu3 %vm208_vm1, %v1122_v45 }
 0xbe4   :  { %v1060_v49 = vpop.f32.mrf.mxu2 }
 0xbe5   :  { %v1063_v27 = vadd.f32 %v1060_v49, %v1037_v48 }
 0xbe7   :  { %1750 = vtanh.f32 %v1063_v27  ;;  %v1640_v11 = vmul.f32 -1.442695, %v1063_v27  ;;  %v2315_v27 = vsel %vm944_vm8, %v2255_v4, %v2252_v28 }
 0xbed   :  { %v1751_v51 = vpop.eup %1750 }
 0xbee   :  { %1086 = vrot.lane.b32.xlu1 %v1751_v51, %s1800_s13 }
 0xc03   :  { %v1142_v58 = vpop.f32.mrf.mxu3 }
 0xc04   :  { %v1145_v61 = vadd.f32 %v1142_v58, %v1119_v26 }
 0xc06   :  { %1752 = vtanh.f32 %v1145_v61  ;;  %v1644_v2 = vmul.f32 -1.442695, %v1145_v61  ;;  %v2325_v61 = vsel %vm1026_vm11, %v2267_v34, %v2264_v14 }
 0xc07   :  { %1754 = vpow2.f32 %v1640_v11 }
 0xc08   :  { %1756 = vpow2.f32 %v1644_v2 }
 0xc0c   :  { %v1753_v33 = vpop.eup %1752 }
 0xc0d   :  { %1168 = vrot.lane.b32.xlu2 %v1753_v33, %s1800_s13  ;;  %v1755_v5 = vpop.eup %1754 }
 0xc0e   :  { %v1067_v8 = vadd.f32 1.0, %v1755_v5  ;;  %v1757_v46 = vpop.eup %1756 }
 0xc0f   :  { %v1149_v1 = vadd.f32 1.0, %v1757_v46 }
 0xc10   :  { %1758 = vrcp.f32 %v1067_v8  ;;  %v1079_v25 = vand.u32 2147483648, %v1067_v8  ;;  %vm1073_vm15 = vweird.f32 %v1067_v8  ;;  %v1077_v29 = vand.u32 2147483647, %v1067_v8 }
 0xc11   :  { %1760 = vrcp.f32 %v1149_v1  ;;  %v1161_v50 = vand.u32 2147483648, %v1149_v1  ;;  %vm1155_vm5 = vweird.f32 %v1149_v1  ;;  %v1159_v47 = vand.u32 2147483647, %v1149_v1 }
 0xc12   :  { %v1080_v0 = vor.u32 1.1754944e-38, %v1079_v25  ;;  %vm1078_vm3 = vcmp.eq.f32.partialorder %v1077_v29, 8.507059e+37 }
 0xc13   :  { %v1162_v45 = vor.u32 1.1754944e-38, %v1161_v50  ;;  %vm1160_vm7 = vcmp.eq.f32.partialorder %v1159_v47, 8.507059e+37 }
 0xc16   :  { %v1759_v3 = vpop.eup %1758 }
 0xc17   :  { %v1069_v54 = vmul.f32 %v1759_v3, %v1067_v8  ;;  %v1761_v53 = vpop.eup %1760  ;;  %vm1074_vm14 = vweird.f32 %v1759_v3 }
 0xc18   :  { %v1151_v52 = vmul.f32 %v1761_v53, %v1149_v1  ;;  %vm1075_vm2 = vmor %vm1073_vm15, %vm1074_vm14  ;;  %vm1156_vm4 = vweird.f32 %v1761_v53 }
 0xc19   :  { %v1070_v9 = vsub.f32 1.0, %v1069_v54  ;;  %vm1157_vm6 = vmor %vm1155_vm5, %vm1156_vm4 }
 0xc1a   :  { %v1152_v24 = vsub.f32 1.0, %v1151_v52 }
 0xc1b   :  { %v1071_v22 = vmul.f32 %v1759_v3, %v1070_v9 }
 0xc1c   :  { %v1153_v60 = vmul.f32 %v1761_v53, %v1152_v24 }
 0xc1d   :  { %v1072_v62 = vadd.f32 %v1759_v3, %v1071_v22 }
 0xc1e   :  { %v1154_v39 = vadd.f32 %v1761_v53, %v1153_v60 }
 0xc1f   :  { %v1076_v59 = vsel %vm1075_vm2, %v1759_v3, %v1072_v62  ;;  %v43_v3 = vld [vmem:[%s2575_s1 + $0x18] sm:$0x3] }
 0xc20   :  { %v1081_v35 = vsel %vm1078_vm3, %v1080_v0, %v1076_v59  ;;  %v1158_v44 = vsel %vm1157_vm6, %v1761_v53, %v1154_v39  ;;  %44 = vst [vmem:[#allocation6 + $0xc] sm:$0x3] %v43_v3 }
 0xc21   :  { %v1163_v48 = vsel %vm1160_vm7, %v1162_v45, %v1158_v44  ;;  %v1084_v51 = vmul.f32 %v1081_v35, %v2315_v27 }
 0xc27   :  { %v1201_v53 = vld [vmem:[#allocation6 + $0xc] sm:$0x3] }
 0xc60   :  { %v1087_v13 = vpop.permute.xlu1 %1086 }
 0xc61   :  { %v1089_v15 = vmul.f32 %v1087_v13, %v1081_v35 }
 0xc63   :  { %1091 = vrot.lane.b32.xlu0 %v1089_v15, %s1799_s3 }
 0xc67   :  { %v1169_v17 = vpop.permute.xlu2 %1168 }
 0xc68   :  { %v1171_v49 = vmul.f32 %v1169_v17, %v1163_v48 }
 0xc6a   :  { %1173 = vrot.lane.b32.xlu1 %v1171_v49, %s1799_s3 }
 0xc72   :  { %1106 = vperm.xlu1 %1669, %v2125_v31   ;;  %v1166_v31 = vmul.f32 %v1163_v48, %v2325_v61 }
 0xcd5   :  { %v1092_v26 = vpop.permute.xlu0 %1091 }
 0xcd6   :  { %v2318_v58 = vadd.f32 %v1092_v26, %v1084_v51 }
 0xcd8   :  { %1762 = vtanh.f32 %v2318_v58 }
 0xcdc   :  { %v1174_v33 = vpop.permute.xlu1 %1173 }
 0xcdd   :  { %v2328_v11 = vadd.f32 %v1174_v33, %v1166_v31 }
 0xcde   :  { %v1763_v28 = vpop.eup %1762 }
 0xcdf   :  { %1764 = vtanh.f32 %v2328_v11  ;;  %1097 = vrot.lane.b32.xlu2 %v1763_v28, %s1800_s13 }
 0xce4   :  { %v2334_v2 = vpop.permute.xlu1 %1106 }
 0xce5   :  { %v1765_v4 = vpop.eup %1764  ;;  %vm1108_vm11 = vcmp.eq.s32.totalorder %v2334_v2, 1  ;;  %v455_v2 = vsel %vm452_vm10, %v2052_v32, 0.0 }
 0xce6   :  { %1179 = vrot.lane.b32.xlu0 %v1765_v4, %s1800_s13 }
 0xce7   :  { %1188 = vperm.xlu2 %1667, %v2099_v42  }
 0xd39   :  { %v1098_v18 = vpop.permute.xlu2 %1097 }
 0xd3a   :  { %v2336_v14 = vmul.f32 %v1098_v18, %v1081_v35 }
 0xd3c   :  { %v2343_v34 = vsel %vm1108_vm11, %v2336_v14, %v2280_v43  ;;  %v1111_v12 = vsel %vm1108_vm11, %v2336_v14, 0.0 }
 0xd3d   :  { %1203 = vrot.lane.b32.xlu0 %v2343_v34, %s1799_s3 }
 0xd41   :  { %v2347_v5 = vpop.permute.xlu2 %1188 }
 0xd42   :  { %vm1190_vm14 = vcmp.eq.s32.totalorder %v2347_v5, 1 }
 0xd58   :  { %v1180_v8 = vpop.permute.xlu0 %1179 }
 0xd59   :  { %v1182_v42 = vmul.f32 %v1180_v8, %v1163_v48 }
 0xd5b   :  { %v2353_v46 = vsel %vm1190_vm14, %v1182_v42, %v2290_v40  ;;  %v2357_v1 = vsel %vm1190_vm14, %v1182_v42, 0.0  ;;  %v1589_v40 = vld [vmem:[%s2576_s2 + $0x6] sm:$0x3] }
 0xd5c   :  { %1285 = vrot.lane.b32.xlu1 %v2353_v46, %s1799_s3  ;;  %111 = vst [vmem:[#allocation7 + $0x2] sm:$0x3] %v1589_v40 }
 0xd63   :  { %v1283_v24 = vld [vmem:[#allocation7 + $0x2] sm:$0x3] }
 0xdaf   :  { %v1204_v43 = vpop.permute.xlu0 %1203 }
 0xdb0   :  { %1647 = vmatmul.msk.f32.vlgmr.msrb.gmra.mxu0 %vm208_vm1, %v1204_v43 }
 0xdce   :  { %v1286_v54 = vpop.permute.xlu1 %1285 }
 0xdcf   :  { %1651 = vmatmul.msk.f32.vlgmr.msrb.gmra.mxu1 %vm208_vm1, %v1286_v54 }
 0xe2d   :  { %v1224_v9 = vpop.f32.mrf.mxu0 }
 0xe2e   :  { %v1227_v52 = vadd.f32 %v1224_v9, %v1201_v53 }
 0xe30   :  { %1766 = vtanh.f32 %v1227_v52  ;;  %v1648_v60 = vmul.f32 -1.442695, %v1227_v52 }
 0xe36   :  { %v1767_v22 = vpop.eup %1766 }
 0xe37   :  { %1250 = vrot.lane.b32.xlu2 %v1767_v22, %s1800_s13  ;;  %v2378_v22 = vsel %vm1108_vm11, %v2318_v58, %v2315_v27 }
 0xe4c   :  { %v1306_v62 = vpop.f32.mrf.mxu1 }
 0xe4d   :  { %v1309_v25 = vadd.f32 %v1306_v62, %v1283_v24 }
 0xe4f   :  { %1768 = vtanh.f32 %v1309_v25  ;;  %v1652_v26 = vmul.f32 -1.442695, %v1309_v25 }
 0xe50   :  { %1770 = vpow2.f32 %v1648_v60 }
 0xe55   :  { %v1769_v29 = vpop.eup %1768 }
 0xe56   :  { %1332 = vrot.lane.b32.xlu0 %v1769_v29, %s1800_s13  ;;  %v1771_v59 = vpop.eup %1770 }
 0xe57   :  { %v1231_v0 = vadd.f32 1.0, %v1771_v59 }
 0xe59   :  { %1772 = vrcp.f32 %v1231_v0  ;;  %v1243_v47 = vand.u32 2147483648, %v1231_v0  ;;  %vm1237_vm2 = vweird.f32 %v1231_v0  ;;  %v1241_v44 = vand.u32 2147483647, %v1231_v0 }
 0xe5a   :  { %1774 = vpow2.f32 %v1652_v26 }
 0xe5b   :  { %v1244_v17 = vor.u32 1.1754944e-38, %v1243_v47  ;;  %vm1242_vm4 = vcmp.eq.f32.partialorder %v1241_v44, 8.507059e+37 }
 0xe5f   :  { %v1773_v13 = vpop.eup %1772 }
 0xe60   :  { %v1233_v35 = vmul.f32 %v1773_v13, %v1231_v0  ;;  %vm1238_vm15 = vweird.f32 %v1773_v13  ;;  %v1775_v31 = vpop.eup %1774 }
 0xe61   :  { %vm1239_vm3 = vmor %vm1237_vm2, %vm1238_vm15  ;;  %v1313_v33 = vadd.f32 1.0, %v1775_v31 }
 0xe62   :  { %v1234_v39 = vsub.f32 1.0, %v1233_v35 }
 0xe63   :  { %1776 = vrcp.f32 %v1313_v33  ;;  %v1325_v43 = vand.u32 2147483648, %v1313_v33  ;;  %vm1319_vm6 = vweird.f32 %v1313_v33  ;;  %v1323_v3 = vand.u32 2147483647, %v1313_v33 }
 0xe64   :  { %v1235_v15 = vmul.f32 %v1773_v13, %v1234_v39 }
 0xe65   :  { %v1326_v40 = vor.u32 1.1754944e-38, %v1325_v43  ;;  %vm1324_vm15 = vcmp.eq.f32.partialorder %v1323_v3, 8.507059e+37 }
 0xe66   :  { %v1236_v50 = vadd.f32 %v1773_v13, %v1235_v15 }
 0xe68   :  { %v1240_v45 = vsel %vm1239_vm3, %v1773_v13, %v1236_v50 }
 0xe69   :  { %v1245_v49 = vsel %vm1242_vm4, %v1244_v17, %v1240_v45  ;;  %v1777_v28 = vpop.eup %1776 }
 0xe6a   :  { %v1315_v4 = vmul.f32 %v1777_v28, %v1313_v33  ;;  %vm1320_vm5 = vweird.f32 %v1777_v28  ;;  %v1248_v24 = vmul.f32 %v1245_v49, %v2378_v22 }
 0xe6b   :  { %vm1321_vm7 = vmor %vm1319_vm6, %vm1320_vm5 }
 0xe6c   :  { %v1316_v18 = vsub.f32 1.0, %v1315_v4 }
 0xe6e   :  { %v1317_v8 = vmul.f32 %v1777_v28, %v1316_v18 }
 0xe70   :  { %v1318_v42 = vadd.f32 %v1777_v28, %v1317_v8 }
 0xe72   :  { %v1322_v54 = vsel %vm1321_vm7, %v1777_v28, %v1318_v42 }
 0xe73   :  { %v1327_v53 = vsel %vm1324_vm15, %v1326_v40, %v1322_v54 }
 0xe91   :  { %v1251_v48 = vpop.permute.xlu2 %1250 }
 0xe92   :  { %v1253_v51 = vmul.f32 %v1251_v48, %v1245_v49 }
 0xe94   :  { %1255 = vrot.lane.b32.xlu1 %v1253_v51, %s1799_s3 }
 0xec8   :  { %v1333_v9 = vpop.permute.xlu0 %1332 }
 0xec9   :  { %v1335_v52 = vmul.f32 %v1333_v9, %v1327_v53 }
 0xecb   :  { %1337 = vrot.lane.b32.xlu2 %v1335_v52, %s1799_s3 }
 0xed3   :  { %1270 = vperm.xlu2 %1667, %v2047_v16   ;;  %v2390_v16 = vsel %vm1190_vm14, %v2328_v11, %v2325_v61 }
 0xed4   :  { %v1330_v27 = vmul.f32 %v1327_v53, %v2390_v16 }
 0xf06   :  { %v1256_v62 = vpop.permute.xlu1 %1255 }
 0xf07   :  { %v2381_v25 = vadd.f32 %v1256_v62, %v1248_v24 }
 0xf09   :  { %1778 = vtanh.f32 %v2381_v25 }
 0xf0f   :  { %v1779_v29 = vpop.eup %1778 }
 0xf10   :  { %1261 = vrot.lane.b32.xlu0 %v1779_v29, %s1800_s13 }
 0xf18   :  { %1352 = vperm.xlu0 %1668, %v2019_v57  }
 0xf25   :  { %v1338_v58 = vpop.permute.xlu2 %1337 }
 0xf26   :  { %v2393_v60 = vadd.f32 %v1338_v58, %v1330_v27 }
 0xf28   :  { %1780 = vtanh.f32 %v2393_v60 }
 0xf2d   :  { %v2397_v0 = vpop.permute.xlu2 %1270 }
 0xf2e   :  { %v1781_v59 = vpop.eup %1780  ;;  %vm1272_vm2 = vcmp.eq.s32.totalorder %v2397_v0, 1 }
 0xf2f   :  { %1343 = vrot.lane.b32.xlu1 %v1781_v59, %s1800_s13 }
 0xf82   :  { %v1262_v13 = vpop.permute.xlu0 %1261 }
 0xf83   :  { %v2399_v57 = vmul.f32 %v1262_v13, %v1245_v49 }
 0xf85   :  { %v2406_v61 = vsel %vm1272_vm2, %v2399_v57, %v2343_v34  ;;  %v45_v34 = vld [vmem:[%s2575_s1 + $0x1c] sm:$0x3]  ;;  %v1275_v30 = vsel %vm1272_vm2, %v2399_v57, 0.0 }
 0xf86   :  { %1367 = vrot.lane.b32.xlu1 %v2406_v61, %s1799_s3  ;;  %46 = vst [vmem:[#allocation6 + $0xe] sm:$0x3] %v45_v34 }
 0xf8a   :  { %v2410_v11 = vpop.permute.xlu0 %1352 }
 0xf8b   :  { %vm1354_vm14 = vcmp.eq.s32.totalorder %v2410_v11, 1 }
 0xf8c   :  { %v1356_v14 = vsel %vm1354_vm14, %v2393_v60, %v2390_v16 }
 0xf8d   :  { %v1365_v44 = vld [vmem:[#allocation6 + $0xe] sm:$0x3] }
 0xfa1   :  { %v1344_v5 = vpop.permute.xlu1 %1343 }
 0xfa2   :  { %v1346_v35 = vmul.f32 %v1344_v5, %v1327_v53 }
 0xfa4   :  { %v2416_v39 = vsel %vm1354_vm14, %v1346_v35, %v2353_v46  ;;  %v2420_v15 = vsel %vm1354_vm14, %v1346_v35, 0.0  ;;  %v1588_v46 = vld [vmem:[%s2576_s2 + $0x2] sm:$0x3] }
 0xfa5   :  { %1448 = vrot.lane.b32.xlu2 %v2416_v39, %s1799_s3  ;;  %109 = vst [vmem:[#allocation7] sm:$0x3] %v1588_v46 }
 0xfac   :  { %v1446_v48 = vld [vmem:[#allocation7] sm:$0x3] }
 0xff8   :  { %v1368_v50 = vpop.permute.xlu1 %1367 }
 0xff9   :  { %1655 = vmatmul.msk.f32.vlgmr.msrb.gmra.mxu2 %vm208_vm1, %v1368_v50 }
 0xfff   :  { %v1449_v47 = vpop.permute.xlu2 %1448 }
0x1000   :  { %1659 = vmatmul.msk.f32.vlgmr.msrb.gmra.mxu3 %vm208_vm1, %v1449_v47 }
0x107c   :  { %v1388_v45 = vpop.f32.mrf.mxu2 }
0x107d   :  { %v1391_v17 = vadd.f32 %v1388_v45, %v1365_v44 }
0x107f   :  { %1782 = vtanh.f32 %v1391_v17  ;;  %v1656_v33 = vmul.f32 -1.442695, %v1391_v17 }
0x1083   :  { %v1469_v49 = vpop.f32.mrf.mxu3 }
0x1084   :  { %v1472_v51 = vadd.f32 %v1469_v49, %v1446_v48  ;;  %v286_v48 = vsel %vm280_vm13, %v1988_v10, 0.0  ;;  %v619_v49 = vsel %vm616_vm9, %v2131_v36, 0.0 }
0x1085   :  { %v1783_v26 = vpop.eup %1782 }
0x1086   :  { %1784 = vtanh.f32 %v1472_v51  ;;  %1414 = vrot.lane.b32.xlu0 %v1783_v26, %s1800_s13  ;;  %v1660_v28 = vmul.f32 -1.442695, %v1472_v51  ;;  %v947_v51 = vsel %vm944_vm8, %v2273_v37, 0.0  ;;  %v783_v37 = vsel %vm780_vm12, %v2210_v6, 0.0 }
0x1087   :  { %1786 = vpow2.f32 %v1656_v33 }
0x1088   :  { %1788 = vpow2.f32 %v1660_v28 }
0x108c   :  { %v1785_v31 = vpop.eup %1784 }
0x108d   :  { %1495 = vrot.lane.b32.xlu1 %v1785_v31, %s1800_s13  ;;  %v1787_v4 = vpop.eup %1786 }
0x108e   :  { %v1395_v18 = vadd.f32 1.0, %v1787_v4  ;;  %v1789_v8 = vpop.eup %1788 }
0x108f   :  { %v1476_v42 = vadd.f32 1.0, %v1789_v8 }
0x1090   :  { %1790 = vrcp.f32 %v1395_v18  ;;  %vm1401_vm3 = vweird.f32 %v1395_v18  ;;  %v1405_v62 = vand.u32 2147483647, %v1395_v18 }
0x1091   :  { %1792 = vrcp.f32 %v1476_v42  ;;  %v1488_v34 = vand.u32 2147483648, %v1476_v42  ;;  %vm1482_vm7 = vweird.f32 %v1476_v42  ;;  %v1486_v50 = vand.u32 2147483647, %v1476_v42 }
0x1092   :  { %vm1406_vm5 = vcmp.eq.f32.partialorder %v1405_v62, 8.507059e+37 }
0x1093   :  { %v1489_v46 = vor.u32 1.1754944e-38, %v1488_v34 }
0x1095   :  { %1515 = vperm.xlu1 %1669, %v1947_v55   ;;  %v1407_v55 = vand.u32 2147483648, %v1395_v18 }
0x1096   :  { %v1791_v43 = vpop.eup %1790 }
0x1097   :  { %v1397_v3 = vmul.f32 %v1791_v43, %v1395_v18  ;;  %v1793_v54 = vpop.eup %1792  ;;  %vm1402_vm1 = vweird.f32 %v1791_v43  ;;  %v1408_v58 = vor.u32 1.1754944e-38, %v1407_v55 }
0x1098   :  { %v1478_v53 = vmul.f32 %v1793_v54, %v1476_v42  ;;  %vm1403_vm4 = vmor %vm1401_vm3, %vm1402_vm1  ;;  %vm1483_vm6 = vweird.f32 %v1793_v54  ;;  %vm1487_vm1 = vcmp.eq.f32.partialorder %v1486_v50, 8.507059e+37 }
0x1099   :  { %v1398_v40 = vsub.f32 1.0, %v1397_v3  ;;  %vm1484_vm15 = vmor %vm1482_vm7, %vm1483_vm6 }
0x109a   :  { %v1479_v52 = vsub.f32 1.0, %v1478_v53 }
0x109b   :  { %v1399_v9 = vmul.f32 %v1791_v43, %v1398_v40 }
0x109c   :  { %v1480_v29 = vmul.f32 %v1793_v54, %v1479_v52 }
0x109d   :  { %v1400_v24 = vadd.f32 %v1791_v43, %v1399_v9 }
0x109e   :  { %v1481_v5 = vadd.f32 %v1793_v54, %v1480_v29 }
0x109f   :  { %v1404_v27 = vsel %vm1403_vm4, %v1791_v43, %v1400_v24 }
0x10a0   :  { %v2435_v59 = vsel %vm1406_vm5, %v1408_v58, %v1404_v27  ;;  %v1485_v47 = vsel %vm1484_vm15, %v1793_v54, %v1481_v5 }
0x10a1   :  { %v1490_v45 = vsel %vm1487_vm1, %v1489_v46, %v1485_v47 }
0x10f8   :  { %v1415_v13 = vpop.permute.xlu0 %1414 }
0x10f9   :  { %v1417_v35 = vmul.f32 %v1415_v13, %v2435_v59 }
0x10fb   :  { %1419 = vrot.lane.b32.xlu2 %v1417_v35, %s1799_s3 }
0x10ff   :  { %v1496_v44 = vpop.permute.xlu1 %1495 }
0x1100   :  { %v1498_v17 = vmul.f32 %v1496_v44, %v1490_v45 }
0x1102   :  { %1500 = vrot.lane.b32.xlu0 %v1498_v17, %s1799_s3 }
0x1103   :  { %288 = vrot.lane.b32.xlu2 %v286_v48, %s1799_s3 }
0x1107   :  { %v1516_v60 = vpop.permute.xlu1 %1515 }
0x1108   :  { %vm1517_vm10 = vcmp.eq.s32.totalorder %v1516_v60, 1 }
0x110a   :  { %1434 = vperm.xlu0 %1668, %v1967_v7   ;;  %v1274_v7 = vsel %vm1272_vm2, %v2381_v25, %v2378_v22  ;;  %v1493_v22 = vmul.f32 %v1490_v45, %v1356_v14 }
0x1112   :  { %375 = vrot.lane.b32.xlu0 %v1984_v19, %s1799_s3  ;;  %v1412_v19 = vmul.f32 %v2435_v59, %v1274_v7 }
0x111a   :  { %621 = vrot.lane.b32.xlu0 %v619_v49, %s1799_s3 }
0x1122   :  { %867 = vrot.lane.b32.xlu0 %v2231_v20, %s1799_s3 }
0x112a   :  { %1113 = vrot.lane.b32.xlu0 %v1111_v12, %s1799_s3 }
0x1132   :  { %1359 = vrot.lane.b32.xlu0 %v2420_v15, %s1799_s3 }
0x1155   :  { %v1420_v10 = vpop.permute.xlu2 %1419 }
0x1156   :  { %v1422_v23 = vadd.f32 %v1420_v10, %v1412_v19 }
0x1158   :  { %1794 = vtanh.f32 %v1422_v23 }
0x115d   :  { %v289_v36 = vpop.permute.xlu2 %288 }
0x115e   :  { %v1795_v20 = vpop.eup %1794  ;;  %292 = vst.msk [vmem:[%s2578_s4] sm:$0x3] %vm187_vm0, %v289_v36 }
0x115f   :  { %1425 = vrot.lane.b32.xlu1 %v1795_v20, %s1800_s13 }
0x1167   :  { %457 = vrot.lane.b32.xlu1 %v455_v2, %s1799_s3 }
0x116f   :  { %703 = vrot.lane.b32.xlu1 %v2152_v63, %s1799_s3 }
0x1174   :  { %v1501_v25 = vpop.permute.xlu0 %1500 }
0x1175   :  { %v1503_v15 = vadd.f32 %v1501_v25, %v1493_v22 }
0x1177   :  { %1796 = vtanh.f32 %v1503_v15  ;;  %949 = vrot.lane.b32.xlu1 %v947_v51, %s1799_s3  ;;  %v1519_v4 = vsel %vm1517_vm10, %v1503_v15, %v1356_v14 }
0x117c   :  { %v1435_v56 = vpop.permute.xlu0 %1434 }
0x117d   :  { %v1797_v32 = vpop.eup %1796  ;;  %vm1436_vm13 = vcmp.eq.s32.totalorder %v1435_v56, 1 }
0x117e   :  { %1506 = vrot.lane.b32.xlu2 %v1797_v32, %s1800_s13  ;;  %v1438_v63 = vsel %vm1436_vm13, %v1422_v23, %v1274_v7 }
0x117f   :  { %1195 = vrot.lane.b32.xlu1 %v2357_v1, %s1799_s3 }
0x1184   :  { %v376_v16 = vpop.permute.xlu0 %375 }
0x1185   :  { %1606 = vst.msk [vmem:[%s2579_s5 + $0xe] sm:$0x3] %vm187_vm0, %v376_v16 }
0x1186   :  { %539 = vrot.lane.b32.xlu2 %v2073_v38, %s1799_s3 }
0x118c   :  { %v622_v21 = vpop.permute.xlu0 %621 }
0x118d   :  { %1618 = vst.msk [vmem:[%s2578_s4 + $0x4] sm:$0x3] %vm187_vm0, %v622_v21 }
0x118e   :  { %785 = vrot.lane.b32.xlu2 %v783_v37, %s1799_s3 }
0x1194   :  { %v868_v1 = vpop.permute.xlu0 %867 }
0x1195   :  { %1630 = vst.msk [vmem:[%s2579_s5 + $0x8] sm:$0x3] %vm187_vm0, %v868_v1 }
0x1196   :  { %1031 = vrot.lane.b32.xlu2 %v2294_v41, %s1799_s3 }
0x119c   :  { %v1114_v38 = vpop.permute.xlu0 %1113 }
0x119d   :  { %1642 = vst.msk [vmem:[%s2578_s4 + $0xa] sm:$0x3] %vm187_vm0, %v1114_v38 }
0x119e   :  { %1277 = vrot.lane.b32.xlu2 %v1275_v30, %s1799_s3 }
0x11a4   :  { %v1360_v6 = vpop.permute.xlu0 %1359 }
0x11a5   :  { %1654 = vst.msk [vmem:[%s2579_s5 + $0x2] sm:$0x3] %vm187_vm0, %v1360_v6 }
0x11d1   :  { %v1426_v41 = vpop.permute.xlu1 %1425 }
0x11d2   :  { %v1428_v11 = vmul.f32 %v1426_v41, %v2435_v59 }
0x11d4   :  { %v1439_v26 = vsel %vm1436_vm13, %v1428_v11, 0.0  ;;  %v1437_v31 = vsel %vm1436_vm13, %v1428_v11, %v2406_v61 }
0x11d5   :  { %1441 = vrot.lane.b32.xlu1 %v1439_v26, %s1799_s3  ;;  %1527 = vrot.lane.b32.xlu0 %v1437_v31, %s1799_s3 }
0x11d8   :  { %v1507_v0 = vpop.permute.xlu2 %1506 }
0x11d9   :  { %v1509_v57 = vmul.f32 %v1507_v0, %v1490_v45  ;;  %v458_v33 = vpop.permute.xlu1 %457 }
0x11da   :  { %1610 = vst.msk [vmem:[%s2578_s4 + $0x2] sm:$0x3] %vm187_vm0, %v458_v33 }
0x11db   :  { %v1520_v28 = vsel %vm1517_vm10, %v1509_v57, 0.0  ;;  %v1518_v8 = vsel %vm1517_vm10, %v1509_v57, %v2416_v39 }
0x11dc   :  { %1522 = vrot.lane.b32.xlu2 %v1520_v28, %s1799_s3 }
0x11dd   :  { %1532 = vrot.lane.b32.xlu1 %v1438_v63, %s1802_s16  ;;  %1542 = vrot.lane.b32.xlu0 %v1519_v4, %s1802_s16 }
0x11e0   :  { %v540_v61 = vpop.permute.xlu2 %539 }
0x11e1   :  { %1614 = vst.msk [vmem:[%s2579_s5 + $0xc] sm:$0x3] %vm187_vm0, %v540_v61  ;;  %v704_v18 = vpop.permute.xlu1 %703 }
0x11e2   :  { %1622 = vst.msk [vmem:[%s2579_s5 + $0xa] sm:$0x3] %vm187_vm0, %v704_v18 }
0x11e4   :  { %1537 = vrot.lane.b32.xlu2 %v1518_v8, %s1799_s3 }
0x11e8   :  { %v786_v42 = vpop.permute.xlu2 %785 }
0x11e9   :  { %1626 = vst.msk [vmem:[%s2578_s4 + $0x6] sm:$0x3] %vm187_vm0, %v786_v42  ;;  %v950_v43 = vpop.permute.xlu1 %949 }
0x11ea   :  { %1634 = vst.msk [vmem:[%s2578_s4 + $0x8] sm:$0x3] %vm187_vm0, %v950_v43 }
0x11f0   :  { %v1032_v3 = vpop.permute.xlu2 %1031 }
0x11f1   :  { %1638 = vst.msk [vmem:[%s2579_s5 + $0x6] sm:$0x3] %vm187_vm0, %v1032_v3  ;;  %v1196_v39 = vpop.permute.xlu1 %1195 }
0x11f2   :  { %1646 = vst.msk [vmem:[%s2579_s5 + $0x4] sm:$0x3] %vm187_vm0, %v1196_v39 }
0x11f8   :  { %v1278_v54 = vpop.permute.xlu2 %1277 }
0x11f9   :  { %1650 = vst.msk [vmem:[%s2578_s4 + $0xc] sm:$0x3] %vm187_vm0, %v1278_v54 }
0x1236   :  { %v1523_v40 = vpop.permute.xlu2 %1522 }
0x1237   :  { %1525 = vst.msk [vmem:[%s2579_s5] sm:$0x3] %vm187_vm0, %v1523_v40 }
0x123e   :  { %v1538_v53 = vpop.permute.xlu2 %1537 }
0x123f   :  { %1540 = vst.msk [vmem:[#allocation4] sm:$0x3] %vm187_vm0, %v1538_v53 }
0x1247   :  { %v1442_v9 = vpop.permute.xlu1 %1441  ;;  %v1528_v52 = vpop.permute.xlu0 %1527 }
0x1248   :  { %1658 = vst.msk [vmem:[%s2578_s4 + $0xe] sm:$0x3] %vm187_vm0, %v1442_v9 }
0x1249   :  { %1530 = vst.msk [vmem:[#allocation2] sm:$0x3] %vm187_vm0, %v1528_v52 }
0x124f   :  { %v1533_v24 = vpop.permute.xlu1 %1532  ;;  %v1543_v55 = vpop.permute.xlu0 %1542 }
0x1250   :  { %1535 = vst.msk [vmem:[#allocation3] sm:$0x3] %vm187_vm0, %v1533_v24 }
0x1251   :  { %1545 = vst.msk [vmem:[#allocation5] sm:$0x3] %vm187_vm0, %v1543_v55 }

</bundles_post_ra>
